<compile_context>
chip_gen: v7x
topology: tpu7x:2x2x1
jax: 0.10.0
libtpu: 0.0.40
codegen_flags: <defaults>
</compile_context>

<pallas_src>
import functools

import jax
import jax.numpy as jnp
from jax import lax
from jax.experimental import pallas as pl
from jax.experimental.pallas import tpu as pltpu


def _round_up(x, m):
    return (x + m - 1) // m * m


def _flash_self_attention_kernel(gamma_ref, xq_ref, xk_ref, wl_ref, wr_ref, wv_ref,
                                 o_ref, q_sc, m_sc, l_sc, acc_sc,
                                 *, fold_scores, n_valid):
    """One (batch, query-block, key-block) grid step.

    xq_ref: (TQ, C)  rows of x^T for the output positions of this query block.
    xk_ref: (TK, C)  rows of x^T for the attended positions of this key block.
    wl_ref: (Cp, C)  query-side weight: Wk (general) or Wq^T Wk (folded, Cp == C).
    wr_ref: (Ck, C)  key-side weight Wq (unused in the folded path).
    wv_ref: (C,  C)  value weight, applied once at finalize.
    """
    ki = pl.program_id(2)

    @pl.when(ki == 0)
    def _init():
        xq = xq_ref[...].astype(jnp.bfloat16)
        wl = wl_ref[...].astype(jnp.bfloat16)
        # q = x_q @ wl^T  : (TQ, Cp), computed once per query block, cached in scratch.
        q = lax.dot_general(xq, wl, (((1,), (1,)), ((), ())),
                            preferred_element_type=jnp.float32)
        q_sc[...] = q.astype(q_sc.dtype)
        m_sc[...] = jnp.full(m_sc.shape, -jnp.inf, m_sc.dtype)
        l_sc[...] = jnp.zeros(l_sc.shape, l_sc.dtype)
        acc_sc[...] = jnp.zeros(acc_sc.shape, acc_sc.dtype)

    xk = xk_ref[...].astype(jnp.bfloat16)                      # (TK, C)
    if fold_scores:
        # Scores contract directly over C: s = (x_q A) x_k^T.
        k = xk
    else:
        # k = x_k @ Wq^T : (TK, Ck)
        wr = wr_ref[...].astype(jnp.bfloat16)
        k = lax.dot_general(xk, wr, (((1,), (1,)), ((), ())),
                            preferred_element_type=jnp.float32).astype(jnp.bfloat16)

    # s[j, i] = <q[j, :], k[i, :]>  -> (TQ, TK); softmax reduction runs along lanes.
    s = lax.dot_general(q_sc[...], k, (((1,), (1,)), ((), ())),
                        preferred_element_type=jnp.float32)

    if n_valid is not None:
        # Mask padded key columns (N was padded up to a multiple of the key block).
        col = ki * s.shape[1] + lax.broadcasted_iota(jnp.int32, s.shape, 1)
        s = jnp.where(col < n_valid, s, -jnp.inf)

    # Online softmax update (all f32).
    m_prev = m_sc[...]
    m_new = jnp.maximum(m_prev, jnp.max(s, axis=-1, keepdims=True))
    alpha = jnp.exp(m_prev - m_new)
    p = jnp.exp(s - m_new)
    l_sc[...] = alpha * l_sc[...] + jnp.sum(p, axis=-1, keepdims=True)
    # Accumulate softmax-weighted raw x rows; Wv is applied once at finalize.
    acc_sc[...] = alpha * acc_sc[...] + jnp.dot(
        p.astype(jnp.bfloat16), xk, preferred_element_type=jnp.float32)
    m_sc[...] = m_new

    @pl.when(ki == pl.num_programs(2) - 1)
    def _finalize():
        ctx = acc_sc[...] * pl.reciprocal(l_sc[...], approx=True)   # (TQ, C), f32
        wv = wv_ref[...].astype(jnp.bfloat16)
        # o = ctx @ Wv^T : (TQ, C)
        o = lax.dot_general(ctx.astype(jnp.bfloat16), wv, (((1,), (1,)), ((), ())),
                            preferred_element_type=jnp.float32)
        gamma = gamma_ref[0]
        o_ref[...] = (gamma * o + xq_ref[...].astype(jnp.float32)).astype(o_ref.dtype)


def self_attention_pallas(x_bnc, wq, wk, wv, gamma, *, block=512):
    """x_bnc: (B, N, C) float32 (x^T layout). Returns (B, N, C)."""
    B, N, C = x_bnc.shape
    Ck = wq.shape[0]
    fold_scores = C <= 128

    # Block size: multiple of 128, capped by `block`, covering N.
    blk = min(block, _round_up(N, 128))
    n_pad = _round_up(N, blk)
    needs_mask = n_pad != N
    if needs_mask:
        x_bnc = jnp.pad(x_bnc, ((0, 0), (0, n_pad - N), (0, 0)))

    if fold_scores:
        # Fold the two tiny projections into one (C, C) matrix: s = (x_q @ (Wq^T Wk)) @ x_k^T.
        wl = (wq.T @ wk).astype(jnp.float32)          # (C, C)
    else:
        wl = wk.astype(jnp.float32)                   # (Ck, C): q = x_q @ Wk^T
    wr = wq.astype(jnp.float32)                       # (Ck, C): k = x_k @ Wq^T (general path)
    wv = wv.astype(jnp.float32)                       # (C, C)
    Cp = wl.shape[0]

    gamma_arr = jnp.asarray(gamma, jnp.float32).reshape((1,))

    grid = (B, n_pad // blk, n_pad // blk)
    kernel = functools.partial(_flash_self_attention_kernel,
                               fold_scores=fold_scores,
                               n_valid=N if needs_mask else None)

    # VMEM budget: double-buffered x_q/x_k/out blocks + weights + scratch (f32/bf16 bytes).
    est = (6 * blk * C + 2 * (Cp * C + Ck * C + C * C)) * 4 \
        + blk * Cp * 2 + blk * (C + 2) * 4
    vmem_limit = int(min(64 * 1024 * 1024, max(2 * est, 32 * 1024 * 1024)))

    out = pl.pallas_call(
        kernel,
        out_shape=jax.ShapeDtypeStruct((B, n_pad, C), x_bnc.dtype),
        grid_spec=pltpu.PrefetchScalarGridSpec(
            num_scalar_prefetch=0,
            grid=grid,
            in_specs=[
                pl.BlockSpec(memory_space=pltpu.MemorySpace.SMEM),           # gamma (scalar)
                pl.BlockSpec((None, blk, C), lambda b, qi, ki: (b, qi, 0)),  # x rows: query block
                pl.BlockSpec((None, blk, C), lambda b, qi, ki: (b, ki, 0)),  # x rows: key/value block
                pl.BlockSpec((Cp, C), lambda b, qi, ki: (0, 0)),             # wl (Wk or Wq^T Wk)
                pl.BlockSpec((Ck, C), lambda b, qi, ki: (0, 0)),             # wr (Wq; unused if folded)
                pl.BlockSpec((C, C), lambda b, qi, ki: (0, 0)),              # wv
            ],
            out_specs=pl.BlockSpec((None, blk, C), lambda b, qi, ki: (b, qi, 0)),
            scratch_shapes=[
                pltpu.VMEM((blk, Cp), jnp.bfloat16),   # cached query-block projection
                pltpu.VMEM((blk, 1), jnp.float32),     # running max m
                pltpu.VMEM((blk, 1), jnp.float32),     # running sum l
                pltpu.VMEM((blk, C), jnp.float32),     # running context acc
            ],
        ),
        compiler_params=pltpu.CompilerParams(
            dimension_semantics=("parallel", "parallel", "arbitrary"),
            vmem_limit_bytes=vmem_limit,
        ),
    )(gamma_arr, x_bnc, x_bnc, wl, wr, wv)

    if needs_mask:
        out = out[:, :N, :]
    return out


def spectral_normalize(w, n_iters=5):
    """Parameter glue: divide w (out, in) by its top singular value (power iteration)."""
    u = jnp.ones((w.shape[0],), jnp.float32) / jnp.sqrt(w.shape[0])
    v = None
    for _ in range(n_iters):
        v = w.T @ u
        v = v / (jnp.linalg.norm(v) + 1e-12)
        u = w @ v
        u = u / (jnp.linalg.norm(u) + 1e-12)
    sigma = u @ (w @ v)
    return w / sigma


@jax.jit
def self_attention_forward(x_nchw, wq, wk, wv, gamma):
    """Full forward: NCHW in, NCHW out (matches SelfAttention.forward)."""
    B, C, H, W = x_nchw.shape
    # Layout plumbing in the wrapper: (B, C, H, W) -> (B, N, C) so channels sit on lanes.
    x_t = jnp.transpose(x_nchw.reshape(B, C, H * W), (0, 2, 1))
    o_t = self_attention_pallas(x_t, wq, wk, wv, gamma)
    return jnp.transpose(o_t, (0, 2, 1)).reshape(B, C, H, W)


def _reference_forward(x_nchw, wq, wk, wv, gamma):
    """Pure-JAX f32 reference matching the PyTorch module exactly."""
    B, C, H, W = x_nchw.shape
    x = x_nchw.reshape(B, C, H * W)
    f = jnp.einsum("oc,bcn->bon", wq, x)
    g = jnp.einsum("oc,bcn->bon", wk, x)
    h = jnp.einsum("oc,bcn->bon", wv, x)
    s = jnp.einsum("bci,bcj->bij", f, g)          # (B, N, N)
    beta = jax.nn.softmax(s, axis=1)              # softmax over dim=1
    o = gamma * jnp.einsum("bci,bij->bcj", h, beta) + x
    return o.reshape(B, C, H, W)


if __name__ == "__main__":
    def run_case(B, C, H, W, seed):
        Ck = C // 8
        key = jax.random.PRNGKey(seed)
        kx, kq, kk, kv = jax.random.split(key, 4)

        x = jax.random.normal(kx, (B, C, H, W), jnp.float32)

        # Deterministic init + spectral normalization, as spectral_norm() does on the 1x1 convs.
        wq = spectral_normalize(jax.random.normal(kq, (Ck, C), jnp.float32) * 0.1)
        wk = spectral_normalize(jax.random.normal(kk, (Ck, C), jnp.float32) * 0.1)
        wv = spectral_normalize(jax.random.normal(kv, (C, C), jnp.float32) * 0.1)

        # gamma initialized to 0.0, exactly as in the module's __init__.
        gamma0 = jnp.array(0.0, jnp.float32)
        out0 = jax.block_until_ready(self_attention_forward(x, wq, wk, wv, gamma0))
        ref0 = _reference_forward(x, wq, wk, wv, gamma0)
        assert jnp.allclose(out0, ref0, atol=1e-5, rtol=1e-5), "gamma=0 mismatch"

        # Non-zero gamma exercises the attention path; bf16 MXU operands -> loosened tolerance.
        gamma1 = jnp.array(0.7, jnp.float32)
        out1 = jax.block_until_ready(self_attention_forward(x, wq, wk, wv, gamma1))
        ref1 = _reference_forward(x, wq, wk, wv, gamma1)
        err = float(jnp.max(jnp.abs(out1 - ref1)))
        assert jnp.allclose(out1, ref1, atol=5e-2, rtol=5e-2), \
            f"gamma=0.7 mismatch (max abs err {err})"

    # Folded-score path (C <= 128), N = 256 (lane-aligned, no masking).
    run_case(B=2, C=64, H=16, W=16, seed=0)
    # General projection path (C > 128), N = 64 -> padded to 128 with masked key columns.
    run_case(B=2, C=256, H=8, W=8, seed=0)

    # TODO(synk): for very small N (< 128) one could also pack several batch elements per grid
    # step to fill lanes / amortize per-step overhead; not needed for correctness.
    print("KERNEL_OK")
</pallas_src>

<mosaic_0001>
module attributes {stable_mosaic.version = 11 : i64} {
  func.func @_flash_self_attention_kernel(%arg0: i32, %arg1: i32, %arg2: i32, %arg3: memref<1xf32, #tpu.memory_space<smem>>, %arg4: memref<1x256x64xf32, #tpu.memory_space<vmem>>, %arg5: memref<1x256x64xf32, #tpu.memory_space<vmem>>, %arg6: memref<64x64xf32, #tpu.memory_space<vmem>>, %arg7: memref<8x64xf32, #tpu.memory_space<vmem>>, %arg8: memref<64x64xf32, #tpu.memory_space<vmem>>, %arg9: memref<1x256x64xf32, #tpu.memory_space<vmem>>, %arg10: memref<256x64xbf16, #tpu.memory_space<vmem>>, %arg11: memref<256x1xf32, #tpu.memory_space<vmem>>, %arg12: memref<256x1xf32, #tpu.memory_space<vmem>>, %arg13: memref<256x64xf32, #tpu.memory_space<vmem>>) attributes {dimension_semantics = [#tpu.dimension_semantics<parallel>, #tpu.dimension_semantics<parallel>, #tpu.dimension_semantics<arbitrary>], iteration_bounds = array<i64: 2, 1, 1>, scalar_prefetch = 0 : i64, scratch_operands = 4 : i64, tpu.core_type = #tpu.core_type<tc>, window_params = [{transform_indices = @transform_0, window_bounds = array<i64: 1>}, {transform_indices = @transform_1, window_bounds = array<i64: 1, 256, 64>}, {transform_indices = @transform_2, window_bounds = array<i64: 1, 256, 64>}, {pipeline_mode = #tpu.pipeline_mode<synchronous>, transform_indices = @transform_3, window_bounds = array<i64: 64, 64>}, {pipeline_mode = #tpu.pipeline_mode<synchronous>, transform_indices = @transform_4, window_bounds = array<i64: 8, 64>}, {pipeline_mode = #tpu.pipeline_mode<synchronous>, transform_indices = @transform_5, window_bounds = array<i64: 64, 64>}, {transform_indices = @transform_6, window_bounds = array<i64: 1, 256, 64>}]} {
    %c0_i32 = arith.constant 0 : i32
    %0 = arith.cmpi eq, %arg2, %c0_i32 : i32
    %1 = arith.extui %0 : i1 to i32
    %c0_i32_0 = arith.constant 0 : i32
    %2 = arith.cmpi ne, %1, %c0_i32_0 : i32
    scf.if %2 {
      %c0_22 = arith.constant 0 : index
      %c0_23 = arith.constant 0 : index
      %c0_24 = arith.constant 0 : index
      %34 = vector.load %arg4[%c0_22, %c0_23, %c0_24] : memref<1x256x64xf32, #tpu.memory_space<vmem>>, vector<1x256x64xf32>
      %35 = vector.shape_cast %34 : vector<1x256x64xf32> to vector<256x64xf32>
      %36 = arith.truncf %35 : vector<256x64xf32> to vector<256x64xbf16>
      %c0_25 = arith.constant 0 : index
      %c0_26 = arith.constant 0 : index
      %37 = vector.load %arg6[%c0_25, %c0_26] : memref<64x64xf32, #tpu.memory_space<vmem>>, vector<64x64xf32>
      %38 = arith.truncf %37 : vector<64x64xf32> to vector<64x64xbf16>
      %cst_27 = arith.constant dense<0.000000e+00> : vector<256x64xf32>
      %39 = tpu.matmul %36, %38, %cst_27 {dimension_numbers = #tpu.dot_dimension_numbers<[1], [1], [0], [0], [0, 0, 1, 0], [], []>} : vector<256x64xbf16>, vector<64x64xbf16>, vector<256x64xf32> -> vector<256x64xf32>
      %40 = arith.truncf %39 : vector<256x64xf32> to vector<256x64xbf16>
      %c0_28 = arith.constant 0 : index
      %c0_29 = arith.constant 0 : index
      %41 = vector.load %arg10[%c0_28, %c0_29] : memref<256x64xbf16, #tpu.memory_space<vmem>>, vector<256x64xbf16>
      tpu.vector_store %arg10[%c0_28, %c0_29], %40 {strides = array<i32>} : memref<256x64xbf16, #tpu.memory_space<vmem>>, vector<256x64xbf16>,
      %cst_30 = arith.constant 0xFF800000 : f32
      %42 = vector.broadcast %cst_30 : f32 to vector<256x1xf32>
      %c0_31 = arith.constant 0 : index
      %c0_32 = arith.constant 0 : index
      %43 = vector.load %arg11[%c0_31, %c0_32] : memref<256x1xf32, #tpu.memory_space<vmem>>, vector<256x1xf32>
      tpu.vector_store %arg11[%c0_31, %c0_32], %42 {strides = array<i32>} : memref<256x1xf32, #tpu.memory_space<vmem>>, vector<256x1xf32>,
      %cst_33 = arith.constant 0.000000e+00 : f32
      %44 = vector.broadcast %cst_33 : f32 to vector<256x1xf32>
      %c0_34 = arith.constant 0 : index
      %c0_35 = arith.constant 0 : index
      %45 = vector.load %arg12[%c0_34, %c0_35] : memref<256x1xf32, #tpu.memory_space<vmem>>, vector<256x1xf32>
      tpu.vector_store %arg12[%c0_34, %c0_35], %44 {strides = array<i32>} : memref<256x1xf32, #tpu.memory_space<vmem>>, vector<256x1xf32>,
      %cst_36 = arith.constant 0.000000e+00 : f32
      %46 = vector.broadcast %cst_36 : f32 to vector<256x64xf32>
      %c0_37 = arith.constant 0 : index
      %c0_38 = arith.constant 0 : index
      %47 = vector.load %arg13[%c0_37, %c0_38] : memref<256x64xf32, #tpu.memory_space<vmem>>, vector<256x64xf32>
      tpu.vector_store %arg13[%c0_37, %c0_38], %46 {strides = array<i32>} : memref<256x64xf32, #tpu.memory_space<vmem>>, vector<256x64xf32>,
    } else {
    }
    %c0 = arith.constant 0 : index
    %c0_1 = arith.constant 0 : index
    %c0_2 = arith.constant 0 : index
    %3 = vector.load %arg5[%c0, %c0_1, %c0_2] : memref<1x256x64xf32, #tpu.memory_space<vmem>>, vector<1x256x64xf32>
    %4 = vector.shape_cast %3 : vector<1x256x64xf32> to vector<256x64xf32>
    %5 = arith.truncf %4 : vector<256x64xf32> to vector<256x64xbf16>
    %c0_3 = arith.constant 0 : index
    %c0_4 = arith.constant 0 : index
    %6 = vector.load %arg10[%c0_3, %c0_4] : memref<256x64xbf16, #tpu.memory_space<vmem>>, vector<256x64xbf16>
    %cst = arith.constant dense<0.000000e+00> : vector<256x256xf32>
    %7 = tpu.matmul %6, %5, %cst {dimension_numbers = #tpu.dot_dimension_numbers<[1], [1], [0], [0], [0, 0, 1, 0], [], []>} : vector<256x64xbf16>, vector<256x64xbf16>, vector<256x256xf32> -> vector<256x256xf32>
    %c0_5 = arith.constant 0 : index
    %c0_6 = arith.constant 0 : index
    %8 = vector.load %arg11[%c0_5, %c0_6] : memref<256x1xf32, #tpu.memory_space<vmem>>, vector<256x1xf32>
    %cst_7 = arith.constant dense<0xFF800000> : vector<256xf32>
    %9 = vector.multi_reduction <maximumf>, %7, %cst_7 [1] : vector<256x256xf32> to vector<256xf32>
    %10 = vector.shape_cast %9 : vector<256xf32> to vector<256x1xf32>
    %11 = arith.maximumf %8, %10 : vector<256x1xf32>
    %12 = arith.subf %8, %11 : vector<256x1xf32>
    %13 = math.exp %12 : vector<256x1xf32>
    %14 = vector.broadcast %11 : vector<256x1xf32> to vector<256x256xf32>
    %15 = arith.subf %7, %14 : vector<256x256xf32>
    %16 = math.exp %15 : vector<256x256xf32>
    %c0_8 = arith.constant 0 : index
    %c0_9 = arith.constant 0 : index
    %17 = vector.load %arg12[%c0_8, %c0_9] : memref<256x1xf32, #tpu.memory_space<vmem>>, vector<256x1xf32>
    %18 = arith.mulf %13, %17 : vector<256x1xf32>
    %cst_10 = arith.constant dense<0.000000e+00> : vector<256xf32>
    %19 = vector.multi_reduction <add>, %16, %cst_10 [1] : vector<256x256xf32> to vector<256xf32>
    %20 = vector.shape_cast %19 : vector<256xf32> to vector<256x1xf32>
    %21 = arith.addf %18, %20 : vector<256x1xf32>
    %c0_11 = arith.constant 0 : index
    %c0_12 = arith.constant 0 : index
    %22 = vector.load %arg12[%c0_11, %c0_12] : memref<256x1xf32, #tpu.memory_space<vmem>>, vector<256x1xf32>
    tpu.vector_store %arg12[%c0_11, %c0_12], %21 {strides = array<i32>} : memref<256x1xf32, #tpu.memory_space<vmem>>, vector<256x1xf32>,
    %c0_13 = arith.constant 0 : index
    %c0_14 = arith.constant 0 : index
    %23 = vector.load %arg13[%c0_13, %c0_14] : memref<256x64xf32, #tpu.memory_space<vmem>>, vector<256x64xf32>
    %24 = vector.broadcast %13 : vector<256x1xf32> to vector<256x64xf32>
    %25 = arith.mulf %24, %23 : vector<256x64xf32>
    %26 = arith.truncf %16 : vector<256x256xf32> to vector<256x256xbf16>
    %cst_15 = arith.constant dense<0.000000e+00> : vector<256x64xf32>
    %27 = tpu.matmul %26, %5, %cst_15 {dimension_numbers = #tpu.dot_dimension_numbers<[1], [0], [0], [1], [0, 0, 1, 1], [], []>} : vector<256x256xbf16>, vector<256x64xbf16>, vector<256x64xf32> -> vector<256x64xf32>
    %28 = arith.addf %25, %27 : vector<256x64xf32>
    %c0_16 = arith.constant 0 : index
    %c0_17 = arith.constant 0 : index
    %29 = vector.load %arg13[%c0_16, %c0_17] : memref<256x64xf32, #tpu.memory_space<vmem>>, vector<256x64xf32>
    tpu.vector_store %arg13[%c0_16, %c0_17], %28 {strides = array<i32>} : memref<256x64xf32, #tpu.memory_space<vmem>>, vector<256x64xf32>,
    %c0_18 = arith.constant 0 : index
    %c0_19 = arith.constant 0 : index
    %30 = vector.load %arg11[%c0_18, %c0_19] : memref<256x1xf32, #tpu.memory_space<vmem>>, vector<256x1xf32>
    tpu.vector_store %arg11[%c0_18, %c0_19], %11 {strides = array<i32>} : memref<256x1xf32, #tpu.memory_space<vmem>>, vector<256x1xf32>,
    %c0_i32_20 = arith.constant 0 : i32
    %31 = arith.cmpi eq, %arg2, %c0_i32_20 : i32
    %32 = arith.extui %31 : i1 to i32
    %c0_i32_21 = arith.constant 0 : i32
    %33 = arith.cmpi ne, %32, %c0_i32_21 : i32
    scf.if %33 {
      %c0_22 = arith.constant 0 : index
      %c0_23 = arith.constant 0 : index
      %34 = vector.load %arg13[%c0_22, %c0_23] : memref<256x64xf32, #tpu.memory_space<vmem>>, vector<256x64xf32>
      %c0_24 = arith.constant 0 : index
      %c0_25 = arith.constant 0 : index
      %35 = vector.load %arg12[%c0_24, %c0_25] : memref<256x1xf32, #tpu.memory_space<vmem>>, vector<256x1xf32>
      %36 = tpu.reciprocal %35 {approx = true} : vector<256x1xf32> -> vector<256x1xf32>
      %37 = vector.broadcast %36 : vector<256x1xf32> to vector<256x64xf32>
      %38 = arith.mulf %34, %37 : vector<256x64xf32>
      %c0_26 = arith.constant 0 : index
      %c0_27 = arith.constant 0 : index
      %39 = vector.load %arg8[%c0_26, %c0_27] : memref<64x64xf32, #tpu.memory_space<vmem>>, vector<64x64xf32>
      %40 = arith.truncf %39 : vector<64x64xf32> to vector<64x64xbf16>
      %41 = arith.truncf %38 : vector<256x64xf32> to vector<256x64xbf16>
      %cst_28 = arith.constant dense<0.000000e+00> : vector<256x64xf32>
      %42 = tpu.matmul %41, %40, %cst_28 {dimension_numbers = #tpu.dot_dimension_numbers<[1], [1], [0], [0], [0, 0, 1, 0], [], []>} : vector<256x64xbf16>, vector<64x64xbf16>, vector<256x64xf32> -> vector<256x64xf32>
      %c0_29 = arith.constant 0 : index
      %43 = memref.load %arg3[%c0_29] : memref<1xf32, #tpu.memory_space<smem>>
      %44 = vector.broadcast %43 : f32 to vector<256x64xf32>
      %45 = arith.mulf %44, %42 : vector<256x64xf32>
      %c0_30 = arith.constant 0 : index
      %c0_31 = arith.constant 0 : index
      %c0_32 = arith.constant 0 : index
      %46 = vector.load %arg4[%c0_30, %c0_31, %c0_32] : memref<1x256x64xf32, #tpu.memory_space<vmem>>, vector<1x256x64xf32>
      %47 = vector.shape_cast %46 : vector<1x256x64xf32> to vector<256x64xf32>
      %48 = arith.addf %45, %47 : vector<256x64xf32>
      %c0_33 = arith.constant 0 : index
      %c0_34 = arith.constant 0 : index
      %c0_35 = arith.constant 0 : index
      %49 = vector.load %arg9[%c0_33, %c0_34, %c0_35] : memref<1x256x64xf32, #tpu.memory_space<vmem>>, vector<1x256x64xf32>
      %50 = vector.shape_cast %49 : vector<1x256x64xf32> to vector<256x64xf32>
      %51 = vector.shape_cast %48 : vector<256x64xf32> to vector<1x256x64xf32>
      tpu.vector_store %arg9[%c0_33, %c0_34, %c0_35], %51 {strides = array<i32>} : memref<1x256x64xf32, #tpu.memory_space<vmem>>, vector<1x256x64xf32>,
    } else {
    }
    return
  }
  func.func @transform_0(%arg0: i32, %arg1: i32, %arg2: i32) -> i32 {
    %c0_i32 = arith.constant 0 : i32
    %c0_i32_0 = arith.constant 0 : i32
    return %c0_i32 : i32
  }
  func.func @transform_1(%arg0: i32, %arg1: i32, %arg2: i32) -> (i32, i32, i32) {
    %c0_i32 = arith.constant 0 : i32
    %c0_i32_0 = arith.constant 0 : i32
    return %arg0, %arg1, %c0_i32 : i32, i32, i32
  }
  func.func @transform_2(%arg0: i32, %arg1: i32, %arg2: i32) -> (i32, i32, i32) {
    %c0_i32 = arith.constant 0 : i32
    %c0_i32_0 = arith.constant 0 : i32
    return %arg0, %arg2, %c0_i32 : i32, i32, i32
  }
  func.func @transform_3(%arg0: i32, %arg1: i32, %arg2: i32) -> (i32, i32) {
    %c0_i32 = arith.constant 0 : i32
    %c0_i32_0 = arith.constant 0 : i32
    %c0_i32_1 = arith.constant 0 : i32
    return %c0_i32, %c0_i32_0 : i32, i32
  }
  func.func @transform_4(%arg0: i32, %arg1: i32, %arg2: i32) -> (i32, i32) {
    %c0_i32 = arith.constant 0 : i32
    %c0_i32_0 = arith.constant 0 : i32
    %c0_i32_1 = arith.constant 0 : i32
    return %c0_i32, %c0_i32_0 : i32, i32
  }
  func.func @transform_5(%arg0: i32, %arg1: i32, %arg2: i32) -> (i32, i32) {
    %c0_i32 = arith.constant 0 : i32
    %c0_i32_0 = arith.constant 0 : i32
    %c0_i32_1 = arith.constant 0 : i32
    return %c0_i32, %c0_i32_0 : i32, i32
  }
  func.func @transform_6(%arg0: i32, %arg1: i32, %arg2: i32) -> (i32, i32, i32) {
    %c0_i32 = arith.constant 0 : i32
    %c0_i32_0 = arith.constant 0 : i32
    return %arg0, %arg1, %c0_i32 : i32, i32, i32
  }
}

</mosaic_0001>

<bundles_post_ra>
// kernel: self_attention_forward.1
= control target key start
LH: loop header
LB: loop body
LE: loop exit
PB: predicated region body
PF: predicated region fallthrough
CT: control target
= control target key end

     0   :  { %s6008_s0 = inlined_call_operand.<no memory space> [shape: f32[1], index: 0, kind: input, shape index: {}]   ;;  %s6009_s1 = inlined_call_operand.hbm [shape: f32[2,256,64], index: 1, kind: input, shape index: {}, may-alias: {1,2}]   ;;  %s6010_s2 = inlined_call_operand.hbm [shape: f32[2,256,64], index: 2, kind: input, shape index: {}, may-alias: {1,2}]   ;;  %s6011_s3 = inlined_call_operand.vmem [shape: f32[64,64], index: 3, kind: input, shape index: {}]   ;;  %s6012_s4 = inlined_call_operand.vmem [shape: f32[8,64], index: 4, kind: input, shape index: {}]   ;;  %s6013_s5 = inlined_call_operand.vmem [shape: f32[64,64], index: 5, kind: input, shape index: {}]   ;;  %s6014_s6 = inlined_call_operand.hbm [shape: f32[2,256,64], index: 6, kind: output, shape index: {}]  }
   0x1   :  { %11 = sst [smem:[#allocation6]] %s6008_s0 }
   0x2   :  { %12 = vsyncpa [#allocation8], 0 }
   0x3   :  { %14 = vsyncpa [#allocation8 + $0x1], 0 }
   0x4   :  { %15 = vsyncpa [#allocation11], 0 }
   0x5   :  { %17 = vsyncpa [#allocation11 + $0x1], 0 }
   0x6   :  { %18 = vsyncpa [#allocation9], 0 }
   0x7   :  { %20 = vsyncpa [#allocation9 + $0x1], 0  ;;  %s4167_s23 = smov 0   ;;  %s4169_s24 = smov 0  }
   0x8   :  { %s4171_s4 = smov 0   ;;  %s4173_s25 = smov 0  }
   0x9   :  { %s4175_s26 = smov 0   ;;  %s4177_s27 = smov 0  }
   0xa LB: > { %s3261_s0 = sadd.s32 4294967295, %s4117_s27   ;;  %s3262_s28 = sadd.s32 4294967294, %s4117_s27   ;;  %s4117_s27 = sphi %s4177_s27, %s26_s27   ;;  %s4113_s26 = sphi %s4175_s26, %s6335_s26   ;;  %s4109_s25 = sphi %s4173_s25, %s6334_s25   ;;  %s4105_s4 = sphi %s4171_s4, %s6333_s4   ;;  %s4101_s24 = sphi %s4169_s24, %s6332_s24   ;;  %s4097_s23 = sphi %s4167_s23, %s6331_s23  }
   0xb   : > { %s45_s29 = sadd.s32 1, %s4113_s26  ;;  %s75_s30 = sadd.s32 1, %s4105_s4 }
   0xc   : > { %p47_p0 = scmp.ge.s32.totalorder %s45_s29, 2  ;;  %p82_p1 = scmp.ne.s32.totalorder %s4105_s4, %s4101_s24 }
   0xd   : > { %p83_p2 = scmp.eq.s32.totalorder %s4117_s27, 0  ;;  %p88_p3 = scmp.ne.s32.totalorder %s4101_s24, %s4097_s23 }
   0xe   : > { %s6337_s29 = smov (%p47_p0, %s45_s29), 0  ;;  %p89_p5 = scmp.eq.s32.totalorder %s3261_s0, 0 }
   0xf   : > { %p4208_p4 = por %p83_p2, %p82_p1  ;;  %s70_s8 = ssub.s32 %s4113_s26, %s6337_s29 }
  0x10   : > { %p205_p6 = scmp.eq.s32.totalorder %s3261_s0, 1  ;;  %p73_p7 = scmp.eq.s32.totalorder %s70_s8, 0 }
  0x11   : > { %p4214_p8 = por %p89_p5, %p88_p3  ;;  %p211_p10 = scmp.eq.s32.totalorder %s3262_s28, 1 }
  0x12   : > { %p4218_p9 = por %p205_p6, %p82_p1  ;;  %p3656_p13 = scmp.lt.s32.totalorder %s4117_s27, 2 }
  0x13   : > { %s6108_s9 = scalar_select %p4214_p8, 1, 0 }
  0x14   : > { %s6109_s10 = scalar_select %p4218_p9, 1, 0 }
  0x15   : > { %s4223_s11 = scalar_select %p73_p7, %s4105_s4, %s75_s30  }
  0x16   : > { %p4225_p11 = por %p211_p10, %p88_p3  ;;  %s4232_s13 = sand.u32 1, %s4105_s4  }
  0x17   : > { %s3265_s14 = sshll.u32 %s4232_s13, 8  ;;  %s3328_s15 = sshll.u32 %s4113_s26, 12 }
  0x18   : > { %s6110_s12 = scalar_select %p4225_p11, 1, 0 }
  0x19   : > { %s4241_s18 = scalar_lea.hbm %s6009_s1, %s3328_s15  ;;  %s247_s19 = scalar_lea.vmem [#allocation7], %s3265_s14 }
  0x1a   : > { %s256_s20 = sshll.u32 %s247_s19, 4  ;;  %p4249_p0 = pnand %p3656_p13, %p4208_p4  ;;  %s4245_s20 = int_to_ptr.vmem [resolvable:$true] %s256_s20 }
  0x1b   : > { %s244_s22 = scalar_lea.sflag [#allocation8], %s4232_s13  ;;  %s3971_s0 = scalar_lea.hbm %s4241_s18, 4096 }
  0x1c   : > { %p3972_p2 = scmp.ne.s32.totalorder %s4241_s18, %s3971_s0  ;;  %p3973_p3 = pneg %p4249_p0 }
  0x1d   : > { %s3976_s7 = scalar_lea.hbm %s6009_s1, 8192  ;;  %p3977_p4 = scmp.lt.u32.totalorder %s4241_s18, %s6009_s1 }
  0x1e   : > { %p3974_p5 = pnand %p3973_p3, %p3972_p2  ;;  %p3978_p7 = scmp.lt.u32.totalorder %s3976_s7, %s3971_s0 }
  0x1f   : > { %p3980_p13 = scmp.lt.u32.totalorder %s3971_s0, %s4241_s18 }
  0x20   : > { %p3975_p6 = pneg %p3974_p5  ;;  %p3979_p10 = por %p3978_p7, %p3977_p4 }
  0x22   : > { %p3981_p12 = por %p3980_p13, %p3979_p10 }
  0x24   : > { %p3982_p1 = pnand %p3981_p12, %p3975_p6 }
  0x26   : > { %3985 = shalt.err (!%p3982_p1)
}
  0x27   : > { %s3986_s17 = scalar_lea.vmem %s4245_s20, 4096  ;;  %s4119_s19 = smov [#allocation7]  }
  0x28   : > { %p3987_p2 = scmp.ne.s32.totalorder %s4245_s20, %s3986_s17  ;;  %s3991_s28 = sshll.u32 %s4119_s19, 4  ;;  %s3992_s28 = int_to_ptr.vmem [resolvable:$false] %s3991_s28 }
  0x29   : > { %s3993_s30 = scalar_lea.vmem %s3992_s28, 8192  ;;  %p3994_p9 = scmp.lt.s32.totalorder %s4245_s20, %s3992_s28 }
  0x2a   : > { %p3989_p5 = pnand %p3987_p2, %p3973_p3  ;;  %p3995_p4 = scmp.lt.s32.totalorder %s3993_s30, %s3986_s17 }
  0x2c   : > { %p3990_p11 = pneg %p3989_p5  ;;  %p3996_p7 = por %p3995_p4, %p3994_p9 }
  0x2e   : > { %p3997_p10 = pnand %p3996_p7, %p3990_p11 }
  0x30   : > { %4000 = shalt.err (!%p3997_p10)
}
  0x31   : > { %s6016_s0 = smov 128   ;;  %s4121_s7 = smov 8  }
  0x32   : > { %3648 = dma.hbm_to_vmem [thread:$0]  (!%p4249_p0), %s4241_s18, 4096, %s4245_s20, %s244_s22, %s6016_s0, %s6016_s0, %s4121_s7  }
  0x33   : > { %p287_p9 = scmp.lt.s32.totalorder %s4117_s27, 3  ;;  %s4291_s17 = scalar_lea.hbm %s6010_s2, %s3328_s15 }
  0x34   : > { %p6112_p11 = scmp.ge.s32.totalorder %s4117_s27, 1  ;;  %s270_s28 = scalar_lea.vmem [#allocation10], %s3265_s14 }
  0x35   : > { %s279_s30 = sshll.u32 %s270_s28, 4  ;;  %s267_s18 = scalar_lea.sflag [#allocation11], %s4232_s13  ;;  %s4301_s30 = int_to_ptr.vmem [resolvable:$true] %s279_s30 }
  0x36   : > { %p4295_p12 = pnand %p6112_p11, %p287_p9  ;;  %s4001_s20 = scalar_lea.hbm %s4291_s17, 4096 }
  0x37   : > { %p4002_p1 = scmp.ne.s32.totalorder %s4291_s17, %s4001_s20  ;;  %s4006_s8 = scalar_lea.hbm %s6010_s2, 8192 }
  0x38   : > { %p4007_p2 = scmp.lt.u32.totalorder %s4291_s17, %s6010_s2  ;;  %p4008_p5 = scmp.lt.u32.totalorder %s4006_s8, %s4001_s20 }
  0x39   : > { %p4004_p6 = pnand %p4002_p1, %p3973_p3  ;;  %p4010_p7 = scmp.lt.u32.totalorder %s4001_s20, %s4291_s17 }
  0x3a   : > { %p4009_p4 = por %p4008_p5, %p4007_p2 }
  0x3b   : > { %p4005_p13 = pneg %p4004_p6 }
  0x3c   : > { %p4011_p10 = por %p4010_p7, %p4009_p4 }
  0x3e   : > { %p4012_p9 = pnand %p4011_p10, %p4005_p13 }
  0x40   : > { %4015 = shalt.err (!%p4012_p9)
}
  0x41   : > { %s4016_s14 = scalar_lea.vmem %s4301_s30, 4096  ;;  %s4122_s28 = smov [#allocation10]  }
  0x42   : > { %p4017_p11 = scmp.ne.s32.totalorder %s4301_s30, %s4016_s14  ;;  %s4021_s15 = sshll.u32 %s4122_s28, 4  ;;  %s4022_s15 = int_to_ptr.vmem [resolvable:$false] %s4021_s15 }
  0x43   : > { %s4023_s0 = scalar_lea.vmem %s4022_s15, 8192  ;;  %p4024_p8 = scmp.lt.s32.totalorder %s4301_s30, %s4022_s15 }
  0x44   : > { %p4019_p1 = pnand %p4017_p11, %p3973_p3  ;;  %p4025_p2 = scmp.lt.s32.totalorder %s4023_s0, %s4016_s14 }
  0x46   : > { %p4020_p6 = pneg %p4019_p1  ;;  %p4026_p5 = por %p4025_p2, %p4024_p8 }
  0x48   : > { %p4027_p4 = pnand %p4026_p5, %p4020_p6 }
  0x4a   : > { %4030 = shalt.err (!%p4027_p4)
}
  0x4b   : > { %s6114_s20 = smov 128   ;;  %291 = sbr.rel (%p4295_p12) target bundleno = 1613 (0x64d), region = 44 }
  0x4c   : > { %3651 = dma.hbm_to_vmem [thread:$0]  (!%p4249_p0), %s4291_s17, 4096, %s4301_s30, %s267_s18, %s6114_s20, %s6114_s20, %s4121_s7  }
  0x52   : > { %s4335_s22 = sand.u32 1, %s4101_s24   ;;  %p6115_p8 = scmp.ne.s32.totalorder %s6108_s9, 0 }
  0x53   : > { %s4338_s8 = sshll.u32 %s4335_s22, 8  ;;  %s294_s21 = scalar_lea.sflag [#allocation8], %s4335_s22 }
  0x54   : > { %s4342_s16 = scalar_lea.vmem [#allocation7], %s4338_s8 }
  0x55   : > { %4084 = dma.done.wait (%p6115_p8), %s294_s21, 4096  }
  0x56   : > { %4086 = vsyncadd (%p6115_p8), %s294_s21, 4294963200  ;;  %s303_s13 = scalar_lea.sflag [#allocation11], %s4335_s22  ;;  %s4350_s7 = scalar_lea.vmem [#allocation10], %s4338_s8 }
  0x57   : > { %4088 = dma.done.wait (%p6115_p8), %s303_s13, 4096  }
  0x58   : > { %4090 = vsyncadd (%p6115_p8), %s303_s13, 4294963200  ;;  %v396_v0 = vld [vmem:[%s6011_s3] sm:$0xff]  ;;  %v397_v1 = vld [vmem:[%s6011_s3 + $0x8] sm:$0xff]  ;;  %vm408_vm0 = vcmask 523264   ;;  %vm662_vm1 = vcmask 7168   ;;  %s2999_s15 = sld [smem:[#allocation6]] }
  0x59   : > { %v398_v2 = vld [vmem:[%s6011_s3 + $0x10] sm:$0xff]  ;;  %v404_v3 = vpack.c.bf16 %v397_v1, %v396_v0  ;;  %v399_v4 = vld [vmem:[%s6011_s3 + $0x18] sm:$0xff]  ;;  %v348_v6 = vld [vmem:[%s4342_s16] sm:$0xff]  ;;  %s5830_s0 = scalar_lea.vmem [#allocation12], %s4338_s8  ;;  %s3330_s8 = sshll.u32 %s4109_s25, 12 }
  0x5a   : > { %v405_v5 = vpack.c.bf16 %v399_v4, %v398_v2  ;;  %v349_v8 = vld [vmem:[%s4342_s16 + $0x8] sm:$0xff]  ;;  %v400_v10 = vld [vmem:[%s6011_s3 + $0x20] sm:$0xff]  ;;  %v402_v14 = vld [vmem:[%s6011_s3 + $0x30] sm:$0xff]  ;;  %s3145_s9 = sshll.u32 %s5830_s0, 4  ;;  %s5951_s13 = scalar_lea.hbm %s6014_s6, %s3330_s8  ;;  %s5953_s9 = int_to_ptr.vmem [resolvable:$true] %s3145_s9 }
  0x5b   : > { %3619 = vmatprep.subr.msk.bf16.mxu0 %vm408_vm0, %v404_v3  ;;  %v458_v7 = vsel %vm408_vm0, %v404_v3, 0  ;;  %v380_v9 = vpack.c.bf16 %v349_v8, %v348_v6  ;;  %v401_v11 = vld [vmem:[%s6011_s3 + $0x28] sm:$0xff]  ;;  %v403_v15 = vld [vmem:[%s6011_s3 + $0x38] sm:$0xff]  ;;  %v775_v16 = vld [vmem:[%s4350_s7 + $0x80] sm:$0xff]  ;;  %s3130_s25 = scalar_lea.sflag [#allocation9], %s4335_s22  ;;  %p6328_p3 = scmp.ne.s32.totalorder %s6109_s10, 0 }
  0x5c   : > { %3532 = vmatpush3.bf16.xpose.msra.mxu0 %v458_v7  ;;  %v461_v12 = vsel %vm408_vm0, %v405_v5, 0  ;;  %v406_v13 = vpack.c.bf16 %v401_v11, %v400_v10  ;;  %v776_v17 = vld [vmem:[%s4350_s7 + $0x88] sm:$0xff]  ;;  %v759_v19 = vld [vmem:[%s4350_s7] sm:$0xff]  ;;  %v777_v21 = vld [vmem:[%s4350_s7 + $0x90] sm:$0xff]  ;;  %v407_v28 = vpack.c.bf16 %v403_v15, %v402_v14  ;;  %s4126_s17 = smov [#allocation12]  }
  0x5d   : > { %3620 = vmatprep.subr.msk.bf16.mxu0 %vm408_vm0, %v405_v5  ;;  %3539 = vmatprep.mubr.msk.bf16.mxu0 %vm408_vm0, %v380_v9  ;;  %v799_v18 = vpack.c.bf16 %v776_v17, %v775_v16  ;;  %v760_v20 = vld [vmem:[%s4350_s7 + $0x8] sm:$0xff]  ;;  %v778_v23 = vld [vmem:[%s4350_s7 + $0x98] sm:$0xff]  ;;  %v761_v25 = vld [vmem:[%s4350_s7 + $0x10] sm:$0xff]  ;;  %s4035_s19 = sshll.u32 %s4126_s17, 4  ;;  %s4036_s19 = int_to_ptr.vmem [resolvable:$false] %s4035_s19 }
  0x5e   : > { %v791_v22 = vpack.c.bf16 %v760_v20, %v759_v19  ;;  %v800_v24 = vpack.c.bf16 %v778_v23, %v777_v21  ;;  %v762_v26 = vld [vmem:[%s4350_s7 + $0x18] sm:$0xff]  ;;  %v464_v27 = vsel %vm408_vm0, %v406_v13, 0  ;;  %v779_v31 = vld [vmem:[%s4350_s7 + $0xa0] sm:$0xff]  ;;  %v780_v32 = vld [vmem:[%s4350_s7 + $0xa8] sm:$0xff]  ;;  %v467_v37 = vsel %vm408_vm0, %v407_v28, 0  ;;  %s4037_s30 = scalar_lea.vmem %s4036_s19, 8192  ;;  %p4038_p7 = scmp.lt.s32.totalorder %s5953_s9, %s4036_s19 }
  0x5f   : > { %3623 = vmatprep.subr.msk.bf16.mxu1 %vm408_vm0, %v799_v18  ;;  %v792_v30 = vpack.c.bf16 %v762_v26, %v761_v25  ;;  %v801_v34 = vpack.c.bf16 %v780_v32, %v779_v31  ;;  %v763_v35 = vld [vmem:[%s4350_s7 + $0x20] sm:$0xff]  ;;  %v764_v36 = vld [vmem:[%s4350_s7 + $0x28] sm:$0xff]  ;;  %v350_v38 = vld [vmem:[%s4342_s16 + $0x10] sm:$0xff] }
  0x60   : > { %v873_v29 = vsel %vm408_vm0, %v791_v22, 0  ;;  %v793_v39 = vpack.c.bf16 %v764_v36, %v763_v35  ;;  %v351_v40 = vld [vmem:[%s4342_s16 + $0x18] sm:$0xff]  ;;  %v781_v41 = vld [vmem:[%s4350_s7 + $0xb0] sm:$0xff]  ;;  %v352_v43 = vld [vmem:[%s4342_s16 + $0x20] sm:$0xff] }
  0x61   : > { %3352 = vmatpush3.bf16.xpose.msra.mxu1 %v873_v29  ;;  %v876_v33 = vsel %vm408_vm0, %v792_v30, 0  ;;  %v782_v42 = vld [vmem:[%s4350_s7 + $0xb8] sm:$0xff]  ;;  %v353_v44 = vld [vmem:[%s4342_s16 + $0x28] sm:$0xff]  ;;  %v381_v45 = vpack.c.bf16 %v351_v40, %v350_v38  ;;  %v765_v49 = vld [vmem:[%s4350_s7 + $0x30] sm:$0xff] }
  0x62   : > { %3624 = vmatprep.subr.msk.bf16.mxu1 %vm408_vm0, %v800_v24  ;;  %v879_v46 = vsel %vm408_vm0, %v793_v39, 0  ;;  %v802_v47 = vpack.c.bf16 %v782_v42, %v781_v41  ;;  %v382_v48 = vpack.c.bf16 %v353_v44, %v352_v43  ;;  %v766_v50 = vld [vmem:[%s4350_s7 + $0x38] sm:$0xff]  ;;  %v354_v51 = vld [vmem:[%s4342_s16 + $0x30] sm:$0xff]  ;;  %v783_v54 = vld [vmem:[%s4350_s7 + $0xc0] sm:$0xff] }
  0x63   : > { %v794_v52 = vpack.c.bf16 %v766_v50, %v765_v49  ;;  %v355_v53 = vld [vmem:[%s4342_s16 + $0x38] sm:$0xff]  ;;  %v784_v55 = vld [vmem:[%s4350_s7 + $0xc8] sm:$0xff]  ;;  %v356_v56 = vld [vmem:[%s4342_s16 + $0x40] sm:$0xff] }
  0x64   : > { %3534 = vmatpush3.bf16.xpose.msra.mxu0 %v461_v12  ;;  %v357_v57 = vld [vmem:[%s4342_s16 + $0x48] sm:$0xff]  ;;  %v383_v58 = vpack.c.bf16 %v355_v53, %v354_v51  ;;  %v803_v60 = vpack.c.bf16 %v784_v55, %v783_v54  ;;  %v767_v62 = vld [vmem:[%s4350_s7 + $0x40] sm:$0xff]  ;;  %v358_v0 = vld [vmem:[%s4342_s16 + $0x50] sm:$0xff] }
  0x65   : > { %3621 = vmatprep.subr.msk.bf16.mxu0 %vm408_vm0, %v406_v13  ;;  %v882_v59 = vsel %vm408_vm0, %v794_v52, 0  ;;  %v384_v61 = vpack.c.bf16 %v357_v57, %v356_v56  ;;  %v768_v63 = vld [vmem:[%s4350_s7 + $0x48] sm:$0xff]  ;;  %v359_v2 = vld [vmem:[%s4342_s16 + $0x58] sm:$0xff]  ;;  %v785_v3 = vld [vmem:[%s4350_s7 + $0xd0] sm:$0xff] }
  0x66   : > { %v795_v1 = vpack.c.bf16 %v768_v63, %v767_v62  ;;  %v786_v4 = vld [vmem:[%s4350_s7 + $0xd8] sm:$0xff]  ;;  %v360_v5 = vld [vmem:[%s4342_s16 + $0x60] sm:$0xff]  ;;  %v361_v6 = vld [vmem:[%s4342_s16 + $0x68] sm:$0xff]  ;;  %v385_v7 = vpack.c.bf16 %v359_v2, %v358_v0 }
  0x67   : > { %v804_v9 = vpack.c.bf16 %v786_v4, %v785_v3  ;;  %v386_v10 = vpack.c.bf16 %v361_v6, %v360_v5  ;;  %v769_v11 = vld [vmem:[%s4350_s7 + $0x50] sm:$0xff]  ;;  %v770_v12 = vld [vmem:[%s4350_s7 + $0x58] sm:$0xff]  ;;  %v787_v16 = vld [vmem:[%s4350_s7 + $0xe0] sm:$0xff] }
  0x68   : > { %v885_v8 = vsel %vm408_vm0, %v795_v1, 0  ;;  %v362_v13 = vld [vmem:[%s4342_s16 + $0x70] sm:$0xff]  ;;  %v796_v14 = vpack.c.bf16 %v770_v12, %v769_v11  ;;  %v363_v15 = vld [vmem:[%s4342_s16 + $0x78] sm:$0xff]  ;;  %v788_v17 = vld [vmem:[%s4350_s7 + $0xe8] sm:$0xff] }
  0x69   : > { %3354 = vmatpush3.bf16.xpose.msra.mxu1 %v876_v33  ;;  %v365_v19 = vld [vmem:[%s4342_s16 + $0x88] sm:$0xff]  ;;  %v387_v20 = vpack.c.bf16 %v363_v15, %v362_v13  ;;  %v367_v25 = vld [vmem:[%s4342_s16 + $0x98] sm:$0xff]  ;;  %v368_v26 = vld [vmem:[%s4342_s16 + $0xa0] sm:$0xff] }
  0x6a   : > { %3625 = vmatprep.subr.msk.bf16.mxu1 %vm408_vm0, %v801_v34  ;;  %v888_v21 = vsel %vm408_vm0, %v796_v14, 0  ;;  %v371_v31 = vld [vmem:[%s4342_s16 + $0xb8] sm:$0xff]  ;;  %v372_v32 = vld [vmem:[%s4342_s16 + $0xc0] sm:$0xff]  ;;  %v373_v33 = vld [vmem:[%s4342_s16 + $0xc8] sm:$0xff] }
  0x6b   : > { %v392_v35 = vpack.c.bf16 %v373_v33, %v372_v32  ;;  %v374_v36 = vld [vmem:[%s4342_s16 + $0xd0] sm:$0xff]  ;;  %v376_v38 = vld [vmem:[%s4342_s16 + $0xe0] sm:$0xff]  ;;  %v379_v43 = vld [vmem:[%s4342_s16 + $0xf8] sm:$0xff] }
  0x6c   : > { %3536 = vmatpush3.bf16.xpose.msra.mxu0 %v464_v27  ;;  %v369_v27 = vld [vmem:[%s4342_s16 + $0xa8] sm:$0xff]  ;;  %v378_v42 = vld [vmem:[%s4342_s16 + $0xf0] sm:$0xff]  ;;  %v790_v50 = vld [vmem:[%s4350_s7 + $0xf8] sm:$0xff] }
  0x6d   : > { %3622 = vmatprep.subr.msk.bf16.mxu0 %vm408_vm0, %v407_v28  ;;  %v390_v29 = vpack.c.bf16 %v369_v27, %v368_v26  ;;  %v395_v44 = vpack.c.bf16 %v379_v43, %v378_v42  ;;  %v789_v49 = vld [vmem:[%s4350_s7 + $0xf0] sm:$0xff]  ;;  %v774_v53 = vld [vmem:[%s4350_s7 + $0x78] sm:$0xff] }
  0x6e   : > { %v773_v51 = vld [vmem:[%s4350_s7 + $0x70] sm:$0xff] }
  0x6f   : > { %v798_v54 = vpack.c.bf16 %v774_v53, %v773_v51 }
  0x71   : > { %3356 = vmatpush3.bf16.xpose.msra.mxu1 %v879_v46  ;;  %v772_v46 = vld [vmem:[%s4350_s7 + $0x68] sm:$0xff]  ;;  %v894_v55 = vsel %vm408_vm0, %v798_v54, 0 }
  0x72   : > { %3626 = vmatprep.subr.msk.bf16.mxu1 %vm408_vm0, %v802_v47 }
  0x74   : > { %3538 = vmatpush3.bf16.xpose.msra.mxu0 %v467_v37  ;;  %v375_v37 = vld [vmem:[%s4342_s16 + $0xd8] sm:$0xff] }
  0x75   : > { %3399 = vmatprep.subr.bf16.mxu0 %v799_v18  ;;  %v364_v18 = vld [vmem:[%s4342_s16 + $0x80] sm:$0xff]  ;;  %v393_v40 = vpack.c.bf16 %v375_v37, %v374_v36 }
  0x76   : > { %v388_v23 = vpack.c.bf16 %v365_v19, %v364_v18 }
  0x79   : > { %3358 = vmatpush3.bf16.xpose.msra.mxu1 %v882_v59 }
  0x7a   : > { %3627 = vmatprep.subr.msk.bf16.mxu1 %vm408_vm0, %v803_v60 }
  0x7b   : > { %3540 = vmatmul.mubr.msk.bf16.vlgmr.msra.gmra.mrb[0].mxu0 %vm408_vm0, %v381_v45  ;;  %v771_v45 = vld [vmem:[%s4350_s7 + $0x60] sm:$0xff] }
  0x7c   : > { %3543 = vmatprep.mubr.msk.bf16.mxu0 %vm408_vm0, %v382_v48  ;;  %3400 = vmatpush3.bf16.msra.mxu0 %v791_v22  ;;  %v805_v22 = vpack.c.bf16 %v788_v17, %v787_v16 }
  0x7d   : > { %3401 = vmatprep.subr.bf16.mxu0 %v800_v24  ;;  %v366_v24 = vld [vmem:[%s4342_s16 + $0x90] sm:$0xff] }
  0x7e   : > { %v389_v28 = vpack.c.bf16 %v367_v25, %v366_v24 }
  0x80   : > { %3402 = vmatpush3.bf16.msra.mxu0 %v792_v30  ;;  %v370_v30 = vld [vmem:[%s4342_s16 + $0xb0] sm:$0xff] }
  0x81   : > { %3403 = vmatprep.subr.bf16.mxu0 %v801_v34  ;;  %3360 = vmatpush3.bf16.xpose.msra.mxu1 %v885_v8  ;;  %v391_v34 = vpack.c.bf16 %v371_v31, %v370_v30 }
  0x82   : > { %3628 = vmatprep.subr.msk.bf16.mxu1 %vm408_vm0, %v804_v9 }
  0x83   : > { %3544 = vmatmul.mubr.msk.bf16.gmra.mrb[4].mxu0 %vm408_vm0, %v383_v58 }
  0x84   : > { %3547 = vmatprep.mubr.msk.bf16.mxu0 %vm408_vm0, %v384_v61  ;;  %3404 = vmatpush3.bf16.msra.mxu0 %v793_v39  ;;  %v377_v39 = vld [vmem:[%s4342_s16 + $0xe8] sm:$0xff] }
  0x85   : > { %3405 = vmatprep.subr.bf16.mxu0 %v802_v47  ;;  %v394_v41 = vpack.c.bf16 %v377_v39, %v376_v38  ;;  %v797_v47 = vpack.c.bf16 %v772_v46, %v771_v45 }
  0x87   : > { %v891_v48 = vsel %vm408_vm0, %v797_v47, 0 }
  0x88   : > { %3406 = vmatpush3.bf16.msra.mxu0 %v794_v52  ;;  %v806_v52 = vpack.c.bf16 %v790_v50, %v789_v49 }
  0x89   : > { %3407 = vmatprep.subr.bf16.mxu0 %v803_v60  ;;  %3362 = vmatpush3.bf16.xpose.msra.mxu1 %v888_v21 }
  0x8a   : > { %3629 = vmatprep.subr.msk.bf16.mxu1 %vm408_vm0, %v805_v22 }
  0x8b   : > { %3548 = vmatmul.mubr.msk.bf16.gmra.mrb[8].mxu0 %vm408_vm0, %v385_v7 }
  0x8c   : > { %3551 = vmatprep.mubr.msk.bf16.mxu0 %vm408_vm0, %v386_v10  ;;  %3408 = vmatpush3.bf16.msra.mxu0 %v795_v1 }
  0x8d   : > { %3409 = vmatprep.subr.bf16.mxu0 %v804_v9 }
  0x90   : > { %3410 = vmatpush3.bf16.msra.mxu0 %v796_v14 }
  0x91   : > { %3411 = vmatprep.subr.bf16.mxu0 %v805_v22  ;;  %3364 = vmatpush3.bf16.xpose.msra.mxu1 %v891_v48 }
  0x92   : > { %3630 = vmatprep.subr.msk.bf16.mxu1 %vm408_vm0, %v806_v52 }
  0x93   : > { %3552 = vmatmul.mubr.msk.bf16.gmra.mrb[12].mxu0 %vm408_vm0, %v387_v20 }
  0x94   : > { %3555 = vmatprep.mubr.msk.bf16.mxu0 %vm408_vm0, %v388_v23  ;;  %3412 = vmatpush3.bf16.msra.mxu0 %v797_v47 }
  0x95   : > { %3413 = vmatprep.subr.bf16.mxu0 %v806_v52 }
  0x98   : > { %3414 = vmatpush3.bf16.msra.mxu0 %v798_v54 }
  0x99   : > { %3366 = vmatpush3.bf16.xpose.msra.mxu1 %v894_v55 }
  0x9b   : > { %3556 = vmatmul.mubr.msk.bf16.gmra.mrb[16].mxu0 %vm408_vm0, %v389_v28 }
  0x9c   : > { %3559 = vmatprep.mubr.msk.bf16.mxu0 %vm408_vm0, %v390_v29 }
  0xa3   : > { %3560 = vmatmul.mubr.msk.bf16.gmra.mrb[20].mxu0 %vm408_vm0, %v391_v34 }
  0xa4   : > { %3563 = vmatprep.mubr.msk.bf16.mxu0 %vm408_vm0, %v392_v35 }
  0xab   : > { %3564 = vmatmul.mubr.msk.bf16.gmra.mrb[24].mxu0 %vm408_vm0, %v393_v40 }
  0xac   : > { %3567 = vmatprep.mubr.msk.bf16.mxu0 %vm408_vm0, %v394_v41 }
  0xb3   : > { %3568 = vmatmul.mubr.msk.bf16.gmra.mrb[28].mxu0 %vm408_vm0, %v395_v44 }
 0x14e   : > { %v3541_v56 = vpop.f32.mrb[0].mxu0 }
 0x14f   : > { %v503_v57 = vpop.f32.mrb[1].mxu0 }
 0x150   : > { %v3542_v58 = vpop.f32.mrb[2].mxu0 }
 0x151   : > { %v631_v59 = vpack.c.bf16 %v3542_v58, %v3541_v56  ;;  %v506_v60 = vpop.f32.mrb[3].mxu0  ;;  %v4123_v56 = vmov -inf  }
 0x152   : > { %v630_v61 = vpack.c.bf16 %v506_v60, %v503_v57  ;;  %663 = vst.msk [vmem:[#allocation3] sm:$0xff] %vm662_vm1, %v4123_v56  ;;  %664 = vst.msk [vmem:[#allocation3 + $0x8] sm:$0xff] %vm662_vm1, %v4123_v56 }
 0x153   : > { %647 = vst.msk [vmem:[#allocation2 + $0x8] sm:$0xff] %vm408_vm0, %v631_v59 }
 0x154   : > { %646 = vst.msk [vmem:[#allocation2] sm:$0xff] %vm408_vm0, %v630_v61 }
 0x155   : > { %665 = vst.msk [vmem:[#allocation3 + $0x10] sm:$0xff] %vm662_vm1, %v4123_v56  ;;  %666 = vst.msk [vmem:[#allocation3 + $0x18] sm:$0xff] %vm662_vm1, %v4123_v56 }
 0x156   : > { %v3545_v62 = vpop.f32.mrb[4].mxu0  ;;  %667 = vst.msk [vmem:[#allocation3 + $0x20] sm:$0xff] %vm662_vm1, %v4123_v56  ;;  %668 = vst.msk [vmem:[#allocation3 + $0x28] sm:$0xff] %vm662_vm1, %v4123_v56 }
 0x157   : > { %v519_v63 = vpop.f32.mrb[5].mxu0  ;;  %669 = vst.msk [vmem:[#allocation3 + $0x30] sm:$0xff] %vm662_vm1, %v4123_v56  ;;  %670 = vst.msk [vmem:[#allocation3 + $0x38] sm:$0xff] %vm662_vm1, %v4123_v56 }
 0x158   : > { %v3546_v0 = vpop.f32.mrb[6].mxu0  ;;  %671 = vst.msk [vmem:[#allocation3 + $0x40] sm:$0xff] %vm662_vm1, %v4123_v56  ;;  %672 = vst.msk [vmem:[#allocation3 + $0x48] sm:$0xff] %vm662_vm1, %v4123_v56 }
 0x159   : > { %v633_v1 = vpack.c.bf16 %v3546_v0, %v3545_v62  ;;  %v522_v2 = vpop.f32.mrb[7].mxu0  ;;  %673 = vst.msk [vmem:[#allocation3 + $0x50] sm:$0xff] %vm662_vm1, %v4123_v56  ;;  %674 = vst.msk [vmem:[#allocation3 + $0x58] sm:$0xff] %vm662_vm1, %v4123_v56 }
 0x15a   : > { %v632_v3 = vpack.c.bf16 %v522_v2, %v519_v63  ;;  %v808_v5 = vld [vmem:[#allocation2 + $0x8] sm:$0xff]  ;;  %675 = vst.msk [vmem:[#allocation3 + $0x60] sm:$0xff] %vm662_vm1, %v4123_v56  ;;  %676 = vst.msk [vmem:[#allocation3 + $0x68] sm:$0xff] %vm662_vm1, %v4123_v56 }
 0x15b   : > { %v807_v4 = vld [vmem:[#allocation2] sm:$0xff]  ;;  %649 = vst.msk [vmem:[#allocation2 + $0x18] sm:$0xff] %vm408_vm0, %v633_v1 }
 0x15c   : > { %3367 = vmatprep.mubr.msk.bf16.mxu1 %vm408_vm0, %v807_v4  ;;  %648 = vst.msk [vmem:[#allocation2 + $0x10] sm:$0xff] %vm408_vm0, %v632_v3 }
 0x15d   : > { %3368 = vmatmul.mubr.msk.bf16.vlgmr.msra.gmra.mrb[0].mxu1 %vm408_vm0, %v807_v4  ;;  %677 = vst.msk [vmem:[#allocation3 + $0x70] sm:$0xff] %vm662_vm1, %v4123_v56  ;;  %678 = vst.msk [vmem:[#allocation3 + $0x78] sm:$0xff] %vm662_vm1, %v4123_v56 }
 0x15e   : > { %3369 = vmatprep.mubr.msk.bf16.mxu1 %vm408_vm0, %v808_v5  ;;  %v3549_v6 = vpop.f32.mrb[8].mxu0  ;;  %679 = vst.msk [vmem:[#allocation3 + $0x80] sm:$0xff] %vm662_vm1, %v4123_v56  ;;  %680 = vst.msk [vmem:[#allocation3 + $0x88] sm:$0xff] %vm662_vm1, %v4123_v56 }
 0x15f   : > { %v535_v7 = vpop.f32.mrb[9].mxu0  ;;  %681 = vst.msk [vmem:[#allocation3 + $0x90] sm:$0xff] %vm662_vm1, %v4123_v56  ;;  %682 = vst.msk [vmem:[#allocation3 + $0x98] sm:$0xff] %vm662_vm1, %v4123_v56 }
 0x160   : > { %v3550_v8 = vpop.f32.mrb[10].mxu0  ;;  %683 = vst.msk [vmem:[#allocation3 + $0xa0] sm:$0xff] %vm662_vm1, %v4123_v56  ;;  %684 = vst.msk [vmem:[#allocation3 + $0xa8] sm:$0xff] %vm662_vm1, %v4123_v56 }
 0x161   : > { %v635_v9 = vpack.c.bf16 %v3550_v8, %v3549_v6  ;;  %v538_v10 = vpop.f32.mrb[11].mxu0  ;;  %685 = vst.msk [vmem:[#allocation3 + $0xb0] sm:$0xff] %vm662_vm1, %v4123_v56  ;;  %686 = vst.msk [vmem:[#allocation3 + $0xb8] sm:$0xff] %vm662_vm1, %v4123_v56 }
 0x162   : > { %v634_v11 = vpack.c.bf16 %v538_v10, %v535_v7  ;;  %v810_v19 = vld [vmem:[#allocation2 + $0x18] sm:$0xff]  ;;  %687 = vst.msk [vmem:[#allocation3 + $0xc0] sm:$0xff] %vm662_vm1, %v4123_v56  ;;  %688 = vst.msk [vmem:[#allocation3 + $0xc8] sm:$0xff] %vm662_vm1, %v4123_v56  ;;  %v4124_v10 = vmov 0  }
 0x163   : > { %v809_v12 = vld [vmem:[#allocation2 + $0x10] sm:$0xff]  ;;  %651 = vst.msk [vmem:[#allocation2 + $0x28] sm:$0xff] %vm408_vm0, %v635_v9  ;;  %3713 = vset.pattern.permute.xlu0 %v4124_v10  ;;  %3714 = vset.pattern.permute.xlu1 %v4124_v10 }
 0x164   : > { %650 = vst.msk [vmem:[#allocation2 + $0x20] sm:$0xff] %vm408_vm0, %v634_v11 }
 0x165   : > { %3370 = vmatmul.mubr.msk.bf16.gmra.mrb[4].mxu1 %vm408_vm0, %v808_v5  ;;  %689 = vst.msk [vmem:[#allocation3 + $0xd0] sm:$0xff] %vm662_vm1, %v4123_v56  ;;  %690 = vst.msk [vmem:[#allocation3 + $0xd8] sm:$0xff] %vm662_vm1, %v4123_v56 }
 0x166   : > { %3371 = vmatprep.mubr.msk.bf16.mxu1 %vm408_vm0, %v809_v12  ;;  %v3553_v13 = vpop.f32.mrb[12].mxu0  ;;  %691 = vst.msk [vmem:[#allocation3 + $0xe0] sm:$0xff] %vm662_vm1, %v4123_v56  ;;  %692 = vst.msk [vmem:[#allocation3 + $0xe8] sm:$0xff] %vm662_vm1, %v4123_v56 }
 0x167   : > { %v551_v14 = vpop.f32.mrb[13].mxu0  ;;  %693 = vst.msk [vmem:[#allocation3 + $0xf0] sm:$0xff] %vm662_vm1, %v4123_v56  ;;  %694 = vst.msk [vmem:[#allocation3 + $0xf8] sm:$0xff] %vm662_vm1, %v4123_v56 }
 0x168   : > { %v3554_v15 = vpop.f32.mrb[14].mxu0 }
 0x169   : > { %v637_v16 = vpack.c.bf16 %v3554_v15, %v3553_v13  ;;  %v554_v17 = vpop.f32.mrb[15].mxu0 }
 0x16a   : > { %v636_v18 = vpack.c.bf16 %v554_v17, %v551_v14  ;;  %v812_v33 = vld [vmem:[#allocation2 + $0x28] sm:$0xff] }
 0x16b   : > { %653 = vst.msk [vmem:[#allocation2 + $0x38] sm:$0xff] %vm408_vm0, %v637_v16  ;;  %v811_v26 = vld [vmem:[#allocation2 + $0x20] sm:$0xff] }
 0x16c   : > { %652 = vst.msk [vmem:[#allocation2 + $0x30] sm:$0xff] %vm408_vm0, %v636_v18  ;;  %v4125_v18 = vmov 0.0  }
 0x16d   : > { %3372 = vmatmul.mubr.msk.bf16.gmra.mrb[8].mxu1 %vm408_vm0, %v809_v12  ;;  %735 = vst.msk [vmem:[#allocation5 + $0x40] sm:$0xff] %vm408_vm0, %v4125_v18  ;;  %727 = vst.msk [vmem:[#allocation5] sm:$0xff] %vm408_vm0, %v4125_v18 }
 0x16e   : > { %3373 = vmatprep.mubr.msk.bf16.mxu1 %vm408_vm0, %v810_v19  ;;  %v3557_v20 = vpop.f32.mrb[16].mxu0  ;;  %695 = vst.msk [vmem:[#allocation4] sm:$0xff] %vm662_vm1, %v4125_v18  ;;  %696 = vst.msk [vmem:[#allocation4 + $0x8] sm:$0xff] %vm662_vm1, %v4125_v18 }
 0x16f   : > { %v567_v21 = vpop.f32.mrb[17].mxu0  ;;  %697 = vst.msk [vmem:[#allocation4 + $0x10] sm:$0xff] %vm662_vm1, %v4125_v18  ;;  %698 = vst.msk [vmem:[#allocation4 + $0x18] sm:$0xff] %vm662_vm1, %v4125_v18 }
 0x170   : > { %v3558_v22 = vpop.f32.mrb[18].mxu0  ;;  %699 = vst.msk [vmem:[#allocation4 + $0x20] sm:$0xff] %vm662_vm1, %v4125_v18  ;;  %700 = vst.msk [vmem:[#allocation4 + $0x28] sm:$0xff] %vm662_vm1, %v4125_v18 }
 0x171   : > { %v639_v23 = vpack.c.bf16 %v3558_v22, %v3557_v20  ;;  %v570_v24 = vpop.f32.mrb[19].mxu0  ;;  %701 = vst.msk [vmem:[#allocation4 + $0x30] sm:$0xff] %vm662_vm1, %v4125_v18  ;;  %702 = vst.msk [vmem:[#allocation4 + $0x38] sm:$0xff] %vm662_vm1, %v4125_v18 }
 0x172   : > { %v638_v25 = vpack.c.bf16 %v570_v24, %v567_v21  ;;  %v814_v47 = vld [vmem:[#allocation2 + $0x38] sm:$0xff]  ;;  %703 = vst.msk [vmem:[#allocation4 + $0x40] sm:$0xff] %vm662_vm1, %v4125_v18  ;;  %704 = vst.msk [vmem:[#allocation4 + $0x48] sm:$0xff] %vm662_vm1, %v4125_v18 }
 0x173   : > { %655 = vst.msk [vmem:[#allocation2 + $0x48] sm:$0xff] %vm408_vm0, %v639_v23  ;;  %v813_v40 = vld [vmem:[#allocation2 + $0x30] sm:$0xff]  ;;  %728 = vst.msk [vmem:[#allocation5 + $0x8] sm:$0xff] %vm408_vm0, %v4125_v18 }
 0x174   : > { %654 = vst.msk [vmem:[#allocation2 + $0x40] sm:$0xff] %vm408_vm0, %v638_v25  ;;  %729 = vst.msk [vmem:[#allocation5 + $0x10] sm:$0xff] %vm408_vm0, %v4125_v18 }
 0x175   : > { %3374 = vmatmul.mubr.msk.bf16.gmra.mrb[12].mxu1 %vm408_vm0, %v810_v19  ;;  %705 = vst.msk [vmem:[#allocation4 + $0x50] sm:$0xff] %vm662_vm1, %v4125_v18  ;;  %706 = vst.msk [vmem:[#allocation4 + $0x58] sm:$0xff] %vm662_vm1, %v4125_v18 }
 0x176   : > { %3375 = vmatprep.mubr.msk.bf16.mxu1 %vm408_vm0, %v811_v26  ;;  %v3561_v27 = vpop.f32.mrb[20].mxu0  ;;  %707 = vst.msk [vmem:[#allocation4 + $0x60] sm:$0xff] %vm662_vm1, %v4125_v18  ;;  %708 = vst.msk [vmem:[#allocation4 + $0x68] sm:$0xff] %vm662_vm1, %v4125_v18 }
 0x177   : > { %v583_v28 = vpop.f32.mrb[21].mxu0  ;;  %709 = vst.msk [vmem:[#allocation4 + $0x70] sm:$0xff] %vm662_vm1, %v4125_v18  ;;  %710 = vst.msk [vmem:[#allocation4 + $0x78] sm:$0xff] %vm662_vm1, %v4125_v18 }
 0x178   : > { %v3562_v29 = vpop.f32.mrb[22].mxu0  ;;  %711 = vst.msk [vmem:[#allocation4 + $0x80] sm:$0xff] %vm662_vm1, %v4125_v18  ;;  %712 = vst.msk [vmem:[#allocation4 + $0x88] sm:$0xff] %vm662_vm1, %v4125_v18 }
 0x179   : > { %v641_v30 = vpack.c.bf16 %v3562_v29, %v3561_v27  ;;  %v586_v31 = vpop.f32.mrb[23].mxu0  ;;  %713 = vst.msk [vmem:[#allocation4 + $0x90] sm:$0xff] %vm662_vm1, %v4125_v18  ;;  %714 = vst.msk [vmem:[#allocation4 + $0x98] sm:$0xff] %vm662_vm1, %v4125_v18 }
 0x17a   : > { %v640_v32 = vpack.c.bf16 %v586_v31, %v583_v28  ;;  %v816_v49 = vld [vmem:[#allocation2 + $0x48] sm:$0xff]  ;;  %715 = vst.msk [vmem:[#allocation4 + $0xa0] sm:$0xff] %vm662_vm1, %v4125_v18  ;;  %716 = vst.msk [vmem:[#allocation4 + $0xa8] sm:$0xff] %vm662_vm1, %v4125_v18 }
 0x17b   : > { %657 = vst.msk [vmem:[#allocation2 + $0x58] sm:$0xff] %vm408_vm0, %v641_v30  ;;  %v815_v48 = vld [vmem:[#allocation2 + $0x40] sm:$0xff]  ;;  %730 = vst.msk [vmem:[#allocation5 + $0x18] sm:$0xff] %vm408_vm0, %v4125_v18 }
 0x17c   : > { %656 = vst.msk [vmem:[#allocation2 + $0x50] sm:$0xff] %vm408_vm0, %v640_v32  ;;  %731 = vst.msk [vmem:[#allocation5 + $0x20] sm:$0xff] %vm408_vm0, %v4125_v18 }
 0x17d   : > { %3376 = vmatmul.mubr.msk.bf16.gmra.mrb[16].mxu1 %vm408_vm0, %v811_v26  ;;  %717 = vst.msk [vmem:[#allocation4 + $0xb0] sm:$0xff] %vm662_vm1, %v4125_v18  ;;  %718 = vst.msk [vmem:[#allocation4 + $0xb8] sm:$0xff] %vm662_vm1, %v4125_v18 }
 0x17e   : > { %3377 = vmatprep.mubr.msk.bf16.mxu1 %vm408_vm0, %v812_v33  ;;  %v3565_v34 = vpop.f32.mrb[24].mxu0  ;;  %719 = vst.msk [vmem:[#allocation4 + $0xc0] sm:$0xff] %vm662_vm1, %v4125_v18  ;;  %720 = vst.msk [vmem:[#allocation4 + $0xc8] sm:$0xff] %vm662_vm1, %v4125_v18 }
 0x17f   : > { %v599_v35 = vpop.f32.mrb[25].mxu0  ;;  %721 = vst.msk [vmem:[#allocation4 + $0xd0] sm:$0xff] %vm662_vm1, %v4125_v18  ;;  %722 = vst.msk [vmem:[#allocation4 + $0xd8] sm:$0xff] %vm662_vm1, %v4125_v18 }
 0x180   : > { %v3566_v36 = vpop.f32.mrb[26].mxu0  ;;  %723 = vst.msk [vmem:[#allocation4 + $0xe0] sm:$0xff] %vm662_vm1, %v4125_v18  ;;  %724 = vst.msk [vmem:[#allocation4 + $0xe8] sm:$0xff] %vm662_vm1, %v4125_v18 }
 0x181   : > { %v643_v37 = vpack.c.bf16 %v3566_v36, %v3565_v34  ;;  %v602_v38 = vpop.f32.mrb[27].mxu0  ;;  %725 = vst.msk [vmem:[#allocation4 + $0xf0] sm:$0xff] %vm662_vm1, %v4125_v18  ;;  %726 = vst.msk [vmem:[#allocation4 + $0xf8] sm:$0xff] %vm662_vm1, %v4125_v18 }
 0x182   : > { %v642_v39 = vpack.c.bf16 %v602_v38, %v599_v35  ;;  %v818_v51 = vld [vmem:[#allocation2 + $0x58] sm:$0xff]  ;;  %732 = vst.msk [vmem:[#allocation5 + $0x28] sm:$0xff] %vm408_vm0, %v4125_v18  ;;  %733 = vst.msk [vmem:[#allocation5 + $0x30] sm:$0xff] %vm408_vm0, %v4125_v18 }
 0x183   : > { %659 = vst.msk [vmem:[#allocation2 + $0x68] sm:$0xff] %vm408_vm0, %v643_v37  ;;  %v817_v50 = vld [vmem:[#allocation2 + $0x50] sm:$0xff]  ;;  %734 = vst.msk [vmem:[#allocation5 + $0x38] sm:$0xff] %vm408_vm0, %v4125_v18 }
 0x184   : > { %658 = vst.msk [vmem:[#allocation2 + $0x60] sm:$0xff] %vm408_vm0, %v642_v39  ;;  %736 = vst.msk [vmem:[#allocation5 + $0x48] sm:$0xff] %vm408_vm0, %v4125_v18 }
 0x185   : > { %3378 = vmatmul.mubr.msk.bf16.gmra.mrb[20].mxu1 %vm408_vm0, %v812_v33  ;;  %737 = vst.msk [vmem:[#allocation5 + $0x50] sm:$0xff] %vm408_vm0, %v4125_v18  ;;  %738 = vst.msk [vmem:[#allocation5 + $0x58] sm:$0xff] %vm408_vm0, %v4125_v18 }
 0x186   : > { %3379 = vmatprep.mubr.msk.bf16.mxu1 %vm408_vm0, %v813_v40  ;;  %v3569_v41 = vpop.f32.mrb[28].mxu0  ;;  %739 = vst.msk [vmem:[#allocation5 + $0x60] sm:$0xff] %vm408_vm0, %v4125_v18  ;;  %740 = vst.msk [vmem:[#allocation5 + $0x68] sm:$0xff] %vm408_vm0, %v4125_v18 }
 0x187   : > { %v615_v42 = vpop.f32.mrb[29].mxu0  ;;  %741 = vst.msk [vmem:[#allocation5 + $0x70] sm:$0xff] %vm408_vm0, %v4125_v18  ;;  %742 = vst.msk [vmem:[#allocation5 + $0x78] sm:$0xff] %vm408_vm0, %v4125_v18 }
 0x188   : > { %v3570_v43 = vpop.f32.mrb[30].mxu0  ;;  %743 = vst.msk [vmem:[#allocation5 + $0x80] sm:$0xff] %vm408_vm0, %v4125_v18  ;;  %744 = vst.msk [vmem:[#allocation5 + $0x88] sm:$0xff] %vm408_vm0, %v4125_v18 }
 0x189   : > { %v645_v44 = vpack.c.bf16 %v3570_v43, %v3569_v41  ;;  %v618_v45 = vpop.f32.mrb[31].mxu0  ;;  %745 = vst.msk [vmem:[#allocation5 + $0x90] sm:$0xff] %vm408_vm0, %v4125_v18  ;;  %746 = vst.msk [vmem:[#allocation5 + $0x98] sm:$0xff] %vm408_vm0, %v4125_v18 }
 0x18a   : > { %v644_v46 = vpack.c.bf16 %v618_v45, %v615_v42  ;;  %v820_v53 = vld [vmem:[#allocation2 + $0x68] sm:$0xff]  ;;  %747 = vst.msk [vmem:[#allocation5 + $0xa0] sm:$0xff] %vm408_vm0, %v4125_v18  ;;  %748 = vst.msk [vmem:[#allocation5 + $0xa8] sm:$0xff] %vm408_vm0, %v4125_v18 }
 0x18b   : > { %661 = vst.msk [vmem:[#allocation2 + $0x78] sm:$0xff] %vm408_vm0, %v645_v44  ;;  %v819_v52 = vld [vmem:[#allocation2 + $0x60] sm:$0xff]  ;;  %749 = vst.msk [vmem:[#allocation5 + $0xb0] sm:$0xff] %vm408_vm0, %v4125_v18 }
 0x18c   : > { %660 = vst.msk [vmem:[#allocation2 + $0x70] sm:$0xff] %vm408_vm0, %v644_v46  ;;  %750 = vst.msk [vmem:[#allocation5 + $0xb8] sm:$0xff] %vm408_vm0, %v4125_v18 }
 0x18d   : > { %3380 = vmatmul.mubr.msk.bf16.gmra.mrb[24].mxu1 %vm408_vm0, %v813_v40  ;;  %751 = vst.msk [vmem:[#allocation5 + $0xc0] sm:$0xff] %vm408_vm0, %v4125_v18  ;;  %752 = vst.msk [vmem:[#allocation5 + $0xc8] sm:$0xff] %vm408_vm0, %v4125_v18 }
 0x18e   : > { %3381 = vmatprep.mubr.msk.bf16.mxu1 %vm408_vm0, %v814_v47  ;;  %753 = vst.msk [vmem:[#allocation5 + $0xd0] sm:$0xff] %vm408_vm0, %v4125_v18  ;;  %754 = vst.msk [vmem:[#allocation5 + $0xd8] sm:$0xff] %vm408_vm0, %v4125_v18 }
 0x18f   : > { %755 = vst.msk [vmem:[#allocation5 + $0xe0] sm:$0xff] %vm408_vm0, %v4125_v18  ;;  %756 = vst.msk [vmem:[#allocation5 + $0xe8] sm:$0xff] %vm408_vm0, %v4125_v18 }
 0x190   : > { %757 = vst.msk [vmem:[#allocation5 + $0xf0] sm:$0xff] %vm408_vm0, %v4125_v18  ;;  %758 = vst.msk [vmem:[#allocation5 + $0xf8] sm:$0xff] %vm408_vm0, %v4125_v18 }
 0x192   : > { %v822_v55 = vld [vmem:[#allocation2 + $0x78] sm:$0xff] }
 0x193   : > { %v821_v54 = vld [vmem:[#allocation2 + $0x70] sm:$0xff] }
 0x195   : > { %3382 = vmatmul.mubr.msk.bf16.gmra.mrb[28].mxu1 %vm408_vm0, %v814_v47 }
 0x196   : > { %3383 = vmatprep.mubr.msk.bf16.mxu1 %vm408_vm0, %v815_v48 }
 0x19d   : > { %3384 = vmatmul.mubr.msk.bf16.gmra.mrb[32].mxu1 %vm408_vm0, %v815_v48 }
 0x19e   : > { %3385 = vmatprep.mubr.msk.bf16.mxu1 %vm408_vm0, %v816_v49 }
 0x1a5   : > { %3386 = vmatmul.mubr.msk.bf16.gmra.mrb[36].mxu1 %vm408_vm0, %v816_v49 }
 0x1a6   : > { %3387 = vmatprep.mubr.msk.bf16.mxu1 %vm408_vm0, %v817_v50 }
 0x1ad   : > { %3388 = vmatmul.mubr.msk.bf16.gmra.mrb[40].mxu1 %vm408_vm0, %v817_v50 }
 0x1ae   : > { %3389 = vmatprep.mubr.msk.bf16.mxu1 %vm408_vm0, %v818_v51 }
 0x1b5   : > { %3390 = vmatmul.mubr.msk.bf16.gmra.mrb[44].mxu1 %vm408_vm0, %v818_v51 }
 0x1b6   : > { %3391 = vmatprep.mubr.msk.bf16.mxu1 %vm408_vm0, %v819_v52 }
 0x1bd   : > { %3392 = vmatmul.mubr.msk.bf16.gmra.mrb[48].mxu1 %vm408_vm0, %v819_v52 }
 0x1be   : > { %3393 = vmatprep.mubr.msk.bf16.mxu1 %vm408_vm0, %v820_v53 }
 0x1c5   : > { %3394 = vmatmul.mubr.msk.bf16.gmra.mrb[52].mxu1 %vm408_vm0, %v820_v53 }
 0x1c6   : > { %3395 = vmatprep.mubr.msk.bf16.mxu1 %vm408_vm0, %v821_v54 }
 0x1cd   : > { %3396 = vmatmul.mubr.msk.bf16.gmra.mrb[56].mxu1 %vm408_vm0, %v821_v54 }
 0x1ce   : > { %3397 = vmatprep.mubr.msk.bf16.mxu1 %vm408_vm0, %v822_v55 }
 0x1d5   : > { %3398 = vmatmul.mubr.msk.bf16.gmra.mrb[60].mxu1 %vm408_vm0, %v822_v55 }
 0x230   : > { %v4564_v57 = vpop.f32.mrb[0].mxu1 }
 0x231   : > { %v4566_v58 = vpop.f32.mrb[1].mxu1 }
 0x232   : > { %v4568_v59 = vpop.f32.mrb[2].mxu1  ;;  %v1145_v60 = vmax.f32 %v4564_v57, %v4566_v58 }
 0x233   : > { %v4572_v61 = vpop.f32.mrb[3].mxu1 }
 0x234   : > { %1146 = vmax.xlane.f32.xlu0 %v1145_v60  ;;  %v1148_v62 = vmax.f32 %v4568_v59, %v4572_v61 }
 0x238   : > { %1149 = vmax.xlane.f32.xlu0 %v1148_v62  ;;  %v4576_v63 = vpop.f32.mrb[4].mxu1 }
 0x239   : > { %v4578_v0 = vpop.f32.mrb[5].mxu1 }
 0x23a   : > { %v4580_v1 = vpop.f32.mrb[6].mxu1  ;;  %v1151_v2 = vmax.f32 %v4576_v63, %v4578_v0 }
 0x23b   : > { %v4584_v3 = vpop.f32.mrb[7].mxu1 }
 0x23c   : > { %1152 = vmax.xlane.f32.xlu1 %v1151_v2  ;;  %v1154_v4 = vmax.f32 %v4580_v1, %v4584_v3 }
 0x240   : > { %1155 = vmax.xlane.f32.xlu1 %v1154_v4  ;;  %v4588_v5 = vpop.f32.mrb[8].mxu1 }
 0x241   : > { %v4590_v6 = vpop.f32.mrb[9].mxu1 }
 0x242   : > { %v4592_v7 = vpop.f32.mrb[10].mxu1  ;;  %v1157_v8 = vmax.f32 %v4588_v5, %v4590_v6 }
 0x243   : > { %v4596_v9 = vpop.f32.mrb[11].mxu1 }
 0x244   : > { %1158 = vmax.xlane.f32.xlu0 %v1157_v8  ;;  %v1160_v11 = vmax.f32 %v4592_v7, %v4596_v9 }
 0x246   : > { %1161 = vmax.xlane.f32.xlu1 %v1160_v11 }
 0x248   : > { %v4600_v12 = vpop.f32.mrb[12].mxu1 }
 0x249   : > { %v4602_v13 = vpop.f32.mrb[13].mxu1 }
 0x24a   : > { %v4604_v14 = vpop.f32.mrb[14].mxu1  ;;  %v1163_v15 = vmax.f32 %v4600_v12, %v4602_v13 }
 0x24b   : > { %v4608_v16 = vpop.f32.mrb[15].mxu1 }
 0x24c   : > { %1164 = vmax.xlane.f32.xlu0 %v1163_v15  ;;  %v1166_v17 = vmax.f32 %v4604_v14, %v4608_v16 }
 0x24e   : > { %1167 = vmax.xlane.f32.xlu1 %v1166_v17 }
 0x250   : > { %v4743_v19 = vpop.f32.mrb[16].mxu1 }
 0x251   : > { %v4745_v20 = vpop.f32.mrb[17].mxu1 }
 0x252   : > { %v4747_v21 = vpop.f32.mrb[18].mxu1  ;;  %v1169_v22 = vmax.f32 %v4743_v19, %v4745_v20 }
 0x253   : > { %v4751_v23 = vpop.f32.mrb[19].mxu1 }
 0x254   : > { %1170 = vmax.xlane.f32.xlu0 %v1169_v22  ;;  %v1172_v24 = vmax.f32 %v4747_v21, %v4751_v23 }
 0x256   : > { %1173 = vmax.xlane.f32.xlu1 %v1172_v24 }
 0x258   : > { %v4755_v25 = vpop.f32.mrb[20].mxu1 }
 0x259   : > { %v4757_v26 = vpop.f32.mrb[21].mxu1 }
 0x25a   : > { %v4759_v27 = vpop.f32.mrb[22].mxu1  ;;  %v1175_v28 = vmax.f32 %v4755_v25, %v4757_v26 }
 0x25b   : > { %v4763_v29 = vpop.f32.mrb[23].mxu1 }
 0x25c   : > { %1176 = vmax.xlane.f32.xlu0 %v1175_v28  ;;  %v1178_v30 = vmax.f32 %v4759_v27, %v4763_v29 }
 0x25e   : > { %1179 = vmax.xlane.f32.xlu1 %v1178_v30 }
 0x260   : > { %v4767_v31 = vpop.f32.mrb[24].mxu1 }
 0x261   : > { %6116 = vst [vmem:[#allocation16_spill] sm:$0xff] %v4767_v31  ;;  %v4769_v32 = vpop.f32.mrb[25].mxu1 }
 0x262   : > { %6117 = vst [vmem:[#allocation17_spill] sm:$0xff] %v4769_v32  ;;  %v4771_v33 = vpop.f32.mrb[26].mxu1  ;;  %v1181_v34 = vmax.f32 %v4767_v31, %v4769_v32  ;;  %v5064_v32 = vld [vmem:[#allocation3 + $0x90] sm:$0xff] }
 0x263   : > { %6118 = vst [vmem:[#allocation18_spill] sm:$0xff] %v4771_v33  ;;  %v4775_v35 = vpop.f32.mrb[27].mxu1  ;;  %6169 = vst [vmem:[#allocation68_spill] sm:$0xff] %v5064_v32 }
 0x264   : > { %6119 = vst [vmem:[#allocation19_spill] sm:$0xff] %v4775_v35  ;;  %1182 = vmax.xlane.f32.xlu0 %v1181_v34  ;;  %v1184_v36 = vmax.f32 %v4771_v33, %v4775_v35  ;;  %v5066_v33 = vld [vmem:[#allocation3 + $0x98] sm:$0xff] }
 0x265   : > { %6170 = vst [vmem:[#allocation69_spill] sm:$0xff] %v5066_v33 }
 0x266   : > { %1185 = vmax.xlane.f32.xlu1 %v1184_v36 }
 0x268   : > { %v4779_v37 = vpop.f32.mrb[28].mxu1 }
 0x269   : > { %6120 = vst [vmem:[#allocation20_spill] sm:$0xff] %v4779_v37  ;;  %v4781_v38 = vpop.f32.mrb[29].mxu1 }
 0x26a   : > { %6121 = vst [vmem:[#allocation21_spill] sm:$0xff] %v4781_v38  ;;  %v4783_v39 = vpop.f32.mrb[30].mxu1  ;;  %v1187_v40 = vmax.f32 %v4779_v37, %v4781_v38  ;;  %v5043_v38 = vld [vmem:[#allocation3 + $0x80] sm:$0xff]  ;;  %v5045_v37 = vld [vmem:[#allocation3 + $0x88] sm:$0xff] }
 0x26b   : > { %6122 = vst [vmem:[#allocation22_spill] sm:$0xff] %v4783_v39  ;;  %v4787_v41 = vpop.f32.mrb[31].mxu1  ;;  %6165 = vst [vmem:[#allocation65_spill] sm:$0xff] %v5043_v38 }
 0x26c   : > { %6123 = vst [vmem:[#allocation23_spill] sm:$0xff] %v4787_v41  ;;  %1188 = vmax.xlane.f32.xlu0 %v1187_v40  ;;  %v1190_v42 = vmax.f32 %v4783_v39, %v4787_v41  ;;  %v5025_v41 = vld [vmem:[#allocation3 + $0x70] sm:$0xff]  ;;  %v5027_v39 = vld [vmem:[#allocation3 + $0x78] sm:$0xff]  ;;  %6166 = vst [vmem:[#allocation66_spill] sm:$0xff] %v5045_v37 }
 0x26d   : > { %6162 = vst [vmem:[#allocation62_spill] sm:$0xff] %v5025_v41  ;;  %6163 = vst [vmem:[#allocation63_spill] sm:$0xff] %v5027_v39 }
 0x26e   : > { %1191 = vmax.xlane.f32.xlu1 %v1190_v42 }
 0x270   : > { %v4791_v43 = vpop.f32.mrb[32].mxu1 }
 0x271   : > { %6124 = vst [vmem:[#allocation24_spill] sm:$0xff] %v4791_v43  ;;  %v4793_v44 = vpop.f32.mrb[33].mxu1 }
 0x272   : > { %6125 = vst [vmem:[#allocation25_spill] sm:$0xff] %v4793_v44  ;;  %v4795_v45 = vpop.f32.mrb[34].mxu1  ;;  %v1193_v46 = vmax.f32 %v4791_v43, %v4793_v44 }
 0x273   : > { %6126 = vst [vmem:[#allocation26_spill] sm:$0xff] %v4795_v45  ;;  %v4799_v47 = vpop.f32.mrb[35].mxu1 }
 0x274   : > { %6127 = vst [vmem:[#allocation27_spill] sm:$0xff] %v4799_v47  ;;  %1194 = vmax.xlane.f32.xlu0 %v1193_v46  ;;  %v1196_v48 = vmax.f32 %v4795_v45, %v4799_v47 }
 0x276   : > { %1197 = vmax.xlane.f32.xlu1 %v1196_v48 }
 0x278   : > { %v4803_v49 = vpop.f32.mrb[36].mxu1 }
 0x279   : > { %6128 = vst [vmem:[#allocation28_spill] sm:$0xff] %v4803_v49  ;;  %v4805_v50 = vpop.f32.mrb[37].mxu1 }
 0x27a   : > { %6129 = vst [vmem:[#allocation29_spill] sm:$0xff] %v4805_v50  ;;  %v4807_v51 = vpop.f32.mrb[38].mxu1  ;;  %v1199_v52 = vmax.f32 %v4803_v49, %v4805_v50  ;;  %v4969_v50 = vld [vmem:[#allocation3 + $0x48] sm:$0xff] }
 0x27b   : > { %6130 = vst [vmem:[#allocation30_spill] sm:$0xff] %v4807_v51  ;;  %v4811_v53 = vpop.f32.mrb[39].mxu1 }
 0x27c   : > { %6131 = vst [vmem:[#allocation31_spill] sm:$0xff] %v4811_v53  ;;  %1200 = vmax.xlane.f32.xlu0 %v1199_v52  ;;  %v1202_v54 = vmax.f32 %v4807_v51, %v4811_v53 }
 0x27e   : > { %1203 = vmax.xlane.f32.xlu1 %v1202_v54 }
 0x280   : > { %v4815_v55 = vpop.f32.mrb[40].mxu1 }
 0x281   : > { %6132 = vst [vmem:[#allocation32_spill] sm:$0xff] %v4815_v55  ;;  %v4817_v56 = vpop.f32.mrb[41].mxu1 }
 0x282   : > { %6133 = vst [vmem:[#allocation33_spill] sm:$0xff] %v4817_v56  ;;  %v4819_v60 = vpop.f32.mrb[42].mxu1  ;;  %v1205_v62 = vmax.f32 %v4815_v55, %v4817_v56  ;;  %v4922_v55 = vld [vmem:[#allocation3 + $0x20] sm:$0xff] }
 0x283   : > { %6134 = vst [vmem:[#allocation34_spill] sm:$0xff] %v4819_v60  ;;  %v4823_v2 = vpop.f32.mrb[43].mxu1 }
 0x284   : > { %6135 = vst [vmem:[#allocation35_spill] sm:$0xff] %v4823_v2  ;;  %1206 = vmax.xlane.f32.xlu1 %v1205_v62  ;;  %v1208_v4 = vmax.f32 %v4819_v60, %v4823_v2 }
 0x286   : > { %1209 = vmax.xlane.f32.xlu0 %v1208_v4 }
 0x288   : > { %v4827_v8 = vpop.f32.mrb[44].mxu1 }
 0x289   : > { %6136 = vst [vmem:[#allocation36_spill] sm:$0xff] %v4827_v8  ;;  %v4829_v10 = vpop.f32.mrb[45].mxu1 }
 0x28a   : > { %6137 = vst [vmem:[#allocation37_spill] sm:$0xff] %v4829_v10  ;;  %v4831_v11 = vpop.f32.mrb[46].mxu1  ;;  %v1211_v15 = vmax.f32 %v4827_v8, %v4829_v10 }
 0x28b   : > { %6138 = vst [vmem:[#allocation38_spill] sm:$0xff] %v4831_v11  ;;  %v4835_v17 = vpop.f32.mrb[47].mxu1 }
 0x28c   : > { %6139 = vst [vmem:[#allocation39_spill] sm:$0xff] %v4835_v17  ;;  %1212 = vmax.xlane.f32.xlu1 %v1211_v15  ;;  %v1214_v18 = vmax.f32 %v4831_v11, %v4835_v17  ;;  %v5009_v17 = vld [vmem:[#allocation3 + $0x68] sm:$0xff] }
 0x28e   : > { %1215 = vmax.xlane.f32.xlu0 %v1214_v18 }
 0x290   : > { %v4839_v22 = vpop.f32.mrb[48].mxu1 }
 0x291   : > { %6140 = vst [vmem:[#allocation40_spill] sm:$0xff] %v4839_v22  ;;  %v4841_v24 = vpop.f32.mrb[49].mxu1 }
 0x292   : > { %6141 = vst [vmem:[#allocation41_spill] sm:$0xff] %v4841_v24  ;;  %v4843_v28 = vpop.f32.mrb[50].mxu1  ;;  %v1217_v30 = vmax.f32 %v4839_v22, %v4841_v24 }
 0x293   : > { %6142 = vst [vmem:[#allocation42_spill] sm:$0xff] %v4843_v28  ;;  %v4847_v34 = vpop.f32.mrb[51].mxu1 }
 0x294   : > { %6143 = vst [vmem:[#allocation43_spill] sm:$0xff] %v4847_v34  ;;  %1218 = vmax.xlane.f32.xlu0 %v1217_v30  ;;  %v1220_v36 = vmax.f32 %v4843_v28, %v4847_v34 }
 0x296   : > { %1221 = vmax.xlane.f32.xlu1 %v1220_v36 }
 0x298   : > { %v4851_v40 = vpop.f32.mrb[52].mxu1 }
 0x299   : > { %6144 = vst [vmem:[#allocation44_spill] sm:$0xff] %v4851_v40  ;;  %v4853_v42 = vpop.f32.mrb[53].mxu1 }
 0x29a   : > { %6145 = vst [vmem:[#allocation45_spill] sm:$0xff] %v4853_v42  ;;  %v4855_v46 = vpop.f32.mrb[54].mxu1  ;;  %v1223_v48 = vmax.f32 %v4851_v40, %v4853_v42 }
 0x29b   : > { %6146 = vst [vmem:[#allocation46_spill] sm:$0xff] %v4855_v46  ;;  %v4859_v52 = vpop.f32.mrb[55].mxu1 }
 0x29c   : > { %6147 = vst [vmem:[#allocation47_spill] sm:$0xff] %v4859_v52  ;;  %1224 = vmax.xlane.f32.xlu1 %v1223_v48  ;;  %v1226_v54 = vmax.f32 %v4855_v46, %v4859_v52  ;;  %v4929_v52 = vld [vmem:[#allocation3 + $0x28] sm:$0xff] }
 0x29d   : > { %6156 = vst [vmem:[#allocation56_spill] sm:$0xff] %v4929_v52 }
 0x29e   : > { %1227 = vmax.xlane.f32.xlu0 %v1226_v54 }
 0x2a0   : > { %v4863_v62 = vpop.f32.mrb[56].mxu1 }
 0x2a1   : > { %6148 = vst [vmem:[#allocation48_spill] sm:$0xff] %v4863_v62  ;;  %v4865_v4 = vpop.f32.mrb[57].mxu1 }
 0x2a2   : > { %6149 = vst [vmem:[#allocation49_spill] sm:$0xff] %v4865_v4  ;;  %v4867_v15 = vpop.f32.mrb[58].mxu1  ;;  %v1229_v18 = vmax.f32 %v4863_v62, %v4865_v4  ;;  %v4887_v62 = vld [vmem:[#allocation3] sm:$0xff]  ;;  %v4902_v4 = vld [vmem:[#allocation3 + $0x10] sm:$0xff] }
 0x2a3   : > { %6150 = vst [vmem:[#allocation50_spill] sm:$0xff] %v4867_v15  ;;  %v4871_v30 = vpop.f32.mrb[59].mxu1 }
 0x2a4   : > { %6151 = vst [vmem:[#allocation51_spill] sm:$0xff] %v4871_v30  ;;  %v1232_v36 = vmax.f32 %v4867_v15, %v4871_v30  ;;  %1230 = vmax.xlane.f32.xlu0 %v1229_v18  ;;  %v4912_v15 = vld [vmem:[#allocation3 + $0x18] sm:$0xff] }
 0x2a6   : > { %1233 = vmax.xlane.f32.xlu1 %v1232_v36  ;;  %v4892_v36 = vld [vmem:[#allocation3 + $0x8] sm:$0xff] }
 0x2a8   : > { %v4875_v48 = vpop.f32.mrb[60].mxu1 }
 0x2a9   : > { %6152 = vst [vmem:[#allocation52_spill] sm:$0xff] %v4875_v48  ;;  %v4877_v42 = vpop.f32.mrb[61].mxu1 }
 0x2aa   : > { %6153 = vst [vmem:[#allocation53_spill] sm:$0xff] %v4877_v42  ;;  %v4879_v54 = vpop.f32.mrb[62].mxu1 }
 0x2ab   : > { %6154 = vst [vmem:[#allocation54_spill] sm:$0xff] %v4879_v54  ;;  %v4883_v24 = vpop.f32.mrb[63].mxu1 }
 0x2ac   : > { %6155 = vst [vmem:[#allocation55_spill] sm:$0xff] %v4883_v24 }
 0x2c1   : > { %v1147_v22 = vpop.xlane.xlu0 %1146 }
 0x2c2   : > { %v4890_v18 = vmax.f32 %v4887_v62, %v1147_v22 }
 0x2c4   : > { %2427 = vst.msk [vmem:[#allocation3] sm:$0xff] %vm662_vm1, %v4890_v18  ;;  %1371 = vperm.xlu0 %3713, %v4890_v18  }
 0x2c5   : > { %v1150_v40 = vpop.xlane.xlu0 %1149 }
 0x2c6   : > { %v4900_v8 = vmax.f32 %v4892_v36, %v1150_v40 }
 0x2c8   : > { %2428 = vst.msk [vmem:[#allocation3 + $0x8] sm:$0xff] %vm662_vm1, %v4900_v8  ;;  %1376 = vperm.xlu1 %3714, %v4900_v8  }
 0x2c9   : > { %v1153_v10 = vpop.xlane.xlu1 %1152 }
 0x2ca   : > { %v4910_v30 = vmax.f32 %v4902_v4, %v1153_v10 }
 0x2cc   : > { %2429 = vst.msk [vmem:[#allocation3 + $0x10] sm:$0xff] %vm662_vm1, %v4910_v30  ;;  %1381 = vperm.xlu1 %3714, %v4910_v30  }
 0x2cd   : > { %v1156_v22 = vpop.xlane.xlu1 %1155 }
 0x2ce   : > { %v4920_v56 = vmax.f32 %v4912_v15, %v1156_v22  ;;  %v4949_v22 = vld [vmem:[#allocation3 + $0x38] sm:$0xff] }
 0x2cf   : > { %6159 = vst [vmem:[#allocation59_spill] sm:$0xff] %v4949_v22 }
 0x2d0   : > { %2430 = vst.msk [vmem:[#allocation3 + $0x18] sm:$0xff] %vm662_vm1, %v4920_v56  ;;  %1386 = vperm.xlu1 %3714, %v4920_v56  }
 0x2d1   : > { %v1159_v40 = vpop.xlane.xlu0 %1158 }
 0x2d2   : > { %v4932_v46 = vmax.f32 %v4922_v55, %v1159_v40  ;;  %v4946_v40 = vld [vmem:[#allocation3 + $0x30] sm:$0xff] }
 0x2d3   : > { %v1162_v53 = vpop.xlane.xlu1 %1161  ;;  %6158 = vst [vmem:[#allocation58_spill] sm:$0xff] %v4946_v40 }
 0x2d4   : > { %2431 = vst.msk [vmem:[#allocation3 + $0x20] sm:$0xff] %vm662_vm1, %v4932_v46  ;;  %v4939_v10 = vmax.f32 %v4929_v52, %v1162_v53  ;;  %1391 = vperm.xlu0 %3713, %v4932_v46  }
 0x2d6   : > { %6157 = vst [vmem:[#allocation57_spill] sm:$0xff] %v4939_v10  ;;  %2432 = vst.msk [vmem:[#allocation3 + $0x28] sm:$0xff] %vm662_vm1, %v4939_v10 }
 0x2d8   : > { %1396 = vperm.xlu0 %3713, %v4939_v10  }
 0x2d9   : > { %v1165_v34 = vpop.xlane.xlu0 %1164 }
 0x2da   : > { %v4952_v28 = vmax.f32 %v4946_v40, %v1165_v34  ;;  %v4966_v34 = vld [vmem:[#allocation3 + $0x40] sm:$0xff] }
 0x2db   : > { %v1168_v53 = vpop.xlane.xlu1 %1167 }
 0x2dc   : > { %6160 = vst [vmem:[#allocation60_spill] sm:$0xff] %v4952_v28  ;;  %2433 = vst.msk [vmem:[#allocation3 + $0x30] sm:$0xff] %vm662_vm1, %v4952_v28  ;;  %v4959_v51 = vmax.f32 %v4949_v22, %v1168_v53  ;;  %1401 = vperm.xlu1 %3714, %v4952_v28   ;;  %v4989_v28 = vld [vmem:[#allocation3 + $0x58] sm:$0xff] }
 0x2de   : > { %6161 = vst [vmem:[#allocation61_spill] sm:$0xff] %v4959_v51  ;;  %2434 = vst.msk [vmem:[#allocation3 + $0x38] sm:$0xff] %vm662_vm1, %v4959_v51 }
 0x2e0   : > { %1406 = vperm.xlu1 %3714, %v4959_v51  }
 0x2e1   : > { %v1171_v52 = vpop.xlane.xlu0 %1170 }
 0x2e2   : > { %v4972_v40 = vmax.f32 %v4966_v34, %v1171_v52  ;;  %v4986_v52 = vld [vmem:[#allocation3 + $0x50] sm:$0xff] }
 0x2e3   : > { %v1174_v53 = vpop.xlane.xlu1 %1173 }
 0x2e4   : > { %2435 = vst.msk [vmem:[#allocation3 + $0x40] sm:$0xff] %vm662_vm1, %v4972_v40  ;;  %v4979_v10 = vmax.f32 %v4969_v50, %v1174_v53  ;;  %1411 = vperm.xlu0 %3713, %v4972_v40  }
 0x2e6   : > { %2436 = vst.msk [vmem:[#allocation3 + $0x48] sm:$0xff] %vm662_vm1, %v4979_v10 }
 0x2e8   : > { %1416 = vperm.xlu0 %3713, %v4979_v10  }
 0x2e9   : > { %v1177_v22 = vpop.xlane.xlu0 %1176 }
 0x2ea   : > { %v4992_v49 = vmax.f32 %v4986_v52, %v1177_v22  ;;  %v5006_v22 = vld [vmem:[#allocation3 + $0x60] sm:$0xff] }
 0x2eb   : > { %v1180_v53 = vpop.xlane.xlu1 %1179 }
 0x2ec   : > { %2437 = vst.msk [vmem:[#allocation3 + $0x50] sm:$0xff] %vm662_vm1, %v4992_v49  ;;  %v4999_v51 = vmax.f32 %v4989_v28, %v1180_v53  ;;  %1421 = vperm.xlu1 %3714, %v4992_v49  }
 0x2ee   : > { %2438 = vst.msk [vmem:[#allocation3 + $0x58] sm:$0xff] %vm662_vm1, %v4999_v51 }
 0x2f0   : > { %1426 = vperm.xlu1 %3714, %v4999_v51  }
 0x2f1   : > { %v1183_v47 = vpop.xlane.xlu0 %1182 }
 0x2f2   : > { %v5012_v45 = vmax.f32 %v5006_v22, %v1183_v47 }
 0x2f3   : > { %v1186_v53 = vpop.xlane.xlu1 %1185 }
 0x2f4   : > { %2439 = vst.msk [vmem:[#allocation3 + $0x60] sm:$0xff] %vm662_vm1, %v5012_v45  ;;  %v5019_v11 = vmax.f32 %v5009_v17, %v1186_v53 }
 0x2f6   : > { %2440 = vst.msk [vmem:[#allocation3 + $0x68] sm:$0xff] %vm662_vm1, %v5019_v11 }
 0x2f9   : > { %v1189_v47 = vpop.xlane.xlu0 %1188 }
 0x2fa   : > { %v5030_v44 = vmax.f32 %v5025_v41, %v1189_v47 }
 0x2fb   : > { %v1192_v2 = vpop.xlane.xlu1 %1191 }
 0x2fc   : > { %6164 = vst [vmem:[#allocation64_spill] sm:$0xff] %v5030_v44  ;;  %2441 = vst.msk [vmem:[#allocation3 + $0x70] sm:$0xff] %vm662_vm1, %v5030_v44  ;;  %v5037_v53 = vmax.f32 %v5027_v39, %v1192_v2 }
 0x2fe   : > { %2442 = vst.msk [vmem:[#allocation3 + $0x78] sm:$0xff] %vm662_vm1, %v5037_v53 }
 0x301   : > { %v1195_v47 = vpop.xlane.xlu0 %1194 }
 0x302   : > { %v5048_v35 = vmax.f32 %v5043_v38, %v1195_v47  ;;  %v6168_v47 = vmax.f32 %v4879_v54, %v4883_v24  ;;  %v5082_v24 = vld [vmem:[#allocation3 + $0xa0] sm:$0xff]  ;;  %v5084_v54 = vld [vmem:[#allocation3 + $0xa8] sm:$0xff] }
 0x303   : > { %v1198_v43 = vpop.xlane.xlu1 %1197  ;;  %6171 = vst [vmem:[#allocation70_spill] sm:$0xff] %v5082_v24  ;;  %6172 = vst [vmem:[#allocation71_spill] sm:$0xff] %v5084_v54 }
 0x304   : > { %6167 = vst [vmem:[#allocation67_spill] sm:$0xff] %v5048_v35  ;;  %2443 = vst.msk [vmem:[#allocation3 + $0x80] sm:$0xff] %vm662_vm1, %v5048_v35  ;;  %v5055_v2 = vmax.f32 %v5045_v37, %v1198_v43 }
 0x306   : > { %2444 = vst.msk [vmem:[#allocation3 + $0x88] sm:$0xff] %vm662_vm1, %v5055_v2 }
 0x307   : > { %1239 = vmax.xlane.f32.xlu0 %v6168_v47 }
 0x309   : > { %v1201_v31 = vpop.xlane.xlu0 %1200 }
 0x30a   : > { %v5069_v38 = vmax.f32 %v5064_v32, %v1201_v31  ;;  %v6173_v32 = vmax.f32 %v4875_v48, %v4877_v42  ;;  %v5105_v42 = vld [vmem:[#allocation3 + $0xb8] sm:$0xff]  ;;  %v5125_v48 = vld [vmem:[#allocation3 + $0xc8] sm:$0xff] }
 0x30b   : > { %v1204_v43 = vpop.xlane.xlu1 %1203  ;;  %6176 = vst [vmem:[#allocation74_spill] sm:$0xff] %v5105_v42  ;;  %6180 = vst [vmem:[#allocation78_spill] sm:$0xff] %v5125_v48 }
 0x30c   : > { %2445 = vst.msk [vmem:[#allocation3 + $0x90] sm:$0xff] %vm662_vm1, %v5069_v38  ;;  %v5076_v60 = vmax.f32 %v5066_v33, %v1204_v43 }
 0x30e   : > { %2446 = vst.msk [vmem:[#allocation3 + $0x98] sm:$0xff] %vm662_vm1, %v5076_v60 }
 0x311   : > { %v1207_v31 = vpop.xlane.xlu1 %1206 }
 0x312   : > { %v5087_v37 = vmax.f32 %v5082_v24, %v1207_v31  ;;  %v5103_v31 = vld [vmem:[#allocation3 + $0xb0] sm:$0xff] }
 0x313   : > { %v1210_v39 = vpop.xlane.xlu0 %1209  ;;  %6175 = vst [vmem:[#allocation73_spill] sm:$0xff] %v5103_v31 }
 0x314   : > { %1236 = vmax.xlane.f32.xlu1 %v6173_v32  ;;  %2447 = vst.msk [vmem:[#allocation3 + $0xa0] sm:$0xff] %vm662_vm1, %v5087_v37  ;;  %v5097_v47 = vmax.f32 %v5084_v54, %v1210_v39 }
 0x316   : > { %6174 = vst [vmem:[#allocation72_spill] sm:$0xff] %v5097_v47  ;;  %2448 = vst.msk [vmem:[#allocation3 + $0xa8] sm:$0xff] %vm662_vm1, %v5097_v47 }
 0x319   : > { %v1213_v41 = vpop.xlane.xlu1 %1212 }
 0x31a   : > { %v5108_v32 = vmax.f32 %v5103_v31, %v1213_v41  ;;  %v5122_v41 = vld [vmem:[#allocation3 + $0xc0] sm:$0xff] }
 0x31b   : > { %v1216_v43 = vpop.xlane.xlu0 %1215  ;;  %6179 = vst [vmem:[#allocation77_spill] sm:$0xff] %v5122_v41 }
 0x31c   : > { %6177 = vst [vmem:[#allocation75_spill] sm:$0xff] %v5108_v32  ;;  %2449 = vst.msk [vmem:[#allocation3 + $0xb0] sm:$0xff] %vm662_vm1, %v5108_v32  ;;  %v5115_v39 = vmax.f32 %v5105_v42, %v1216_v43 }
 0x31d   : > { %1431 = vperm.xlu0 %3713, %v5012_v45  }
 0x31e   : > { %6178 = vst [vmem:[#allocation76_spill] sm:$0xff] %v5115_v39  ;;  %2450 = vst.msk [vmem:[#allocation3 + $0xb8] sm:$0xff] %vm662_vm1, %v5115_v39 }
 0x321   : > { %1436 = vperm.xlu0 %3713, %v5019_v11   ;;  %v1219_v54 = vpop.xlane.xlu0 %1218 }
 0x322   : > { %v5128_v31 = vmax.f32 %v5122_v41, %v1219_v54  ;;  %v5143_v54 = vld [vmem:[#allocation3 + $0xd0] sm:$0xff]  ;;  %v5147_v41 = vld [vmem:[#allocation3 + $0xd8] sm:$0xff] }
 0x323   : > { %v1222_v43 = vpop.xlane.xlu1 %1221  ;;  %6183 = vst [vmem:[#allocation81_spill] sm:$0xff] %v5143_v54  ;;  %6184 = vst [vmem:[#allocation82_spill] sm:$0xff] %v5147_v41 }
 0x324   : > { %6181 = vst [vmem:[#allocation79_spill] sm:$0xff] %v5128_v31  ;;  %2451 = vst.msk [vmem:[#allocation3 + $0xc0] sm:$0xff] %vm662_vm1, %v5128_v31  ;;  %v5135_v33 = vmax.f32 %v5125_v48, %v1222_v43 }
 0x325   : > { %1451 = vperm.xlu1 %3714, %v5048_v35   ;;  %1441 = vperm.xlu0 %3713, %v5030_v44   ;;  %v5169_v44 = vld [vmem:[#allocation3 + $0xe8] sm:$0xff] }
 0x326   : > { %6182 = vst [vmem:[#allocation80_spill] sm:$0xff] %v5135_v33  ;;  %2452 = vst.msk [vmem:[#allocation3 + $0xc8] sm:$0xff] %vm662_vm1, %v5135_v33 }
 0x327   : > { %6187 = vst [vmem:[#allocation85_spill] sm:$0xff] %v5169_v44 }
 0x329   : > { %1476 = vperm.xlu1 %3714, %v5097_v47   ;;  %1446 = vperm.xlu0 %3713, %v5037_v53   ;;  %v1225_v24 = vpop.xlane.xlu1 %1224 }
 0x32a   : > { %v5150_v43 = vmax.f32 %v5143_v54, %v1225_v24  ;;  %v5165_v24 = vld [vmem:[#allocation3 + $0xe0] sm:$0xff] }
 0x32b   : > { %v1228_v35 = vpop.xlane.xlu0 %1227  ;;  %6186 = vst [vmem:[#allocation84_spill] sm:$0xff] %v5165_v24 }
 0x32c   : > { %2453 = vst.msk [vmem:[#allocation3 + $0xd0] sm:$0xff] %vm662_vm1, %v5150_v43  ;;  %v5157_v42 = vmax.f32 %v5147_v41, %v1228_v35 }
 0x32d   : > { %1486 = vperm.xlu1 %3714, %v5115_v39   ;;  %1456 = vperm.xlu0 %3713, %v5055_v2  }
 0x32e   : > { %6185 = vst [vmem:[#allocation83_spill] sm:$0xff] %v5157_v42  ;;  %2454 = vst.msk [vmem:[#allocation3 + $0xd8] sm:$0xff] %vm662_vm1, %v5157_v42 }
 0x331   : > { %1496 = vperm.xlu1 %3714, %v5135_v33   ;;  %1461 = vperm.xlu0 %3713, %v5069_v38   ;;  %v1231_v35 = vpop.xlane.xlu0 %1230 }
 0x332   : > { %v5172_v54 = vmax.f32 %v5165_v24, %v1231_v35 }
 0x333   : > { %v1234_v39 = vpop.xlane.xlu1 %1233 }
 0x334   : > { %v5175_v47 = vmax.f32 %v5169_v44, %v1234_v39  ;;  %2455 = vst.msk [vmem:[#allocation3 + $0xe0] sm:$0xff] %vm662_vm1, %v5172_v54 }
 0x335   : > { %1506 = vperm.xlu1 %3714, %v5157_v42   ;;  %1466 = vperm.xlu0 %3713, %v5076_v60  }
 0x336   : > { %6188 = vst [vmem:[#allocation86_spill] sm:$0xff] %v5175_v47  ;;  %2456 = vst.msk [vmem:[#allocation3 + $0xe8] sm:$0xff] %vm662_vm1, %v5175_v47 }
 0x339   : > { %1516 = vperm.xlu1 %3714, %v5175_v47   ;;  %1471 = vperm.xlu0 %3713, %v5087_v37  }
 0x33d   : > { %1481 = vperm.xlu0 %3713, %v5108_v32  }
 0x341   : > { %1491 = vperm.xlu0 %3713, %v5128_v31  }
 0x343   : > { %v1372_v39 = vpop.permute.xlu0 %1371 }
 0x344   : > { %v1529_v35 = vsub.f32 %v4564_v57, %v1372_v39  ;;  %v1530_v48 = vsub.f32 %v4566_v58, %v1372_v39 }
 0x345   : > { %1501 = vperm.xlu0 %3713, %v5150_v43  }
 0x346   : > { %v1593_v24 = vmul.f32 1.442695, %v1529_v35  ;;  %v1595_v41 = vmul.f32 1.442695, %v1530_v48 }
 0x347   : > { %v1377_v44 = vpop.permute.xlu1 %1376 }
 0x348   : > { %3715 = vpow2.f32 %v1593_v24  ;;  %v1531_v42 = vsub.f32 %v4568_v59, %v1377_v44  ;;  %v1532_v47 = vsub.f32 %v4572_v61, %v1377_v44 }
 0x349   : > { %3717 = vpow2.f32 %v1595_v41  ;;  %1511 = vperm.xlu0 %3713, %v5172_v54  }
 0x34a   : > { %v1597_v33 = vmul.f32 1.442695, %v1531_v42  ;;  %v1599_v31 = vmul.f32 1.442695, %v1532_v47 }
 0x34b   : > { %v1382_v32 = vpop.permute.xlu1 %1381 }
 0x34c   : > { %3719 = vpow2.f32 %v1597_v33  ;;  %v1533_v57 = vsub.f32 %v4576_v63, %v1382_v32  ;;  %v1534_v58 = vsub.f32 %v4578_v0, %v1382_v32 }
 0x34d   : > { %3721 = vpow2.f32 %v1599_v31 }
 0x34e   : > { %v1601_v39 = vmul.f32 1.442695, %v1533_v57  ;;  %v1603_v48 = vmul.f32 1.442695, %v1534_v58 }
 0x34f   : > { %v1387_v35 = vpop.permute.xlu1 %1386 }
 0x350   : > { %3723 = vpow2.f32 %v1601_v39  ;;  %v1535_v59 = vsub.f32 %v4580_v1, %v1387_v35  ;;  %v1536_v61 = vsub.f32 %v4584_v3, %v1387_v35 }
 0x351   : > { %3725 = vpow2.f32 %v1603_v48 }
 0x352   : > { %v3716_v44 = vpop.eup %3715  ;;  %v1605_v41 = vmul.f32 1.442695, %v1535_v59  ;;  %v1607_v42 = vmul.f32 1.442695, %v1536_v61 }
 0x353   : > { %v3718_v47 = vpop.eup %3717  ;;  %v1392_v24 = vpop.permute.xlu0 %1391 }
 0x354   : > { %3727 = vpow2.f32 %v1605_v41  ;;  %v1537_v63 = vsub.f32 %v4588_v5, %v1392_v24  ;;  %v1538_v0 = vsub.f32 %v4590_v6, %v1392_v24  ;;  %v5203_v33 = vadd.f32 %v3718_v47, %v3716_v44 }
 0x355   : > { %3729 = vpow2.f32 %v1607_v42 }
 0x356   : > { %v3720_v31 = vpop.eup %3719  ;;  %v1609_v32 = vmul.f32 1.442695, %v1537_v63  ;;  %v1611_v57 = vmul.f32 1.442695, %v1538_v0 }
 0x357   : > { %v3722_v1 = vpop.eup %3721  ;;  %v1397_v58 = vpop.permute.xlu0 %1396  ;;  %v2170_v3 = vpack.c.bf16 %v3720_v31, %v3716_v44 }
 0x358   : > { %3731 = vpow2.f32 %v1609_v32  ;;  %v1539_v39 = vsub.f32 %v4592_v7, %v1397_v58  ;;  %v1540_v48 = vsub.f32 %v4596_v9, %v1397_v58  ;;  %v2171_v35 = vpack.c.bf16 %v3722_v1, %v3718_v47 }
 0x359   : > { %3733 = vpow2.f32 %v1611_v57  ;;  %v5207_v59 = vadd.f32 %v3722_v1, %v3720_v31 }
 0x35a   : > { %v3724_v5 = vpop.eup %3723  ;;  %v1613_v6 = vmul.f32 1.442695, %v1539_v39  ;;  %v1615_v61 = vmul.f32 1.442695, %v1540_v48  ;;  %2234 = vmatprep.mubr.bf16.mxu0 %v2171_v35 }
 0x35b   : > { %v3726_v41 = vpop.eup %3725  ;;  %2235 = vmatmul.mubr.bf16.vlgmr.msra.gmra.mrb[32].mxu0 %v2170_v3  ;;  %v1402_v42 = vpop.permute.xlu1 %1401 }
 0x35c   : > { %3735 = vpow2.f32 %v1613_v6  ;;  %v1541_v24 = vsub.f32 %v4600_v12, %v1402_v42  ;;  %v1542_v44 = vsub.f32 %v4602_v13, %v1402_v42  ;;  %v5211_v63 = vadd.f32 %v3726_v41, %v3724_v5 }
 0x35d   : > { %3737 = vpow2.f32 %v1615_v61 }
 0x35e   : > { %v3728_v7 = vpop.eup %3727  ;;  %v1617_v9 = vmul.f32 1.442695, %v1541_v24  ;;  %v1619_v47 = vmul.f32 1.442695, %v1542_v44 }
 0x35f   : > { %v3730_v0 = vpop.eup %3729  ;;  %v1407_v31 = vpop.permute.xlu1 %1406  ;;  %v2172_v32 = vpack.c.bf16 %v3728_v7, %v3724_v5 }
 0x360   : > { %3739 = vpow2.f32 %v1617_v9  ;;  %v1543_v57 = vsub.f32 %v4604_v14, %v1407_v31  ;;  %v1544_v1 = vsub.f32 %v4608_v16, %v1407_v31  ;;  %v2173_v58 = vpack.c.bf16 %v3730_v0, %v3726_v41 }
 0x361   : > { %3741 = vpow2.f32 %v1619_v47  ;;  %v5215_v3 = vadd.f32 %v3730_v0, %v3728_v7 }
 0x362   : > { %v3732_v12 = vpop.eup %3731  ;;  %v1621_v13 = vmul.f32 1.442695, %v1543_v57  ;;  %v1623_v39 = vmul.f32 1.442695, %v1544_v1  ;;  %2242 = vmatprep.mubr.bf16.mxu0 %v2173_v58 }
 0x363   : > { %v3734_v48 = vpop.eup %3733  ;;  %2243 = vmatmul.mubr.bf16.gmra.mrb[36].mxu0 %v2172_v32  ;;  %v1412_v35 = vpop.permute.xlu0 %1411 }
 0x364   : > { %3743 = vpow2.f32 %v1621_v13  ;;  %v1545_v6 = vsub.f32 %v4743_v19, %v1412_v35  ;;  %v1546_v5 = vsub.f32 %v4745_v20, %v1412_v35  ;;  %v5219_v61 = vadd.f32 %v3734_v48, %v3732_v12 }
 0x365   : > { %3745 = vpow2.f32 %v1623_v39 }
 0x366   : > { %v3736_v14 = vpop.eup %3735  ;;  %v1625_v16 = vmul.f32 1.442695, %v1545_v6  ;;  %v1627_v41 = vmul.f32 1.442695, %v1546_v5 }
 0x367   : > { %v3738_v42 = vpop.eup %3737  ;;  %v1417_v24 = vpop.permute.xlu0 %1416  ;;  %v2174_v44 = vpack.c.bf16 %v3736_v14, %v3732_v12 }
 0x368   : > { %3747 = vpow2.f32 %v1625_v16  ;;  %v1547_v7 = vsub.f32 %v4747_v21, %v1417_v24  ;;  %v1548_v9 = vsub.f32 %v4751_v23, %v1417_v24  ;;  %v2175_v47 = vpack.c.bf16 %v3738_v42, %v3734_v48 }
 0x369   : > { %3749 = vpow2.f32 %v1627_v41  ;;  %v5223_v0 = vadd.f32 %v3738_v42, %v3736_v14 }
 0x36a   : > { %v3740_v19 = vpop.eup %3739  ;;  %v1629_v20 = vmul.f32 1.442695, %v1547_v7  ;;  %v1631_v31 = vmul.f32 1.442695, %v1548_v9  ;;  %2250 = vmatprep.mubr.bf16.mxu0 %v2175_v47 }
 0x36b   : > { %v3742_v32 = vpop.eup %3741  ;;  %2251 = vmatmul.mubr.bf16.gmra.mrb[40].mxu0 %v2174_v44  ;;  %v1422_v57 = vpop.permute.xlu1 %1421 }
 0x36c   : > { %3751 = vpow2.f32 %v1629_v20  ;;  %v1549_v1 = vsub.f32 %v4755_v25, %v1422_v57  ;;  %v1550_v58 = vsub.f32 %v4757_v26, %v1422_v57  ;;  %v5227_v12 = vadd.f32 %v3742_v32, %v3740_v19 }
 0x36d   : > { %3753 = vpow2.f32 %v1631_v31 }
 0x36e   : > { %v3744_v21 = vpop.eup %3743  ;;  %v1633_v23 = vmul.f32 1.442695, %v1549_v1  ;;  %v1635_v13 = vmul.f32 1.442695, %v1550_v58 }
 0x36f   : > { %v3746_v39 = vpop.eup %3745  ;;  %v1427_v48 = vpop.permute.xlu1 %1426  ;;  %v2176_v35 = vpack.c.bf16 %v3744_v21, %v3740_v19 }
 0x370   : > { %3755 = vpow2.f32 %v1633_v23  ;;  %v1551_v6 = vsub.f32 %v4759_v27, %v1427_v48  ;;  %v1552_v5 = vsub.f32 %v4763_v29, %v1427_v48  ;;  %v2177_v14 = vpack.c.bf16 %v3746_v39, %v3742_v32 }
 0x371   : > { %3757 = vpow2.f32 %v1635_v13  ;;  %v5231_v16 = vadd.f32 %v3746_v39, %v3744_v21  ;;  %v6189_v21 = vsub.f32 %v4887_v62, %v4890_v18  ;;  %v6190_v13 = vsub.f32 %v4892_v36, %v4900_v8 }
 0x372   : > { %v3748_v25 = vpop.eup %3747  ;;  %v1637_v26 = vmul.f32 1.442695, %v1551_v6  ;;  %v1639_v41 = vmul.f32 1.442695, %v1552_v5  ;;  %2258 = vmatprep.mubr.bf16.mxu0 %v2177_v14  ;;  %v6191_v48 = vsub.f32 %v4902_v4, %v4910_v30  ;;  %v6192_v6 = vsub.f32 %v4966_v34, %v4972_v40  ;;  %v5271_v40 = vld [vmem:[#allocation3 + $0xf8] sm:$0xff]  ;;  %v6201_v34 = vld [vmem:[#allocation64_spill] sm:$0xff] }
 0x373   : > { %v3750_v42 = vpop.eup %3749  ;;  %2259 = vmatmul.mubr.bf16.gmra.mrb[44].mxu0 %v2176_v35  ;;  %v1305_v23 = vmul.f32 1.442695, %v6189_v21  ;;  %v1307_v39 = vmul.f32 1.442695, %v6190_v13  ;;  %v6193_v14 = vsub.f32 %v4912_v15, %v4920_v56  ;;  %v6194_v62 = vsub.f32 %v4922_v55, %v4932_v46 }
 0x374   : > { %3759 = vpow2.f32 %v1637_v26  ;;  %v5233_v24 = vadd.f32 %v3750_v42, %v3748_v25  ;;  %v1309_v35 = vmul.f32 1.442695, %v6191_v48  ;;  %v1321_v5 = vmul.f32 1.442695, %v6192_v6 }
 0x375   : > { %3761 = vpow2.f32 %v1639_v41  ;;  %v1313_v18 = vmul.f32 1.442695, %v6194_v62  ;;  %v6195_v8 = vsub.f32 %v4969_v50, %v4979_v10  ;;  %v6196_v30 = vsub.f32 %v4986_v52, %v4992_v49  ;;  %v6200_v49 = vld [vmem:[#allocation62_spill] sm:$0xff] }
 0x376   : > { %v3752_v44 = vpop.eup %3751  ;;  %3763 = vpow2.f32 %v1305_v23  ;;  %v6197_v56 = vsub.f32 %v4989_v28, %v4999_v51  ;;  %v6198_v55 = vsub.f32 %v5006_v22, %v5012_v45  ;;  %v6199_v50 = vsub.f32 %v5009_v17, %v5019_v11  ;;  %v6203_v51 = vld [vmem:[#allocation63_spill] sm:$0xff]  ;;  %v6205_v22 = vld [vmem:[#allocation65_spill] sm:$0xff] }
 0x377   : > { %v3754_v7 = vpop.eup %3753  ;;  %v2178_v9 = vpack.c.bf16 %v3752_v44, %v3748_v25  ;;  %v1311_v25 = vmul.f32 1.442695, %v6193_v14  ;;  %3765 = vpow2.f32 %v1307_v39  ;;  %v1323_v4 = vmul.f32 1.442695, %v6195_v8  ;;  %v6215_v39 = vld [vmem:[#allocation70_spill] sm:$0xff] }
 0x378   : > { %v2179_v27 = vpack.c.bf16 %v3754_v7, %v3750_v42  ;;  %v5235_v47 = vadd.f32 %v3754_v7, %v3752_v44  ;;  %3767 = vpow2.f32 %v1309_v35  ;;  %v1325_v36 = vmul.f32 1.442695, %v6196_v30  ;;  %v6206_v44 = vld [vmem:[#allocation67_spill] sm:$0xff] }
 0x379   : > { %3769 = vpow2.f32 %v1321_v5  ;;  %v1327_v15 = vmul.f32 1.442695, %v6197_v56  ;;  %v1329_v46 = vmul.f32 1.442695, %v6198_v55  ;;  %v1331_v10 = vmul.f32 1.442695, %v6199_v50 }
 0x37a   : > { %v3756_v29 = vpop.eup %3755  ;;  %2266 = vmatprep.mubr.bf16.mxu0 %v2179_v27  ;;  %3771 = vpow2.f32 %v1311_v25  ;;  %v6202_v52 = vsub.f32 %v6200_v49, %v6201_v34  ;;  %v6204_v28 = vsub.f32 %v6203_v51, %v5037_v53  ;;  %v6207_v7 = vsub.f32 %v6205_v22, %v6206_v44  ;;  %v6218_v5 = vld [vmem:[#allocation71_spill] sm:$0xff]  ;;  %v6228_v50 = vld [vmem:[#allocation74_spill] sm:$0xff] }
 0x37b   : > { %v3758_v19 = vpop.eup %3757  ;;  %2267 = vmatmul.mubr.bf16.gmra.mrb[48].mxu0 %v2178_v9  ;;  %3773 = vpow2.f32 %v1313_v18  ;;  %v6208_v9 = vld [vmem:[#allocation66_spill] sm:$0xff]  ;;  %v6216_v48 = vsub.f32 %v6215_v39, %v5087_v37  ;;  %v6222_v18 = vld [vmem:[#allocation75_spill] sm:$0xff]  ;;  %v6225_v37 = vld [vmem:[#allocation16_spill] sm:$0xff] }
 0x37c   : > { %v5237_v20 = vadd.f32 %v3758_v19, %v3756_v29  ;;  %3775 = vpow2.f32 %v1323_v4  ;;  %v1333_v26 = vmul.f32 1.442695, %v6202_v52  ;;  %v1335_v42 = vmul.f32 1.442695, %v6204_v28  ;;  %v5336_v51 = vld [vmem:[#allocation3 + $0xf0] sm:$0xff]  ;;  %v6234_v22 = vld [vmem:[#allocation79_spill] sm:$0xff] }
 0x37d   : > { %3777 = vpow2.f32 %v1325_v36  ;;  %v1337_v11 = vmul.f32 1.442695, %v6207_v7  ;;  %v6209_v27 = vsub.f32 %v6208_v9, %v5055_v2  ;;  %v6212_v2 = vld [vmem:[#allocation69_spill] sm:$0xff]  ;;  %v1345_v35 = vmul.f32 1.442695, %v6216_v48  ;;  %v6241_v39 = vld [vmem:[#allocation78_spill] sm:$0xff] }
 0x37e   : > { %v3760_v31 = vpop.eup %3759  ;;  %3779 = vpow2.f32 %v1327_v15  ;;  %v6213_v21 = vsub.f32 %v6212_v2, %v5076_v60  ;;  %v6221_v60 = vld [vmem:[#allocation73_spill] sm:$0xff]  ;;  %v6242_v48 = vld [vmem:[#allocation80_spill] sm:$0xff] }
 0x37f   : > { %v3762_v32 = vpop.eup %3761  ;;  %v2180_v57 = vpack.c.bf16 %v3760_v31, %v3756_v29  ;;  %3781 = vpow2.f32 %v1329_v46  ;;  %v1339_v29 = vmul.f32 1.442695, %v6209_v27  ;;  %v6223_v8 = vsub.f32 %v6221_v60, %v6222_v18  ;;  %v6226_v15 = vld [vmem:[#allocation17_spill] sm:$0xff]  ;;  %v6237_v27 = vld [vmem:[#allocation18_spill] sm:$0xff]  ;;  %v6246_v18 = vld [vmem:[#allocation83_spill] sm:$0xff] }
 0x380   : > { %v2181_v1 = vpack.c.bf16 %v3762_v32, %v3758_v19  ;;  %v5239_v58 = vadd.f32 %v3762_v32, %v3760_v31  ;;  %v5288_v17 = vpop.eup %3763  ;;  %3783 = vpow2.f32 %v1331_v10  ;;  %v6210_v31 = vld [vmem:[#allocation68_spill] sm:$0xff]  ;;  %v1343_v23 = vmul.f32 1.442695, %v6213_v21  ;;  %v6245_v60 = vld [vmem:[#allocation82_spill] sm:$0xff] }
 0x381   : > { %v5298_v53 = vpop.eup %3765  ;;  %3785 = vpow2.f32 %v1333_v26  ;;  %v6211_v32 = vsub.f32 %v6210_v31, %v5069_v38  ;;  %v6219_v38 = vld [vmem:[#allocation72_spill] sm:$0xff]  ;;  %v1349_v4 = vmul.f32 1.442695, %v6223_v8  ;;  %v6238_v31 = vld [vmem:[#allocation19_spill] sm:$0xff]  ;;  %v6247_v8 = vsub.f32 %v6245_v60, %v6246_v18  ;;  %v6260_v60 = vld [vmem:[#allocation34_spill] sm:$0xff] }
 0x382   : > { %2274 = vmatprep.mubr.bf16.mxu0 %v2181_v1  ;;  %v5303_v1 = vpop.eup %3767  ;;  %3787 = vpow2.f32 %v1335_v42  ;;  %v6220_v14 = vsub.f32 %v6218_v5, %v6219_v38  ;;  %v6229_v10 = vld [vmem:[#allocation76_spill] sm:$0xff]  ;;  %v6233_v42 = vld [vmem:[#allocation77_spill] sm:$0xff] }
 0x383   : > { %2275 = vmatmul.mubr.bf16.gmra.mrb[52].mxu0 %v2180_v57  ;;  %v1341_v57 = vmul.f32 1.442695, %v6211_v32  ;;  %v5308_v13 = vpop.eup %3769  ;;  %3789 = vpow2.f32 %v1337_v11  ;;  %v6230_v49 = vsub.f32 %v6228_v50, %v6229_v10  ;;  %v6235_v44 = vsub.f32 %v6233_v42, %v6234_v22  ;;  %v6250_v50 = vld [vmem:[#allocation21_spill] sm:$0xff] }
 0x384   : > { %6214 = vst [vmem:[#allocation62_spill] sm:$0xff] %v5308_v13  ;;  %v5313_v6 = vpop.eup %3771  ;;  %3791 = vpow2.f32 %v1339_v29  ;;  %v1347_v25 = vmul.f32 1.442695, %v6220_v14  ;;  %v6253_v42 = vld [vmem:[#allocation25_spill] sm:$0xff] }
 0x385   : > { %6217 = vst [vmem:[#allocation64_spill] sm:$0xff] %v5313_v6  ;;  %v5319_v62 = vpop.eup %3773  ;;  %3793 = vpow2.f32 %v1341_v57  ;;  %v1351_v34 = vmul.f32 1.442695, %v6230_v49  ;;  %v1353_v7 = vmul.f32 1.442695, %v6235_v44 }
 0x386   : > { %v5324_v36 = vpop.eup %3775  ;;  %3795 = vpow2.f32 %v1343_v23 }
 0x387   : > { %6224 = vst [vmem:[#allocation63_spill] sm:$0xff] %v5324_v36  ;;  %v5328_v46 = vpop.eup %3777  ;;  %3797 = vpow2.f32 %v1345_v35  ;;  %v6243_v35 = vsub.f32 %v6241_v39, %v6242_v48  ;;  %v6257_v39 = vld [vmem:[#allocation22_spill] sm:$0xff] }
 0x388   : > { %6227 = vst [vmem:[#allocation65_spill] sm:$0xff] %v5328_v46  ;;  %v5333_v52 = vpop.eup %3779  ;;  %3799 = vpow2.f32 %v1347_v25 }
 0x389   : > { %6231 = vst [vmem:[#allocation67_spill] sm:$0xff] %v5333_v52  ;;  %v5338_v28 = vpop.eup %3781  ;;  %3801 = vpow2.f32 %v1349_v4  ;;  %v1355_v5 = vmul.f32 1.442695, %v6243_v35  ;;  %v1359_v4 = vmul.f32 1.442695, %v6247_v8  ;;  %v6258_v35 = vld [vmem:[#allocation23_spill] sm:$0xff] }
 0x38a   : > { %6232 = vst [vmem:[#allocation66_spill] sm:$0xff] %v5338_v28  ;;  %v5343_v9 = vpop.eup %3783  ;;  %v6261_v8 = vld [vmem:[#allocation35_spill] sm:$0xff] }
 0x38b   : > { %6236 = vst [vmem:[#allocation68_spill] sm:$0xff] %v5343_v9  ;;  %v5347_v2 = vpop.eup %3785 }
 0x38c   : > { %6239 = vst [vmem:[#allocation69_spill] sm:$0xff] %v5347_v2  ;;  %v5352_v23 = vpop.eup %3787 }
 0x38d   : > { %6240 = vst [vmem:[#allocation70_spill] sm:$0xff] %v5352_v23  ;;  %v5358_v25 = vpop.eup %3789 }
 0x38e   : > { %6244 = vst [vmem:[#allocation71_spill] sm:$0xff] %v5358_v25 }
 0x394   : > { %v1240_v41 = vpop.xlane.xlu0 %1239 }
 0x395   : > { %v5283_v45 = vmax.f32 %v5271_v40, %v1240_v41 }
 0x397   : > { %2458 = vst.msk [vmem:[#allocation3 + $0xf8] sm:$0xff] %vm662_vm1, %v5283_v45  ;;  %1526 = vperm.xlu1 %3714, %v5283_v45  }
 0x39b   : > { %2020 = vperm.xlu1 %3714, %v5308_v13  }
 0x39c   : > { %v1432_v30 = vpop.permute.xlu0 %1431 }
 0x39d   : > { %v1553_v56 = vsub.f32 %v6225_v37, %v1432_v30  ;;  %v1554_v55 = vsub.f32 %v6226_v15, %v1432_v30  ;;  %v6249_v15 = vld [vmem:[#allocation20_spill] sm:$0xff]  ;;  %v6270_v30 = vld [vmem:[#allocation42_spill] sm:$0xff] }
 0x39f   : > { %v1641_v26 = vmul.f32 1.442695, %v1553_v56  ;;  %v1643_v41 = vmul.f32 1.442695, %v1554_v55  ;;  %2030 = vperm.xlu1 %3714, %v5328_v46   ;;  %v5368_v56 = vpop.eup %3791 }
 0x3a0   : > { %v1437_v11 = vpop.permute.xlu0 %1436  ;;  %6248 = vst [vmem:[#allocation72_spill] sm:$0xff] %v5368_v56 }
 0x3a1   : > { %3803 = vpow2.f32 %v1641_v26  ;;  %v1555_v29 = vsub.f32 %v6237_v27, %v1437_v11  ;;  %v1556_v32 = vsub.f32 %v6238_v31, %v1437_v11  ;;  %v1237_v57 = vpop.xlane.xlu1 %1236  ;;  %v6252_v26 = vld [vmem:[#allocation24_spill] sm:$0xff] }
 0x3a2   : > { %3805 = vpow2.f32 %v1643_v41  ;;  %v5350_v21 = vmax.f32 %v5336_v51, %v1237_v57 }
 0x3a3   : > { %3807 = vpow2.f32 %v1351_v34  ;;  %v1645_v38 = vmul.f32 1.442695, %v1555_v29  ;;  %v1647_v14 = vmul.f32 1.442695, %v1556_v32  ;;  %2035 = vperm.xlu1 %3714, %v5333_v52   ;;  %v5372_v34 = vpop.eup %3793 }
 0x3a4   : > { %3809 = vpow2.f32 %v1353_v7  ;;  %2457 = vst.msk [vmem:[#allocation3 + $0xf0] sm:$0xff] %vm662_vm1, %v5350_v21  ;;  %1521 = vperm.xlu0 %3713, %v5350_v21   ;;  %v1442_v37 = vpop.permute.xlu0 %1441  ;;  %6251 = vst [vmem:[#allocation73_spill] sm:$0xff] %v5372_v34  ;;  %v5376_v44 = vpop.eup %3795 }
 0x3a5   : > { %3811 = vpow2.f32 %v1645_v38  ;;  %v1557_v55 = vsub.f32 %v6249_v15, %v1442_v37  ;;  %v1558_v10 = vsub.f32 %v6250_v50, %v1442_v37  ;;  %v1452_v49 = vpop.permute.xlu1 %1451  ;;  %6254 = vst [vmem:[#allocation75_spill] sm:$0xff] %v5376_v44  ;;  %v5379_v27 = vpop.eup %3797 }
 0x3a6   : > { %3813 = vpow2.f32 %v1647_v14  ;;  %v1561_v41 = vsub.f32 %v6252_v26, %v1452_v49  ;;  %v1562_v22 = vsub.f32 %v6253_v42, %v1452_v49  ;;  %6255 = vst [vmem:[#allocation16_spill] sm:$0xff] %v5379_v27  ;;  %v5382_v57 = vpop.eup %3799  ;;  %v6263_v42 = vld [vmem:[#allocation26_spill] sm:$0xff] }
 0x3a7   : > { %3815 = vpow2.f32 %v1355_v5  ;;  %v1649_v7 = vmul.f32 1.442695, %v1557_v55  ;;  %v1651_v11 = vmul.f32 1.442695, %v1558_v10  ;;  %2045 = vperm.xlu1 %3714, %v5343_v9   ;;  %6256 = vst [vmem:[#allocation17_spill] sm:$0xff] %v5382_v57  ;;  %v5386_v14 = vpop.eup %3801 }
 0x3a8   : > { %3817 = vpow2.f32 %v1359_v4  ;;  %v1657_v29 = vmul.f32 1.442695, %v1561_v41  ;;  %v1659_v31 = vmul.f32 1.442695, %v1562_v22  ;;  %2025 = vperm.xlu0 %3713, %v5324_v36   ;;  %v1447_v32 = vpop.permute.xlu0 %1446  ;;  %6259 = vst [vmem:[#allocation74_spill] sm:$0xff] %v5386_v14 }
 0x3a9   : > { %3819 = vpow2.f32 %v1649_v7  ;;  %v1559_v48 = vsub.f32 %v6257_v39, %v1447_v32  ;;  %v1560_v38 = vsub.f32 %v6258_v35, %v1447_v32  ;;  %v1477_v5 = vpop.permute.xlu1 %1476  ;;  %v6264_v7 = vld [vmem:[#allocation27_spill] sm:$0xff] }
 0x3aa   : > { %3821 = vpow2.f32 %v1651_v11  ;;  %v1571_v18 = vsub.f32 %v6260_v60, %v1477_v5  ;;  %v1572_v4 = vsub.f32 %v6261_v8, %v1477_v5  ;;  %v6266_v35 = vld [vmem:[#allocation39_spill] sm:$0xff] }
 0x3ab   : > { %v3804_v37 = vpop.eup %3803  ;;  %3823 = vpow2.f32 %v1657_v29  ;;  %v1653_v15 = vmul.f32 1.442695, %v1559_v48  ;;  %v1655_v55 = vmul.f32 1.442695, %v1560_v38  ;;  %2055 = vperm.xlu1 %3714, %v5352_v23   ;;  %v6265_v48 = vld [vmem:[#allocation38_spill] sm:$0xff] }
 0x3ac   : > { %v3806_v50 = vpop.eup %3805  ;;  %3825 = vpow2.f32 %v1659_v31  ;;  %v1677_v10 = vmul.f32 1.442695, %v1571_v18  ;;  %v1679_v49 = vmul.f32 1.442695, %v1572_v4  ;;  %2040 = vperm.xlu0 %3713, %v5338_v28   ;;  %v1457_v26 = vpop.permute.xlu0 %1456 }
 0x3ad   : > { %v5392_v41 = vpop.eup %3807  ;;  %3827 = vpow2.f32 %v1653_v15  ;;  %v1563_v22 = vsub.f32 %v6263_v42, %v1457_v26  ;;  %v1564_v11 = vsub.f32 %v6264_v7, %v1457_v26  ;;  %v1487_v32 = vpop.permute.xlu1 %1486  ;;  %v5396_v29 = vadd.f32 %v3806_v50, %v3804_v37 }
 0x3ae   : > { %6262 = vst [vmem:[#allocation76_spill] sm:$0xff] %v5392_v41  ;;  %v5398_v39 = vpop.eup %3809  ;;  %3829 = vpow2.f32 %v1655_v55  ;;  %v1575_v31 = vsub.f32 %v6265_v48, %v1487_v32  ;;  %v1576_v38 = vsub.f32 %v6266_v35, %v1487_v32  ;;  %v6268_v55 = vld [vmem:[#allocation28_spill] sm:$0xff]  ;;  %v6269_v32 = vld [vmem:[#allocation29_spill] sm:$0xff] }
 0x3af   : > { %v3812_v5 = vpop.eup %3811  ;;  %3831 = vpow2.f32 %v1677_v10  ;;  %v1661_v60 = vmul.f32 1.442695, %v1563_v22  ;;  %v1663_v18 = vmul.f32 1.442695, %v1564_v11  ;;  %2065 = vperm.xlu1 %3714, %v5368_v56  }
 0x3b0   : > { %v3814_v8 = vpop.eup %3813  ;;  %3833 = vpow2.f32 %v1679_v49  ;;  %v1685_v4 = vmul.f32 1.442695, %v1575_v31  ;;  %v1687_v15 = vmul.f32 1.442695, %v1576_v38  ;;  %2050 = vperm.xlu0 %3713, %v5347_v2   ;;  %v1462_v26 = vpop.permute.xlu0 %1461  ;;  %v2182_v42 = vpack.c.bf16 %v3812_v5, %v3804_v37  ;;  %v6271_v31 = vld [vmem:[#allocation43_spill] sm:$0xff] }
 0x3b1   : > { %v5404_v7 = vpop.eup %3815  ;;  %3835 = vpow2.f32 %v1661_v60  ;;  %v1565_v48 = vsub.f32 %v6268_v55, %v1462_v26  ;;  %v1566_v35 = vsub.f32 %v6269_v32, %v1462_v26  ;;  %v1497_v10 = vpop.permute.xlu1 %1496  ;;  %v2183_v22 = vpack.c.bf16 %v3814_v8, %v3806_v50  ;;  %v6273_v55 = vld [vmem:[#allocation31_spill] sm:$0xff] }
 0x3b2   : > { %6267 = vst [vmem:[#allocation77_spill] sm:$0xff] %v5404_v7  ;;  %v5408_v11 = vpop.eup %3817  ;;  %3837 = vpow2.f32 %v1663_v18  ;;  %v1579_v49 = vsub.f32 %v6270_v30, %v1497_v10  ;;  %v1580_v38 = vsub.f32 %v6271_v31, %v1497_v10  ;;  %v5412_v19 = vadd.f32 %v3814_v8, %v3812_v5  ;;  %v6272_v5 = vld [vmem:[#allocation30_spill] sm:$0xff] }
 0x3b3   : > { %v3820_v56 = vpop.eup %3819  ;;  %3839 = vpow2.f32 %v1685_v4  ;;  %v1665_v37 = vmul.f32 1.442695, %v1565_v48  ;;  %v1667_v23 = vmul.f32 1.442695, %v1566_v35  ;;  %2282 = vmatprep.mubr.bf16.mxu0 %v2183_v22  ;;  %2075 = vperm.xlu1 %3714, %v5376_v44   ;;  %v6274_v10 = vld [vmem:[#allocation46_spill] sm:$0xff]  ;;  %v6275_v22 = vld [vmem:[#allocation47_spill] sm:$0xff] }
 0x3b4   : > { %v3822_v60 = vpop.eup %3821  ;;  %3841 = vpow2.f32 %v1687_v15  ;;  %v1693_v26 = vmul.f32 1.442695, %v1579_v49  ;;  %v1695_v50 = vmul.f32 1.442695, %v1580_v38  ;;  %2283 = vmatmul.mubr.bf16.gmra.mrb[56].mxu0 %v2182_v42  ;;  %2060 = vperm.xlu0 %3713, %v5358_v25   ;;  %v1467_v18 = vpop.permute.xlu0 %1466  ;;  %v6278_v25 = vld [vmem:[#allocation50_spill] sm:$0xff] }
 0x3b5   : > { %v5416_v30 = vpop.eup %3823  ;;  %3843 = vpow2.f32 %v1665_v37  ;;  %v1567_v8 = vsub.f32 %v6272_v5, %v1467_v18  ;;  %v1568_v4 = vsub.f32 %v6273_v55, %v1467_v18  ;;  %v1507_v48 = vpop.permute.xlu1 %1506  ;;  %v5420_v32 = vadd.f32 %v3822_v60, %v3820_v56 }
 0x3b6   : > { %v3826_v35 = vpop.eup %3825  ;;  %3845 = vpow2.f32 %v1667_v23  ;;  %v1583_v15 = vsub.f32 %v6274_v10, %v1507_v48  ;;  %v1584_v49 = vsub.f32 %v6275_v22, %v1507_v48  ;;  %v6276_v48 = vld [vmem:[#allocation32_spill] sm:$0xff] }
 0x3b7   : > { %v3828_v42 = vpop.eup %3827  ;;  %3847 = vpow2.f32 %v1693_v26  ;;  %v1669_v31 = vmul.f32 1.442695, %v1567_v8  ;;  %v1671_v38 = vmul.f32 1.442695, %v1568_v4  ;;  %2085 = vperm.xlu1 %3714, %v5382_v57   ;;  %v5426_v37 = vadd.f32 %v3826_v35, %v5416_v30  ;;  %v6277_v8 = vld [vmem:[#allocation33_spill] sm:$0xff] }
 0x3b8   : > { %v3830_v5 = vpop.eup %3829  ;;  %3849 = vpow2.f32 %v1695_v50  ;;  %v1701_v18 = vmul.f32 1.442695, %v1583_v15  ;;  %v1703_v55 = vmul.f32 1.442695, %v1584_v49  ;;  %2070 = vperm.xlu0 %3713, %v5372_v34   ;;  %v1472_v23 = vpop.permute.xlu0 %1471  ;;  %v2184_v44 = vpack.c.bf16 %v3828_v42, %v3820_v56  ;;  %v6279_v15 = vld [vmem:[#allocation51_spill] sm:$0xff] }
 0x3b9   : > { %v5429_v10 = vpop.eup %3831  ;;  %3851 = vpow2.f32 %v1669_v31  ;;  %v1569_v26 = vsub.f32 %v6276_v48, %v1472_v23  ;;  %v1570_v4 = vsub.f32 %v6277_v8, %v1472_v23  ;;  %v1517_v22 = vpop.permute.xlu1 %1516  ;;  %v2185_v57 = vpack.c.bf16 %v3830_v5, %v3822_v60  ;;  %v6281_v48 = vld [vmem:[#allocation37_spill] sm:$0xff] }
 0x3ba   : > { %v5433_v9 = vpop.eup %3833  ;;  %3853 = vpow2.f32 %v1671_v38  ;;  %v1587_v50 = vsub.f32 %v6278_v25, %v1517_v22  ;;  %v1588_v49 = vsub.f32 %v6279_v15, %v1517_v22  ;;  %v5437_v52 = vadd.f32 %v3830_v5, %v3828_v42  ;;  %v6282_v22 = vld [vmem:[#allocation56_spill] sm:$0xff] }
 0x3bb   : > { %v3836_v34 = vpop.eup %3835  ;;  %3855 = vpow2.f32 %v1701_v18  ;;  %v1673_v56 = vmul.f32 1.442695, %v1569_v26  ;;  %v1675_v2 = vmul.f32 1.442695, %v1570_v4  ;;  %2290 = vmatprep.mubr.bf16.mxu0 %v2185_v57  ;;  %2095 = vperm.xlu1 %3714, %v5392_v41   ;;  %v5442_v31 = vadd.f32 %v5433_v9, %v5429_v10  ;;  %v6280_v57 = vld [vmem:[#allocation36_spill] sm:$0xff] }
 0x3bc   : > { %v3838_v60 = vpop.eup %3837  ;;  %3857 = vpow2.f32 %v1703_v55  ;;  %v1709_v38 = vmul.f32 1.442695, %v1587_v50  ;;  %v1711_v23 = vmul.f32 1.442695, %v1588_v49  ;;  %2291 = vmatmul.mubr.bf16.gmra.mrb[60].mxu0 %v2184_v44  ;;  %2080 = vperm.xlu0 %3713, %v5379_v27   ;;  %v1482_v25 = vpop.permute.xlu0 %1481  ;;  %v2186_v42 = vpack.c.bf16 %v3836_v34, %v5416_v30  ;;  %v6283_v55 = vld [vmem:[#allocation57_spill] sm:$0xff] }
 0x3bd   : > { %v5446_v5 = vpop.eup %3839  ;;  %3859 = vpow2.f32 %v1673_v56  ;;  %v1573_v18 = vsub.f32 %v6280_v57, %v1482_v25  ;;  %v1574_v26 = vsub.f32 %v6281_v48, %v1482_v25  ;;  %v2187_v8 = vpack.c.bf16 %v3838_v60, %v3826_v35  ;;  %v6285_v25 = vld [vmem:[#allocation81_spill] sm:$0xff] }
 0x3be   : > { %v5450_v4 = vpop.eup %3841  ;;  %v6284_v50 = vsub.f32 %v6282_v22, %v6283_v55  ;;  %3861 = vpow2.f32 %v1675_v2  ;;  %v5455_v44 = vadd.f32 %v3838_v60, %v3836_v34  ;;  %v6286_v57 = vsub.f32 %v6285_v25, %v5150_v43  ;;  %v6287_v60 = vld [vmem:[#allocation40_spill] sm:$0xff]  ;;  %v6289_v25 = vld [vmem:[#allocation59_spill] sm:$0xff] }
 0x3bf   : > { %v5457_v49 = vpop.eup %3843  ;;  %3863 = vpow2.f32 %v1709_v38  ;;  %v1681_v30 = vmul.f32 1.442695, %v1573_v18  ;;  %v1683_v41 = vmul.f32 1.442695, %v1574_v26  ;;  %2298 = vmatprep.mubr.bf16.mxu0 %v2187_v8  ;;  %1985 = vperm.xlu1 %3714, %v5298_v53   ;;  %v5462_v35 = vadd.f32 %v5450_v4, %v5446_v5  ;;  %v6288_v18 = vld [vmem:[#allocation41_spill] sm:$0xff] }
 0x3c0   : > { %v1315_v15 = vmul.f32 1.442695, %v6284_v50  ;;  %v3846_v56 = vpop.eup %3845  ;;  %v1357_v48 = vmul.f32 1.442695, %v6286_v57  ;;  %3865 = vpow2.f32 %v1711_v23  ;;  %2090 = vperm.xlu0 %3713, %v5386_v14   ;;  %v1492_v2 = vpop.permute.xlu0 %1491  ;;  %v6290_v57 = vld [vmem:[#allocation61_spill] sm:$0xff] }
 0x3c1   : > { %v5468_v34 = vpop.eup %3847  ;;  %3867 = vpow2.f32 %v1681_v30  ;;  %v1577_v38 = vsub.f32 %v6287_v60, %v1492_v2  ;;  %v1578_v26 = vsub.f32 %v6288_v18, %v1492_v2  ;;  %v5473_v8 = vadd.f32 %v3846_v56, %v5457_v49  ;;  %v6292_v18 = vld [vmem:[#allocation44_spill] sm:$0xff] }
 0x3c2   : > { %v5475_v22 = vpop.eup %3849  ;;  %3869 = vpow2.f32 %v1683_v41  ;;  %v6291_v2 = vsub.f32 %v6289_v25, %v6290_v57  ;;  %v6295_v57 = vld [vmem:[#allocation60_spill] sm:$0xff] }
 0x3c3   : > { %v3852_v55 = vpop.eup %3851  ;;  %3871 = vpow2.f32 %v1315_v15  ;;  %v1689_v43 = vmul.f32 1.442695, %v1577_v38  ;;  %v1691_v23 = vmul.f32 1.442695, %v1578_v26  ;;  %2105 = vperm.xlu1 %3714, %v5404_v7   ;;  %v5480_v50 = vadd.f32 %v5475_v22, %v5468_v34  ;;  %v6293_v7 = vld [vmem:[#allocation45_spill] sm:$0xff] }
 0x3c4   : > { %v3854_v30 = vpop.eup %3853  ;;  %v1319_v60 = vmul.f32 1.442695, %v6291_v2  ;;  %3873 = vpow2.f32 %v1357_v48  ;;  %2299 = vmatmul.mubr.bf16.gmra.mrb[64].mxu0 %v2186_v42  ;;  %1980 = vperm.xlu0 %3713, %v5288_v17   ;;  %v1502_v41 = vpop.permute.xlu0 %1501  ;;  %v2188_v15 = vpack.c.bf16 %v3852_v55, %v5457_v49  ;;  %v6294_v42 = vld [vmem:[#allocation58_spill] sm:$0xff] }
 0x3c5   : > { %v5487_v38 = vpop.eup %3855  ;;  %3875 = vpow2.f32 %v1689_v43  ;;  %v1581_v26 = vsub.f32 %v6292_v18, %v1502_v41  ;;  %v1582_v14 = vsub.f32 %v6293_v7, %v1502_v41  ;;  %v2189_v27 = vpack.c.bf16 %v3854_v30, %v3846_v56  ;;  %v6297_v56 = vld [vmem:[#allocation85_spill] sm:$0xff] }
 0x3c6   : > { %v5491_v46 = vpop.eup %3857  ;;  %3877 = vpow2.f32 %v1691_v23  ;;  %v5493_v25 = vadd.f32 %v3854_v30, %v3852_v55  ;;  %v6296_v2 = vsub.f32 %v6294_v42, %v6295_v57  ;;  %v6298_v23 = vld [vmem:[#allocation86_spill] sm:$0xff]  ;;  %v6301_v42 = vld [vmem:[#allocation49_spill] sm:$0xff] }
 0x3c7   : > { %v3860_v48 = vpop.eup %3859  ;;  %v1697_v13 = vmul.f32 1.442695, %v1581_v26  ;;  %v1699_v49 = vmul.f32 1.442695, %v1582_v14  ;;  %2306 = vmatprep.mubr.bf16.mxu0 %v2189_v27  ;;  %1995 = vperm.xlu1 %3714, %v5313_v6   ;;  %v5501_v43 = vadd.f32 %v5491_v46, %v5487_v38  ;;  %3879 = vpow2.f32 %v1319_v60  ;;  %v6300_v27 = vld [vmem:[#allocation48_spill] sm:$0xff] }
 0x3c8   : > { %v1317_v28 = vmul.f32 1.442695, %v6296_v2  ;;  %v3862_v7 = vpop.eup %3861  ;;  %v6299_v55 = vsub.f32 %v6297_v56, %v6298_v23  ;;  %2100 = vperm.xlu0 %3713, %v5398_v39   ;;  %v1512_v41 = vpop.permute.xlu0 %1511  ;;  %v2190_v18 = vpack.c.bf16 %v5429_v10, %v3860_v48 }
 0x3c9   : > { %v3864_v26 = vpop.eup %3863  ;;  %3881 = vpow2.f32 %v1697_v13  ;;  %v1585_v14 = vsub.f32 %v6300_v27, %v1512_v41  ;;  %v1586_v57 = vsub.f32 %v6301_v42, %v1512_v41  ;;  %v2191_v2 = vpack.c.bf16 %v5433_v9, %v3862_v7 }
 0x3ca   : > { %v1363_v30 = vmul.f32 1.442695, %v6299_v55  ;;  %v3866_v36 = vpop.eup %3865  ;;  %3883 = vpow2.f32 %v1699_v49  ;;  %v5511_v60 = vadd.f32 %v3862_v7, %v3860_v48  ;;  %v6302_v49 = vld [vmem:[#allocation84_spill] sm:$0xff] }
 0x3cb   : > { %v3868_v6 = vpop.eup %3867  ;;  %3885 = vpow2.f32 %v1317_v28  ;;  %v1705_v56 = vmul.f32 1.442695, %v1585_v14  ;;  %v1707_v23 = vmul.f32 1.442695, %v1586_v57  ;;  %2115 = vperm.xlu1 %3714, %v5408_v11   ;;  %v5514_v55 = vadd.f32 %v3866_v36, %v3864_v26 }
 0x3cc   : > { %v3870_v10 = vpop.eup %3869  ;;  %3887 = vpow2.f32 %v1363_v30  ;;  %2307 = vmatmul.mubr.bf16.gmra.mrb[68].mxu0 %v2188_v15  ;;  %1990 = vperm.xlu0 %3713, %v5303_v1   ;;  %v2192_v13 = vpack.c.bf16 %v5446_v5, %v3868_v6  ;;  %v6303_v48 = vsub.f32 %v6302_v49, %v5172_v54 }
 0x3cd   : > { %v5518_v9 = vpop.eup %3871  ;;  %3889 = vpow2.f32 %v1705_v56  ;;  %2314 = vmatprep.mubr.bf16.mxu0 %v2191_v2  ;;  %v2193_v28 = vpack.c.bf16 %v5450_v4, %v3870_v10  ;;  %v5524_v41 = vadd.f32 %v3870_v10, %v3868_v6 }
 0x3ce   : > { %v1361_v7 = vmul.f32 1.442695, %v6303_v48  ;;  %v5526_v27 = vpop.eup %3873  ;;  %3891 = vpow2.f32 %v1707_v23 }
 0x3cf   : > { %v3876_v15 = vpop.eup %3875  ;;  %2005 = vperm.xlu1 %3714, %v5518_v9  }
 0x3d0   : > { %v3878_v30 = vpop.eup %3877  ;;  %2110 = vperm.xlu0 %3713, %v5526_v27   ;;  %v2194_v5 = vpack.c.bf16 %v5468_v34, %v3876_v15  ;;  %3893 = vpow2.f32 %v1361_v7 }
 0x3d1   : > { %v2195_v54 = vpack.c.bf16 %v5475_v22, %v3878_v30  ;;  %v5532_v14 = vadd.f32 %v3878_v30, %v3876_v15  ;;  %v5534_v42 = vpop.eup %3879 }
 0x3d3   : > { %v3882_v6 = vpop.eup %3881  ;;  %2015 = vperm.xlu1 %3714, %v5534_v42  }
 0x3d4   : > { %v3884_v4 = vpop.eup %3883  ;;  %2315 = vmatmul.mubr.bf16.gmra.mrb[72].mxu0 %v2190_v18  ;;  %2000 = vperm.xlu0 %3713, %v5319_v62   ;;  %v2196_v57 = vpack.c.bf16 %v5487_v38, %v3882_v6 }
 0x3d5   : > { %v5539_v2 = vpop.eup %3885  ;;  %2322 = vmatprep.mubr.bf16.mxu0 %v2193_v28  ;;  %v2197_v34 = vpack.c.bf16 %v5491_v46, %v3884_v4  ;;  %v5542_v56 = vadd.f32 %v3884_v4, %v3882_v6 }
 0x3d6   : > { %v5544_v22 = vpop.eup %3887 }
 0x3d7   : > { %v3890_v23 = vpop.eup %3889  ;;  %2125 = vperm.xlu1 %3714, %v5544_v22  }
 0x3d8   : > { %v3892_v10 = vpop.eup %3891  ;;  %2010 = vperm.xlu0 %3713, %v5539_v2   ;;  %v2198_v18 = vpack.c.bf16 %v3864_v26, %v3890_v23 }
 0x3d9   : > { %v2199_v49 = vpack.c.bf16 %v3866_v36, %v3892_v10  ;;  %v5548_v48 = vadd.f32 %v3892_v10, %v3890_v23  ;;  %v6307_v36 = vld [vmem:[#allocation53_spill] sm:$0xff] }
 0x3da   : > { %v5550_v38 = vpop.eup %3893 }
 0x3dc   : > { %2323 = vmatmul.mubr.bf16.gmra.mrb[76].mxu0 %v2192_v13  ;;  %2120 = vperm.xlu0 %3713, %v5550_v38  }
 0x3dd   : > { %2330 = vmatprep.mubr.bf16.mxu0 %v2195_v54 }
 0x3e4   : > { %2331 = vmatmul.mubr.bf16.gmra.mrb[80].mxu0 %v2194_v5 }
 0x3e5   : > { %2338 = vmatprep.mubr.bf16.mxu0 %v2197_v34 }
 0x3ec   : > { %2339 = vmatmul.mubr.bf16.gmra.mrb[84].mxu0 %v2196_v57 }
 0x3ed   : > { %2346 = vmatprep.mubr.bf16.mxu0 %v2199_v49 }
 0x3f4   : > { %2347 = vmatmul.mubr.bf16.gmra.mrb[88].mxu0 %v2198_v18  ;;  %v6308_v18 = vsub.f32 %v5271_v40, %v5283_v45 }
 0x3fb   : > { %1789 = vadd.xlane.f32.xlu0 %v5207_v59  ;;  %1786 = vadd.xlane.f32.xlu1 %v5203_v33  ;;  %v6304_v59 = vld [vmem:[#allocation54_spill] sm:$0xff] }
 0x3ff   : > { %1795 = vadd.xlane.f32.xlu0 %v5215_v3  ;;  %1792 = vadd.xlane.f32.xlu1 %v5211_v63  ;;  %v6305_v3 = vld [vmem:[#allocation55_spill] sm:$0xff] }
 0x403   : > { %1801 = vadd.xlane.f32.xlu0 %v5223_v0  ;;  %1798 = vadd.xlane.f32.xlu1 %v5219_v61 }
 0x407   : > { %1807 = vadd.xlane.f32.xlu0 %v5231_v16  ;;  %1804 = vadd.xlane.f32.xlu1 %v5227_v12 }
 0x40b   : > { %1810 = vadd.xlane.f32.xlu0 %v5233_v24  ;;  %1813 = vadd.xlane.f32.xlu1 %v5235_v47 }
 0x40f   : > { %1816 = vadd.xlane.f32.xlu0 %v5237_v20  ;;  %1822 = vadd.xlane.f32.xlu1 %v5396_v29 }
 0x413   : > { %1819 = vadd.xlane.f32.xlu0 %v5239_v58  ;;  %1828 = vadd.xlane.f32.xlu1 %v5420_v32  ;;  %v6306_v58 = vld [vmem:[#allocation52_spill] sm:$0xff] }
 0x416   : > { %v1527_v33 = vpop.permute.xlu1 %1526 }
 0x417   : > { %v1591_v63 = vsub.f32 %v6304_v59, %v1527_v33  ;;  %v1592_v61 = vsub.f32 %v6305_v3, %v1527_v33  ;;  %1825 = vadd.xlane.f32.xlu0 %v5412_v19  ;;  %1834 = vadd.xlane.f32.xlu1 %v5426_v37 }
 0x419   : > { %v1717_v0 = vmul.f32 1.442695, %v1591_v63  ;;  %v1719_v12 = vmul.f32 1.442695, %v1592_v61  ;;  %v1947_v61 = vld [vmem:[#allocation5 + $0x8] sm:$0xff] }
 0x41a   : > { %v5571_v16 = vpop.permute.xlu1 %2020 }
 0x41b   : > { %3895 = vpow2.f32 %v1717_v0  ;;  %1831 = vadd.xlane.f32.xlu0 %v5437_v52  ;;  %1840 = vadd.xlane.f32.xlu1 %v5473_v8 }
 0x41c   : > { %3897 = vpow2.f32 %v1719_v12 }
 0x41e   : > { %v5575_v24 = vpop.permute.xlu1 %2030 }
 0x41f   : > { %1837 = vadd.xlane.f32.xlu0 %v5455_v44  ;;  %1846 = vadd.xlane.f32.xlu1 %v5511_v60 }
 0x422   : > { %v5579_v47 = vpop.permute.xlu1 %2035 }
 0x423   : > { %1843 = vadd.xlane.f32.xlu0 %v5493_v25  ;;  %1852 = vadd.xlane.f32.xlu1 %v5524_v41  ;;  %v1522_v20 = vpop.permute.xlu0 %1521 }
 0x424   : > { %v1589_v19 = vsub.f32 %v6306_v58, %v1522_v20  ;;  %v1590_v46 = vsub.f32 %v6307_v36, %v1522_v20 }
 0x425   : > { %v3896_v52 = vpop.eup %3895 }
 0x426   : > { %v3898_v29 = vpop.eup %3897  ;;  %v1713_v32 = vmul.f32 1.442695, %v1589_v19  ;;  %v1715_v37 = vmul.f32 1.442695, %v1590_v46  ;;  %v5585_v8 = vpop.permute.xlu1 %2045  ;;  %v1946_v46 = vld [vmem:[#allocation5] sm:$0xff] }
 0x427   : > { %1849 = vadd.xlane.f32.xlu0 %v5442_v31  ;;  %1858 = vadd.xlane.f32.xlu1 %v5532_v14  ;;  %v5589_v44 = vpop.permute.xlu0 %2025  ;;  %v1878_v25 = vadd.f32 %v3898_v29, %v3896_v52 }
 0x428   : > { %3899 = vpow2.f32 %v1713_v32 }
 0x429   : > { %3901 = vpow2.f32 %v1715_v37 }
 0x42a   : > { %v5591_v26 = vpop.permute.xlu1 %2055 }
 0x42b   : > { %1855 = vadd.xlane.f32.xlu0 %v5462_v35  ;;  %1864 = vadd.xlane.f32.xlu1 %v5542_v56  ;;  %v5595_v60 = vpop.permute.xlu0 %2040 }
 0x42e   : > { %v3415_v13 = vpop.f32.mrb[32].mxu0  ;;  %v5597_v7 = vpop.permute.xlu1 %2065 }
 0x42f   : > { %v3416_v28 = vpop.f32.mrb[33].mxu0  ;;  %1861 = vadd.xlane.f32.xlu0 %v5480_v50  ;;  %1870 = vadd.xlane.f32.xlu1 %v5548_v48  ;;  %v5601_v31 = vpop.permute.xlu0 %2050 }
 0x430   : > { %v3417_v41 = vadd.f32 %v3416_v28, %v3415_v13  ;;  %v3418_v15 = vpop.f32.mrb[34].mxu0  ;;  %v1949_v28 = vld [vmem:[#allocation5 + $0x18] sm:$0xff] }
 0x431   : > { %v3419_v30 = vpop.f32.mrb[35].mxu0 }
 0x432   : > { %v3900_v5 = vpop.eup %3899  ;;  %v3420_v54 = vadd.f32 %v3419_v30, %v3418_v15  ;;  %v5603_v35 = vpop.permute.xlu1 %2075  ;;  %v2750_v15 = vld [vmem:[%s6013_s5] sm:$0xff]  ;;  %v2751_v30 = vld [vmem:[%s6013_s5 + $0x8] sm:$0xff] }
 0x433   : > { %v3902_v14 = vpop.eup %3901  ;;  %1867 = vadd.xlane.f32.xlu0 %v5501_v43  ;;  %v5606_v6 = vpop.permute.xlu0 %2060  ;;  %v2200_v4 = vpack.c.bf16 %v3896_v52, %v3900_v5  ;;  %v1367_v43 = vmul.f32 1.442695, %v6308_v18  ;;  %v6309_v52 = vsub.f32 %v5336_v51, %v5350_v21 }
 0x434   : > { %v2201_v57 = vpack.c.bf16 %v3898_v29, %v3902_v14  ;;  %v1875_v34 = vadd.f32 %v3902_v14, %v3900_v5  ;;  %v2758_v5 = vpack.c.bf16 %v2751_v30, %v2750_v15  ;;  %v1953_v30 = vld [vmem:[#allocation5 + $0x38] sm:$0xff] }
 0x435   : > { %3903 = vpow2.f32 %v1367_v43  ;;  %v1365_v29 = vmul.f32 1.442695, %v6309_v52 }
 0x436   : > { %v3421_v50 = vpop.f32.mrb[36].mxu0  ;;  %2354 = vmatprep.mubr.bf16.mxu0 %v2201_v57  ;;  %1876 = vadd.xlane.f32.xlu1 %v1875_v34  ;;  %v5608_v56 = vpop.permute.xlu1 %2085 }
 0x437   : > { %v3422_v23 = vpop.f32.mrb[37].mxu0  ;;  %2355 = vmatmul.mubr.bf16.gmra.mrb[92].mxu0 %v2200_v4  ;;  %1873 = vadd.xlane.f32.xlu0 %v5514_v55  ;;  %v5611_v10 = vpop.permute.xlu0 %2070  ;;  %3905 = vpow2.f32 %v1365_v29 }
 0x438   : > { %v3423_v49 = vadd.f32 %v3422_v23, %v3421_v50  ;;  %v3424_v48 = vpop.f32.mrb[38].mxu0  ;;  %3632 = vmatprep.subr.msk.bf16.mxu1 %vm408_vm0, %v2758_v5  ;;  %v2827_v50 = vsel %vm408_vm0, %v2758_v5, 0  ;;  %3631 = vmatprep.subr.msk.bf16.mxu0 %vm408_vm0, %v2758_v5 }
 0x439   : > { %v3425_v33 = vpop.f32.mrb[39].mxu0  ;;  %3615 = vmatpush3.bf16.xpose.msra.mxu1 %v2827_v50  ;;  %3572 = vmatpush3.bf16.xpose.msra.mxu0 %v2827_v50 }
 0x43a   : > { %v3426_v59 = vadd.f32 %v3425_v33, %v3424_v48  ;;  %v5616_v63 = vpop.permute.xlu1 %2095  ;;  %v1948_v48 = vld [vmem:[#allocation5 + $0x10] sm:$0xff] }
 0x43b   : > { %1879 = vadd.xlane.f32.xlu0 %v1878_v25  ;;  %v5618_v3 = vpop.permute.xlu0 %2080 }
 0x43e   : > { %v3427_v0 = vpop.f32.mrb[40].mxu0  ;;  %v1986_v12 = vpop.permute.xlu1 %1985 }
 0x43f   : > { %v3428_v55 = vpop.f32.mrb[41].mxu0  ;;  %v2139_v20 = vmul.f32 %v1986_v12, %v1947_v61  ;;  %v5620_v58 = vpop.permute.xlu0 %2090 }
 0x440   : > { %v5622_v19 = vadd.f32 %v3428_v55, %v3427_v0  ;;  %v3430_v40 = vpop.f32.mrb[42].mxu0  ;;  %v1951_v55 = vld [vmem:[#allocation5 + $0x28] sm:$0xff] }
 0x441   : > { %v2364_v45 = vadd.f32 %v3420_v54, %v2139_v20  ;;  %v3431_v36 = vpop.f32.mrb[43].mxu0  ;;  %v5636_v54 = vpop.eup %3903  ;;  %v1954_v20 = vld [vmem:[#allocation5 + $0x40] sm:$0xff] }
 0x442   : > { %v3432_v32 = vadd.f32 %v3431_v36, %v3430_v40  ;;  %v5627_v37 = vpop.permute.xlu1 %2105 }
 0x443   : > { %2396 = vst.msk [vmem:[#allocation5 + $0x8] sm:$0xff] %vm408_vm0, %v2364_v45  ;;  %v1981_v25 = vpop.permute.xlu0 %1980 }
 0x444   : > { %v2138_v13 = vmul.f32 %v1981_v25, %v1946_v46  ;;  %v1955_v46 = vld [vmem:[#allocation5 + $0x48] sm:$0xff] }
 0x446   : > { %v2363_v51 = vadd.f32 %v3417_v41, %v2138_v13  ;;  %v3433_v21 = vpop.f32.mrb[44].mxu0  ;;  %v1996_v14 = vpop.permute.xlu1 %1995  ;;  %v2146_v13 = vmul.f32 %v5571_v16, %v1954_v20 }
 0x447   : > { %v3434_v4 = vpop.f32.mrb[45].mxu0  ;;  %v2141_v57 = vmul.f32 %v1996_v14, %v1949_v28  ;;  %2135 = vperm.xlu1 %3714, %v5636_v54   ;;  %v5639_v34 = vpop.permute.xlu0 %2100 }
 0x448   : > { %2395 = vst.msk [vmem:[#allocation5] sm:$0xff] %vm408_vm0, %v2363_v51  ;;  %v5644_v23 = vadd.f32 %v3434_v4, %v3433_v21  ;;  %v3436_v18 = vpop.f32.mrb[46].mxu0  ;;  %v2147_v21 = vmul.f32 %v5589_v44, %v1955_v46 }
 0x449   : > { %v2366_v41 = vadd.f32 %v3426_v59, %v2141_v57  ;;  %v3437_v43 = vpop.f32.mrb[47].mxu0  ;;  %v5652_v59 = vpop.eup %3905 }
 0x44a   : > { %v3438_v33 = vadd.f32 %v3437_v43, %v3436_v18  ;;  %v5647_v61 = vpop.permute.xlu1 %2115  ;;  %v1956_v43 = vld [vmem:[#allocation5 + $0x50] sm:$0xff] }
 0x44b   : > { %2398 = vst.msk [vmem:[#allocation5 + $0x18] sm:$0xff] %vm408_vm0, %v2366_v41  ;;  %v1991_v0 = vpop.permute.xlu0 %1990 }
 0x44c   : > { %v2140_v12 = vmul.f32 %v1991_v0, %v1948_v48  ;;  %v1957_v0 = vld [vmem:[#allocation5 + $0x58] sm:$0xff] }
 0x44e   : > { %v2365_v40 = vadd.f32 %v3423_v49, %v2140_v12  ;;  %v3439_v45 = vpop.f32.mrb[48].mxu0  ;;  %v2006_v36 = vpop.permute.xlu1 %2005  ;;  %v1950_v49 = vld [vmem:[#allocation5 + $0x20] sm:$0xff] }
 0x44f   : > { %v3440_v52 = vpop.f32.mrb[49].mxu0  ;;  %v2143_v29 = vmul.f32 %v2006_v36, %v1951_v55  ;;  %v5650_v25 = vpop.permute.xlu0 %2110 }
 0x450   : > { %2397 = vst.msk [vmem:[#allocation5 + $0x10] sm:$0xff] %vm408_vm0, %v2365_v40  ;;  %v3441_v28 = vadd.f32 %v3440_v52, %v3439_v45  ;;  %v3442_v15 = vpop.f32.mrb[50].mxu0  ;;  %v2752_v40 = vld [vmem:[%s6013_s5 + $0x10] sm:$0xff]  ;;  %v2753_v45 = vld [vmem:[%s6013_s5 + $0x18] sm:$0xff] }
 0x451   : > { %v2368_v5 = vadd.f32 %v3432_v32, %v2143_v29  ;;  %v3443_v51 = vpop.f32.mrb[51].mxu0  ;;  %2130 = vperm.xlu0 %3713, %v5652_v59   ;;  %v1952_v32 = vld [vmem:[#allocation5 + $0x30] sm:$0xff]  ;;  %v2759_v52 = vpack.c.bf16 %v2753_v45, %v2752_v40  ;;  %v2149_v29 = vmul.f32 %v5579_v47, %v1957_v0  ;;  %v2754_v47 = vld [vmem:[%s6013_s5 + $0x20] sm:$0xff]  ;;  %v1724_v45 = vld [vmem:[#allocation4 + $0x18] sm:$0xff] }
 0x452   : > { %v2371_v14 = vadd.f32 %v3441_v28, %v2146_v13  ;;  %v3444_v4 = vadd.f32 %v3443_v51, %v3442_v15  ;;  %v2016_v57 = vpop.permute.xlu1 %2015  ;;  %v1723_v0 = vld [vmem:[#allocation4 + $0x10] sm:$0xff] }
 0x453   : > { %2400 = vst.msk [vmem:[#allocation5 + $0x28] sm:$0xff] %vm408_vm0, %v2368_v5  ;;  %v2145_v50 = vmul.f32 %v2016_v57, %v1953_v30  ;;  %v2001_v18 = vpop.permute.xlu0 %2000  ;;  %3634 = vmatprep.subr.msk.bf16.mxu1 %vm408_vm0, %v2759_v52  ;;  %v2830_v5 = vsel %vm408_vm0, %v2759_v52, 0  ;;  %3633 = vmatprep.subr.msk.bf16.mxu0 %vm408_vm0, %v2759_v52  ;;  %v1722_v57 = vld [vmem:[#allocation4 + $0x8] sm:$0xff]  ;;  %v1755_v52 = vmul.f32 %v5303_v1, %v1723_v0 }
 0x454   : > { %2403 = vst.msk [vmem:[#allocation5 + $0x40] sm:$0xff] %vm408_vm0, %v2371_v14  ;;  %v2372_v16 = vadd.f32 %v3444_v4, %v2147_v21  ;;  %v2142_v41 = vmul.f32 %v2001_v18, %v1950_v49  ;;  %3616 = vmatpush3.bf16.xpose.msra.mxu1 %v2830_v5  ;;  %3574 = vmatpush3.bf16.xpose.msra.mxu0 %v2830_v5  ;;  %v1721_v14 = vld [vmem:[#allocation4] sm:$0xff]  ;;  %v1726_v5 = vld [vmem:[#allocation4 + $0x28] sm:$0xff] }
 0x455   : > { %v2370_v48 = vadd.f32 %v3438_v33, %v2145_v50  ;;  %v2148_v33 = vmul.f32 %v5575_v24, %v1956_v43  ;;  %v1958_v50 = vld [vmem:[#allocation5 + $0x60] sm:$0xff] }
 0x456   : > { %2404 = vst.msk [vmem:[#allocation5 + $0x48] sm:$0xff] %vm408_vm0, %v2372_v16  ;;  %v2367_v12 = vadd.f32 %v5622_v19, %v2142_v41  ;;  %v3445_v44 = vpop.f32.mrb[52].mxu0  ;;  %v5688_v21 = vpop.permute.xlu1 %2125  ;;  %v1753_v16 = vmul.f32 %v5288_v17, %v1721_v14  ;;  %v1959_v41 = vld [vmem:[#allocation5 + $0x68] sm:$0xff] }
 0x457   : > { %2402 = vst.msk [vmem:[#allocation5 + $0x38] sm:$0xff] %vm408_vm0, %v2370_v48  ;;  %v3446_v55 = vpop.f32.mrb[53].mxu0  ;;  %v2011_v20 = vpop.permute.xlu0 %2010 }
 0x458   : > { %2399 = vst.msk [vmem:[#allocation5 + $0x20] sm:$0xff] %vm408_vm0, %v2367_v12  ;;  %v3447_v36 = vadd.f32 %v3446_v55, %v3445_v44  ;;  %v3448_v46 = vpop.f32.mrb[54].mxu0  ;;  %v2144_v19 = vmul.f32 %v2011_v20, %v1952_v32  ;;  %v1754_v32 = vmul.f32 %v5298_v53, %v1722_v57  ;;  %v2150_v12 = vmul.f32 %v5595_v60, %v1958_v50 }
 0x459   : > { %v3449_v13 = vpop.f32.mrb[55].mxu0  ;;  %v1758_v57 = vmul.f32 %v5518_v9, %v1726_v5  ;;  %v2757_v9 = vld [vmem:[%s6013_s5 + $0x38] sm:$0xff]  ;;  %v1963_v5 = vld [vmem:[#allocation5 + $0x88] sm:$0xff] }
 0x45a   : > { %v2373_v28 = vadd.f32 %v3447_v36, %v2148_v33  ;;  %v2369_v15 = vadd.f32 %v5644_v23, %v2144_v19  ;;  %v3450_v30 = vadd.f32 %v3449_v13, %v3448_v46  ;;  %v2755_v23 = vld [vmem:[%s6013_s5 + $0x28] sm:$0xff]  ;;  %v2151_v46 = vmul.f32 %v5585_v8, %v1959_v41  ;;  %v1725_v13 = vld [vmem:[#allocation4 + $0x20] sm:$0xff] }
 0x45b   : > { %v2760_v51 = vpack.c.bf16 %v2755_v23, %v2754_v47  ;;  %v5690_v4 = vpop.permute.xlu0 %2120  ;;  %v1961_v47 = vld [vmem:[#allocation5 + $0x78] sm:$0xff]  ;;  %v1757_v23 = vmul.f32 %v5319_v62, %v1725_v13 }
 0x45c   : > { %2405 = vst.msk [vmem:[#allocation5 + $0x50] sm:$0xff] %vm408_vm0, %v2373_v28  ;;  %2401 = vst.msk [vmem:[#allocation5 + $0x30] sm:$0xff] %vm408_vm0, %v2369_v15  ;;  %v2374_v24 = vadd.f32 %v3450_v30, %v2149_v29  ;;  %v6310_v29 = vld [vmem:[#allocation64_spill] sm:$0xff] }
 0x45d   : > { %3636 = vmatprep.subr.msk.bf16.mxu1 %vm408_vm0, %v2760_v51  ;;  %v2833_v49 = vsel %vm408_vm0, %v2760_v51, 0  ;;  %3635 = vmatprep.subr.msk.bf16.mxu0 %vm408_vm0, %v2760_v51  ;;  %v1756_v60 = vmul.f32 %v6310_v29, %v1724_v45  ;;  %v1727_v51 = vld [vmem:[#allocation4 + $0x30] sm:$0xff] }
 0x45e   : > { %2406 = vst.msk [vmem:[#allocation5 + $0x58] sm:$0xff] %vm408_vm0, %v2374_v24  ;;  %3617 = vmatpush3.bf16.xpose.msra.mxu1 %v2833_v49  ;;  %3576 = vmatpush3.bf16.xpose.msra.mxu0 %v2833_v49  ;;  %v1960_v24 = vld [vmem:[#allocation5 + $0x70] sm:$0xff]  ;;  %v1759_v62 = vmul.f32 %v5539_v2, %v1727_v51 }
 0x45f   : > { %v2152_v50 = vmul.f32 %v5601_v31, %v1960_v24 }
 0x487   : > { %v3451_v18 = vpop.f32.mrb[56].mxu0 }
 0x488   : > { %v3452_v43 = vpop.f32.mrb[57].mxu0  ;;  %v1787_v48 = vpop.xlane.xlu1 %1786 }
 0x489   : > { %v3453_v44 = vadd.f32 %v3452_v43, %v3451_v18  ;;  %v1881_v55 = vadd.f32 %v1787_v48, %v1753_v16  ;;  %v3454_v20 = vpop.f32.mrb[58].mxu0  ;;  %v1790_v40 = vpop.xlane.xlu0 %1789  ;;  %v1728_v48 = vld [vmem:[#allocation4 + $0x38] sm:$0xff] }
 0x48a   : > { %v1882_v33 = vadd.f32 %v1790_v40, %v1754_v32  ;;  %v3455_v36 = vpop.f32.mrb[59].mxu0  ;;  %v2153_v32 = vmul.f32 %v5591_v26, %v1961_v47  ;;  %v1760_v2 = vmul.f32 %v5534_v42, %v1728_v48  ;;  %v6312_v47 = vld [vmem:[#allocation62_spill] sm:$0xff] }
 0x48b   : > { %v2375_v19 = vadd.f32 %v3453_v44, %v2150_v12  ;;  %1914 = vst.msk [vmem:[#allocation4] sm:$0xff] %vm662_vm1, %v1881_v55  ;;  %v3456_v17 = vadd.f32 %v3455_v36, %v3454_v20  ;;  %v2756_v55 = vld [vmem:[%s6013_s5 + $0x30] sm:$0xff] }
 0x48c   : > { %1915 = vst.msk [vmem:[#allocation4 + $0x8] sm:$0xff] %vm662_vm1, %v1882_v33  ;;  %v1793_v53 = vpop.xlane.xlu1 %1792  ;;  %v2761_v26 = vpack.c.bf16 %v2757_v9, %v2756_v55  ;;  %v1730_v33 = vld [vmem:[#allocation4 + $0x48] sm:$0xff]  ;;  %v1735_v9 = vld [vmem:[#allocation4 + $0x70] sm:$0xff] }
 0x48d   : > { %2407 = vst.msk [vmem:[#allocation5 + $0x60] sm:$0xff] %vm408_vm0, %v2375_v19  ;;  %v2376_v28 = vadd.f32 %v3456_v17, %v2151_v46  ;;  %v1883_v15 = vadd.f32 %v1793_v53, %v1755_v52  ;;  %v1796_v30 = vpop.xlane.xlu0 %1795  ;;  %v1729_v17 = vld [vmem:[#allocation4 + $0x40] sm:$0xff] }
 0x48e   : > { %v1884_v8 = vadd.f32 %v1796_v30, %v1756_v60  ;;  %3638 = vmatprep.subr.msk.bf16.mxu1 %vm408_vm0, %v2761_v26  ;;  %v2836_v52 = vsel %vm408_vm0, %v2761_v26, 0  ;;  %3637 = vmatprep.subr.msk.bf16.mxu0 %vm408_vm0, %v2761_v26  ;;  %v1962_v53 = vld [vmem:[#allocation5 + $0x80] sm:$0xff] }
 0x48f   : > { %2408 = vst.msk [vmem:[#allocation5 + $0x68] sm:$0xff] %vm408_vm0, %v2376_v28  ;;  %v3457_v1 = vpop.f32.mrb[60].mxu0  ;;  %3618 = vmatpush3.bf16.xpose.msra.mxu1 %v2836_v52  ;;  %3578 = vmatpush3.bf16.xpose.msra.mxu0 %v2836_v52  ;;  %v6311_v28 = vld [vmem:[#allocation63_spill] sm:$0xff]  ;;  %v1733_v30 = vld [vmem:[#allocation4 + $0x60] sm:$0xff] }
 0x490   : > { %1916 = vst.msk [vmem:[#allocation4 + $0x10] sm:$0xff] %vm662_vm1, %v1883_v15  ;;  %1917 = vst.msk [vmem:[#allocation4 + $0x18] sm:$0xff] %vm662_vm1, %v1884_v8  ;;  %v3458_v49 = vpop.f32.mrb[61].mxu0  ;;  %v1799_v14 = vpop.xlane.xlu1 %1798  ;;  %v1762_v15 = vmul.f32 %v6311_v28, %v1730_v33 }
 0x491   : > { %v3459_v18 = vadd.f32 %v3458_v49, %v3457_v1  ;;  %v1885_v16 = vadd.f32 %v1799_v14, %v1757_v23  ;;  %v3460_v41 = vpop.f32.mrb[62].mxu0  ;;  %v1802_v43 = vpop.xlane.xlu0 %1801  ;;  %v1761_v1 = vmul.f32 %v6312_v47, %v1729_v17  ;;  %v2154_v23 = vmul.f32 %v5606_v6, %v1962_v53  ;;  %v6315_v17 = vld [vmem:[#allocation69_spill] sm:$0xff]  ;;  %v1737_v53 = vld [vmem:[#allocation4 + $0x80] sm:$0xff] }
 0x492   : > { %v2494_v0 = vld [vmem:[#allocation4] sm:$0xff]  ;;  %v1886_v12 = vadd.f32 %v1802_v43, %v1758_v57  ;;  %v3461_v44 = vpop.f32.mrb[63].mxu0  ;;  %v6313_v43 = vld [vmem:[#allocation66_spill] sm:$0xff]  ;;  %v1767_v52 = vmul.f32 %v6315_v17, %v1735_v9 }
 0x493   : > { %3907 = vrcp.f32 %v2494_v0  ;;  %v2495_v31 = vld [vmem:[#allocation4 + $0x8] sm:$0xff]  ;;  %v2377_v20 = vadd.f32 %v3459_v18, %v2152_v50  ;;  %1918 = vst.msk [vmem:[#allocation4 + $0x20] sm:$0xff] %vm662_vm1, %v1885_v16  ;;  %v3462_v40 = vadd.f32 %v3461_v44, %v3460_v41  ;;  %v1731_v50 = vld [vmem:[#allocation4 + $0x50] sm:$0xff]  ;;  %v1765_v48 = vmul.f32 %v6313_v43, %v1733_v30  ;;  %v1966_v9 = vld [vmem:[#allocation5 + $0xa0] sm:$0xff] }
 0x494   : > { %3909 = vrcp.f32 %v2495_v31  ;;  %1919 = vst.msk [vmem:[#allocation4 + $0x28] sm:$0xff] %vm662_vm1, %v1886_v12  ;;  %v1805_v45 = vpop.xlane.xlu1 %1804 }
 0x495   : > { %2409 = vst.msk [vmem:[#allocation5 + $0x70] sm:$0xff] %vm408_vm0, %v2377_v20  ;;  %v2378_v36 = vadd.f32 %v3462_v40, %v2153_v32  ;;  %v1887_v46 = vadd.f32 %v1805_v45, %v1759_v62  ;;  %v1808_v19 = vpop.xlane.xlu0 %1807  ;;  %v2155_v32 = vmul.f32 %v5597_v7, %v1963_v5  ;;  %v6314_v62 = vld [vmem:[#allocation65_spill] sm:$0xff]  ;;  %v1732_v7 = vld [vmem:[#allocation4 + $0x58] sm:$0xff] }
 0x496   : > { %v1888_v60 = vadd.f32 %v1808_v19, %v1760_v2  ;;  %v1763_v55 = vmul.f32 %v6314_v62, %v1731_v50  ;;  %v1964_v2 = vld [vmem:[#allocation5 + $0x90] sm:$0xff]  ;;  %v1736_v62 = vld [vmem:[#allocation4 + $0x78] sm:$0xff] }
 0x497   : > { %v2496_v29 = vld [vmem:[#allocation4 + $0x10] sm:$0xff]  ;;  %v2497_v42 = vld [vmem:[#allocation4 + $0x18] sm:$0xff]  ;;  %2410 = vst.msk [vmem:[#allocation5 + $0x78] sm:$0xff] %vm408_vm0, %v2378_v36  ;;  %v3463_v13 = vpop.f32.mrb[64].mxu0  ;;  %v2156_v30 = vmul.f32 %v5611_v10, %v1964_v2  ;;  %v1967_v2 = vld [vmem:[#allocation5 + $0xa8] sm:$0xff] }
 0x498   : > { %3911 = vrcp.f32 %v2496_v29  ;;  %1920 = vst.msk [vmem:[#allocation4 + $0x30] sm:$0xff] %vm662_vm1, %v1887_v46  ;;  %1921 = vst.msk [vmem:[#allocation4 + $0x38] sm:$0xff] %vm662_vm1, %v1888_v60  ;;  %v3464_v24 = vpop.f32.mrb[65].mxu0  ;;  %v1814_v8 = vpop.xlane.xlu1 %1813  ;;  %v1965_v29 = vld [vmem:[#allocation5 + $0x98] sm:$0xff] }
 0x499   : > { %3913 = vrcp.f32 %v2497_v42  ;;  %v3465_v51 = vadd.f32 %v3464_v24, %v3463_v13  ;;  %v1890_v49 = vadd.f32 %v1814_v8, %v1762_v15  ;;  %v3466_v14 = vpop.f32.mrb[66].mxu0  ;;  %v1811_v57 = vpop.xlane.xlu0 %1810  ;;  %v6316_v13 = vld [vmem:[#allocation67_spill] sm:$0xff] }
 0x49a   : > { %v2498_v18 = vld [vmem:[#allocation4 + $0x20] sm:$0xff]  ;;  %v1889_v16 = vadd.f32 %v1811_v57, %v1761_v1  ;;  %v3467_v41 = vpop.f32.mrb[67].mxu0  ;;  %v1764_v28 = vmul.f32 %v6316_v13, %v1732_v7  ;;  %v1734_v1 = vld [vmem:[#allocation4 + $0x68] sm:$0xff]  ;;  %v6317_v57 = vld [vmem:[#allocation71_spill] sm:$0xff] }
 0x49b   : > { %3915 = vrcp.f32 %v2498_v18  ;;  %v2499_v0 = vld [vmem:[#allocation4 + $0x28] sm:$0xff]  ;;  %v2379_v12 = vadd.f32 %v3465_v51, %v2154_v23  ;;  %1923 = vst.msk [vmem:[#allocation4 + $0x48] sm:$0xff] %vm662_vm1, %v1890_v49  ;;  %v3468_v44 = vadd.f32 %v3467_v41, %v3466_v14  ;;  %v1769_v50 = vmul.f32 %v6317_v57, %v1737_v53 }
 0x49c   : > { %3917 = vrcp.f32 %v2499_v0  ;;  %1922 = vst.msk [vmem:[#allocation4 + $0x40] sm:$0xff] %vm662_vm1, %v1889_v16  ;;  %v1823_v6 = vpop.xlane.xlu1 %1822  ;;  %v2157_v18 = vmul.f32 %v5603_v35, %v1965_v29  ;;  %v1739_v0 = vld [vmem:[#allocation4 + $0x90] sm:$0xff]  ;;  %v2158_v53 = vmul.f32 %v5618_v3, %v1966_v9 }
 0x49d   : > { %v3908_v31 = vpop.eup %3907  ;;  %2411 = vst.msk [vmem:[#allocation5 + $0x80] sm:$0xff] %vm408_vm0, %v2379_v12  ;;  %v2380_v20 = vadd.f32 %v3468_v44, %v2155_v32  ;;  %v1893_v40 = vadd.f32 %v1823_v6, %v1765_v48  ;;  %v1817_v26 = vpop.xlane.xlu0 %1816  ;;  %v6318_v48 = vld [vmem:[#allocation68_spill] sm:$0xff] }
 0x49e   : > { %v3910_v45 = vpop.eup %3909  ;;  %v1891_v36 = vadd.f32 %v1817_v26, %v1763_v55  ;;  %2560 = vperm.xlu0 %3713, %v3908_v31   ;;  %v1766_v32 = vmul.f32 %v6318_v48, %v1734_v1  ;;  %v6319_v26 = vld [vmem:[#allocation73_spill] sm:$0xff]  ;;  %v1968_v48 = vld [vmem:[#allocation5 + $0xb0] sm:$0xff] }
 0x49f   : > { %v2500_v33 = vld [vmem:[#allocation4 + $0x30] sm:$0xff]  ;;  %v2501_v46 = vld [vmem:[#allocation4 + $0x38] sm:$0xff]  ;;  %2412 = vst.msk [vmem:[#allocation5 + $0x88] sm:$0xff] %vm408_vm0, %v2380_v20  ;;  %v3469_v19 = vpop.f32.mrb[68].mxu0  ;;  %2565 = vperm.xlu1 %3714, %v3910_v45   ;;  %v1771_v7 = vmul.f32 %v6319_v26, %v1739_v0  ;;  %v1741_v45 = vld [vmem:[#allocation4 + $0xa0] sm:$0xff]  ;;  %v2160_v26 = vmul.f32 %v5620_v58, %v1968_v48 }
 0x4a0   : > { %3919 = vrcp.f32 %v2500_v33  ;;  %1926 = vst.msk [vmem:[#allocation4 + $0x60] sm:$0xff] %vm662_vm1, %v1893_v40  ;;  %1924 = vst.msk [vmem:[#allocation4 + $0x50] sm:$0xff] %vm662_vm1, %v1891_v36  ;;  %v3470_v60 = vpop.f32.mrb[69].mxu0  ;;  %v1829_v42 = vpop.xlane.xlu1 %1828 }
 0x4a1   : > { %3921 = vrcp.f32 %v2501_v46  ;;  %v3471_v5 = vadd.f32 %v3470_v60, %v3469_v19  ;;  %v1895_v24 = vadd.f32 %v1829_v42, %v1767_v52  ;;  %v3472_v8 = vpop.f32.mrb[70].mxu0  ;;  %v1820_v47 = vpop.xlane.xlu0 %1819  ;;  %v6320_v19 = vld [vmem:[#allocation70_spill] sm:$0xff] }
 0x4a2   : > { %v3912_v15 = vpop.eup %3911  ;;  %v2503_v51 = vld [vmem:[#allocation4 + $0x48] sm:$0xff]  ;;  %v1892_v49 = vadd.f32 %v1820_v47, %v1764_v28  ;;  %v3473_v14 = vpop.f32.mrb[71].mxu0  ;;  %v1768_v17 = vmul.f32 %v6320_v19, %v1736_v62  ;;  %v2159_v47 = vmul.f32 %v5608_v56, %v1967_v2  ;;  %v1969_v62 = vld [vmem:[#allocation5 + $0xb8] sm:$0xff] }
 0x4a3   : > { %v3914_v23 = vpop.eup %3913  ;;  %2570 = vperm.xlu0 %3713, %v3912_v15   ;;  %3923 = vrcp.f32 %v2503_v51  ;;  %v2502_v16 = vld [vmem:[#allocation4 + $0x40] sm:$0xff]  ;;  %v2381_v41 = vadd.f32 %v3471_v5, %v2156_v30  ;;  %1928 = vst.msk [vmem:[#allocation4 + $0x70] sm:$0xff] %vm662_vm1, %v1895_v24  ;;  %v3474_v10 = vadd.f32 %v3473_v14, %v3472_v8  ;;  %v1738_v28 = vld [vmem:[#allocation4 + $0x88] sm:$0xff] }
 0x4a4   : > { %2575 = vperm.xlu1 %3714, %v3914_v23   ;;  %3925 = vrcp.f32 %v2502_v16  ;;  %1925 = vst.msk [vmem:[#allocation4 + $0x58] sm:$0xff] %vm662_vm1, %v1892_v49  ;;  %v1835_v43 = vpop.xlane.xlu1 %1834  ;;  %v6321_v24 = vld [vmem:[#allocation16_spill] sm:$0xff] }
 0x4a5   : > { %v3916_v12 = vpop.eup %3915  ;;  %2413 = vst.msk [vmem:[#allocation5 + $0x90] sm:$0xff] %vm408_vm0, %v2381_v41  ;;  %v2382_v44 = vadd.f32 %v3474_v10, %v2157_v18  ;;  %v1897_v6 = vadd.f32 %v1835_v43, %v1769_v50  ;;  %v1826_v35 = vpop.xlane.xlu0 %1825  ;;  %v1773_v8 = vmul.f32 %v6321_v24, %v1741_v45  ;;  %v6322_v14 = vld [vmem:[#allocation72_spill] sm:$0xff]  ;;  %v1743_v50 = vld [vmem:[#allocation4 + $0xb0] sm:$0xff]  ;;  %v1740_v10 = vld [vmem:[#allocation4 + $0x98] sm:$0xff] }
 0x4a6   : > { %v3918_v55 = vpop.eup %3917  ;;  %v1894_v31 = vadd.f32 %v1826_v35, %v1766_v32  ;;  %v1770_v57 = vmul.f32 %v6322_v14, %v1738_v28  ;;  %v1745_v35 = vld [vmem:[#allocation4 + $0xc0] sm:$0xff]  ;;  %v6325_v28 = vld [vmem:[#allocation17_spill] sm:$0xff] }
 0x4a7   : > { %2580 = vperm.xlu0 %3713, %v3916_v12   ;;  %v2504_v20 = vld [vmem:[#allocation4 + $0x50] sm:$0xff]  ;;  %2414 = vst.msk [vmem:[#allocation5 + $0x98] sm:$0xff] %vm408_vm0, %v2382_v44  ;;  %v3475_v40 = vpop.f32.mrb[72].mxu0  ;;  %v2506_v33 = vld [vmem:[#allocation4 + $0x60] sm:$0xff] }
 0x4a8   : > { %1930 = vst.msk [vmem:[#allocation4 + $0x80] sm:$0xff] %vm662_vm1, %v1897_v6  ;;  %2585 = vperm.xlu1 %3714, %v3918_v55   ;;  %3927 = vrcp.f32 %v2504_v20  ;;  %1927 = vst.msk [vmem:[#allocation4 + $0x68] sm:$0xff] %vm662_vm1, %v1894_v31  ;;  %v3476_v36 = vpop.f32.mrb[73].mxu0  ;;  %v1841_v46 = vpop.xlane.xlu1 %1840  ;;  %v6323_v44 = vld [vmem:[#allocation74_spill] sm:$0xff]  ;;  %v6324_v20 = vld [vmem:[#allocation75_spill] sm:$0xff] }
 0x4a9   : > { %v3477_v29 = vadd.f32 %v3476_v36, %v3475_v40  ;;  %v1899_v60 = vadd.f32 %v1841_v46, %v1771_v7  ;;  %v3478_v42 = vpop.f32.mrb[74].mxu0  ;;  %v1832_v13 = vpop.xlane.xlu0 %1831  ;;  %3929 = vrcp.f32 %v2506_v33  ;;  %v1775_v6 = vmul.f32 %v6323_v44, %v1743_v50  ;;  %v1742_v36 = vld [vmem:[#allocation4 + $0xa8] sm:$0xff]  ;;  %v1749_v14 = vld [vmem:[#allocation4 + $0xe0] sm:$0xff] }
 0x4aa   : > { %v3920_v52 = vpop.eup %3919  ;;  %v1896_v30 = vadd.f32 %v1832_v13, %v1768_v17  ;;  %v3479_v5 = vpop.f32.mrb[75].mxu0  ;;  %v2508_v3 = vld [vmem:[#allocation4 + $0x70] sm:$0xff]  ;;  %v1772_v40 = vmul.f32 %v6324_v20, %v1740_v10  ;;  %v1746_v44 = vld [vmem:[#allocation4 + $0xc8] sm:$0xff] }
 0x4ab   : > { %v3922_v15 = vpop.eup %3921  ;;  %2590 = vperm.xlu0 %3713, %v3920_v52   ;;  %v2505_v1 = vld [vmem:[#allocation4 + $0x58] sm:$0xff]  ;;  %v2383_v23 = vadd.f32 %v3477_v29, %v2158_v53  ;;  %1932 = vst.msk [vmem:[#allocation4 + $0x90] sm:$0xff] %vm662_vm1, %v1899_v60  ;;  %v3480_v51 = vadd.f32 %v3479_v5, %v3478_v42  ;;  %v1777_v52 = vmul.f32 %v5398_v39, %v1745_v35 }
 0x4ac   : > { %2595 = vperm.xlu1 %3714, %v3922_v15   ;;  %3931 = vrcp.f32 %v2505_v1  ;;  %1929 = vst.msk [vmem:[#allocation4 + $0x78] sm:$0xff] %vm662_vm1, %v1896_v30  ;;  %v1847_v49 = vpop.xlane.xlu1 %1846  ;;  %v2161_v53 = vmul.f32 %v5616_v63, %v1969_v62  ;;  %v1774_v15 = vmul.f32 %v6325_v28, %v1742_v36  ;;  %v1747_v30 = vld [vmem:[#allocation4 + $0xd0] sm:$0xff]  ;;  %v1970_v1 = vld [vmem:[#allocation5 + $0xc0] sm:$0xff]  ;;  %v1781_v62 = vmul.f32 %v5550_v38, %v1749_v14 }
 0x4ad   : > { %v3924_v18 = vpop.eup %3923  ;;  %2415 = vst.msk [vmem:[#allocation5 + $0xa0] sm:$0xff] %vm408_vm0, %v2383_v23  ;;  %v2384_v16 = vadd.f32 %v3480_v51, %v2159_v47  ;;  %v1901_v56 = vadd.f32 %v1847_v49, %v1773_v8  ;;  %v1838_v41 = vpop.xlane.xlu0 %1837  ;;  %3933 = vrcp.f32 %v2508_v3  ;;  %v1744_v8 = vld [vmem:[#allocation4 + $0xb8] sm:$0xff]  ;;  %v1779_v49 = vmul.f32 %v5526_v27, %v1747_v30 }
 0x4ae   : > { %v3926_v43 = vpop.eup %3925  ;;  %v1898_v32 = vadd.f32 %v1838_v41, %v1770_v57  ;;  %v1971_v57 = vld [vmem:[#allocation5 + $0xc8] sm:$0xff] }
 0x4af   : > { %v2507_v0 = vld [vmem:[#allocation4 + $0x68] sm:$0xff]  ;;  %2416 = vst.msk [vmem:[#allocation5 + $0xa8] sm:$0xff] %vm408_vm0, %v2384_v16  ;;  %v3481_v12 = vpop.f32.mrb[76].mxu0  ;;  %2600 = vperm.xlu0 %3713, %v3926_v43   ;;  %v2510_v55 = vld [vmem:[#allocation4 + $0x80] sm:$0xff]  ;;  %v2162_v43 = vmul.f32 %v5639_v34, %v1970_v1 }
 0x4b0   : > { %1934 = vst.msk [vmem:[#allocation4 + $0xa0] sm:$0xff] %vm662_vm1, %v1901_v56  ;;  %2605 = vperm.xlu1 %3714, %v3924_v18   ;;  %3935 = vrcp.f32 %v2507_v0  ;;  %1931 = vst.msk [vmem:[#allocation4 + $0x88] sm:$0xff] %vm662_vm1, %v1898_v32  ;;  %v3482_v9 = vpop.f32.mrb[77].mxu0  ;;  %v1853_v31 = vpop.xlane.xlu1 %1852  ;;  %v6326_v56 = vld [vmem:[#allocation76_spill] sm:$0xff] }
 0x4b1   : > { %v3483_v7 = vadd.f32 %v3482_v9, %v3481_v12  ;;  %v3484_v45 = vpop.f32.mrb[78].mxu0  ;;  %v1903_v2 = vadd.f32 %v1853_v31, %v1775_v6  ;;  %v1844_v33 = vpop.xlane.xlu0 %1843  ;;  %3937 = vrcp.f32 %v2510_v55  ;;  %v1776_v41 = vmul.f32 %v6326_v56, %v1744_v8 }
 0x4b2   : > { %v3928_v46 = vpop.eup %3927  ;;  %v1900_v19 = vadd.f32 %v1844_v33, %v1772_v40  ;;  %v3485_v17 = vpop.f32.mrb[79].mxu0  ;;  %v2512_v58 = vld [vmem:[#allocation4 + $0x90] sm:$0xff]  ;;  %v2163_v55 = vmul.f32 %v5627_v37, %v1971_v57  ;;  %v1748_v33 = vld [vmem:[#allocation4 + $0xd8] sm:$0xff] }
 0x4b3   : > { %v2509_v29 = vld [vmem:[#allocation4 + $0x78] sm:$0xff]  ;;  %v2385_v60 = vadd.f32 %v3483_v7, %v2160_v26  ;;  %1936 = vst.msk [vmem:[#allocation4 + $0xb0] sm:$0xff] %vm662_vm1, %v1903_v2  ;;  %v3486_v42 = vadd.f32 %v3485_v17, %v3484_v45  ;;  %2610 = vperm.xlu0 %3713, %v3928_v46   ;;  %v3930_v5 = vpop.eup %3929  ;;  %v6327_v26 = vld [vmem:[#allocation77_spill] sm:$0xff]  ;;  %v1972_v46 = vld [vmem:[#allocation5 + $0xd0] sm:$0xff] }
 0x4b4   : > { %3939 = vrcp.f32 %v2509_v29  ;;  %1933 = vst.msk [vmem:[#allocation4 + $0x98] sm:$0xff] %vm662_vm1, %v1900_v19  ;;  %v1859_v13 = vpop.xlane.xlu1 %1858  ;;  %v1778_v7 = vmul.f32 %v6327_v26, %v1746_v44  ;;  %v1973_v29 = vld [vmem:[#allocation5 + $0xd8] sm:$0xff]  ;;  %v2164_v28 = vmul.f32 %v5650_v25, %v1972_v46 }
 0x4b5   : > { %2417 = vst.msk [vmem:[#allocation5 + $0xb0] sm:$0xff] %vm408_vm0, %v2385_v60  ;;  %v2386_v39 = vadd.f32 %v3486_v42, %v2161_v53  ;;  %v1905_v63 = vadd.f32 %v1859_v13, %v1777_v52  ;;  %v1850_v24 = vpop.xlane.xlu0 %1849  ;;  %3941 = vrcp.f32 %v2512_v58  ;;  %v1751_v53 = vld [vmem:[#allocation4 + $0xf0] sm:$0xff]  ;;  %v1780_v58 = vmul.f32 %v5408_v11, %v1748_v33 }
 0x4b6   : > { %v3932_v47 = vpop.eup %3931  ;;  %v1902_v23 = vadd.f32 %v1850_v24, %v1774_v15  ;;  %v2165_v1 = vmul.f32 %v5647_v61, %v1973_v29  ;;  %v1752_v61 = vld [vmem:[#allocation4 + $0xf8] sm:$0xff] }
 0x4b7   : > { %v2511_v51 = vld [vmem:[#allocation4 + $0x88] sm:$0xff]  ;;  %2418 = vst.msk [vmem:[#allocation5 + $0xb8] sm:$0xff] %vm408_vm0, %v2386_v39  ;;  %v3487_v3 = vpop.f32.mrb[80].mxu0  ;;  %2620 = vperm.xlu0 %3713, %v3930_v5   ;;  %2615 = vperm.xlu1 %3714, %v3932_v47   ;;  %v2514_v50 = vld [vmem:[#allocation4 + $0xa0] sm:$0xff]  ;;  %v3934_v10 = vpop.eup %3933  ;;  %v1783_v47 = vmul.f32 %v5652_v59, %v1751_v53  ;;  %v1977_v53 = vld [vmem:[#allocation5 + $0xf8] sm:$0xff] }
 0x4b8   : > { %1938 = vst.msk [vmem:[#allocation4 + $0xc0] sm:$0xff] %vm662_vm1, %v1905_v63  ;;  %3943 = vrcp.f32 %v2511_v51  ;;  %1935 = vst.msk [vmem:[#allocation4 + $0xa8] sm:$0xff] %vm662_vm1, %v1902_v23  ;;  %v3488_v18 = vpop.f32.mrb[81].mxu0  ;;  %v1865_v16 = vpop.xlane.xlu1 %1864  ;;  %v1750_v39 = vld [vmem:[#allocation4 + $0xe8] sm:$0xff] }
 0x4b9   : > { %v3489_v48 = vadd.f32 %v3488_v18, %v3487_v3  ;;  %v3490_v32 = vpop.f32.mrb[82].mxu0  ;;  %v1907_v0 = vadd.f32 %v1865_v16, %v1779_v49  ;;  %v1856_v12 = vpop.xlane.xlu0 %1855  ;;  %3945 = vrcp.f32 %v2514_v50  ;;  %v1782_v14 = vmul.f32 %v5544_v22, %v1750_v39  ;;  %v1974_v16 = vld [vmem:[#allocation5 + $0xe0] sm:$0xff] }
 0x4ba   : > { %v3936_v6 = vpop.eup %3935  ;;  %v1904_v27 = vadd.f32 %v1856_v12, %v1776_v41  ;;  %v3491_v35 = vpop.f32.mrb[83].mxu0  ;;  %v2516_v34 = vld [vmem:[#allocation4 + $0xb0] sm:$0xff]  ;;  %v2166_v12 = vmul.f32 %v5690_v4, %v1974_v16 }
 0x4bb   : > { %v2513_v9 = vld [vmem:[#allocation4 + $0x98] sm:$0xff]  ;;  %v2387_v31 = vadd.f32 %v3489_v48, %v2162_v43  ;;  %1940 = vst.msk [vmem:[#allocation4 + $0xd0] sm:$0xff] %vm662_vm1, %v1907_v0  ;;  %v3492_v20 = vadd.f32 %v3491_v35, %v3490_v32  ;;  %2630 = vperm.xlu0 %3713, %v3934_v10   ;;  %2625 = vperm.xlu1 %3714, %v3936_v6   ;;  %v3938_v45 = vpop.eup %3937  ;;  %v1975_v43 = vld [vmem:[#allocation5 + $0xe8] sm:$0xff] }
 0x4bc   : > { %3947 = vrcp.f32 %v2513_v9  ;;  %1937 = vst.msk [vmem:[#allocation4 + $0xb8] sm:$0xff] %vm662_vm1, %v1904_v27  ;;  %v1871_v40 = vpop.xlane.xlu1 %1870  ;;  %v1784_v32 = vmul.f32 %v5636_v54, %v1752_v61  ;;  %v2167_v9 = vmul.f32 %v5688_v21, %v1975_v43  ;;  %v2468_v43 = vld [vmem:[#allocation5 + $0x30] sm:$0xff] }
 0x4bd   : > { %2419 = vst.msk [vmem:[#allocation5 + $0xc0] sm:$0xff] %vm408_vm0, %v2387_v31  ;;  %v2388_v38 = vadd.f32 %v3492_v20, %v2163_v55  ;;  %v1909_v37 = vadd.f32 %v1871_v40, %v1781_v62  ;;  %v1862_v2 = vpop.xlane.xlu0 %1861  ;;  %3949 = vrcp.f32 %v2516_v34 }
 0x4be   : > { %v3940_v36 = vpop.eup %3939  ;;  %v1906_v19 = vadd.f32 %v1862_v2, %v1778_v7 }
 0x4bf   : > { %v2515_v17 = vld [vmem:[#allocation4 + $0xa8] sm:$0xff]  ;;  %2420 = vst.msk [vmem:[#allocation5 + $0xc8] sm:$0xff] %vm408_vm0, %v2388_v38  ;;  %v3493_v52 = vpop.f32.mrb[84].mxu0  ;;  %2640 = vperm.xlu0 %3713, %v3938_v45   ;;  %2635 = vperm.xlu1 %3714, %v3940_v36   ;;  %v2518_v60 = vld [vmem:[#allocation4 + $0xc0] sm:$0xff]  ;;  %v3942_v13 = vpop.eup %3941 }
 0x4c0   : > { %1942 = vst.msk [vmem:[#allocation4 + $0xe0] sm:$0xff] %vm662_vm1, %v1909_v37  ;;  %3951 = vrcp.f32 %v2515_v17  ;;  %1939 = vst.msk [vmem:[#allocation4 + $0xc8] sm:$0xff] %vm662_vm1, %v1906_v19  ;;  %v3494_v42 = vpop.f32.mrb[85].mxu0  ;;  %v1976_v19 = vld [vmem:[#allocation5 + $0xf0] sm:$0xff] }
 0x4c1   : > { %v3495_v15 = vadd.f32 %v3494_v42, %v3493_v52  ;;  %v3496_v30 = vpop.f32.mrb[86].mxu0  ;;  %v1868_v5 = vpop.xlane.xlu0 %1867  ;;  %3953 = vrcp.f32 %v2518_v60 }
 0x4c2   : > { %v3944_v63 = vpop.eup %3943  ;;  %v1908_v24 = vadd.f32 %v1868_v5, %v1780_v58  ;;  %v3497_v8 = vpop.f32.mrb[87].mxu0  ;;  %v2520_v11 = vld [vmem:[#allocation4 + $0xd0] sm:$0xff] }
 0x4c3   : > { %v2517_v23 = vld [vmem:[#allocation4 + $0xb8] sm:$0xff]  ;;  %v2389_v51 = vadd.f32 %v3495_v15, %v2164_v28  ;;  %v3498_v3 = vadd.f32 %v3497_v8, %v3496_v30  ;;  %v1877_v49 = vpop.xlane.xlu1 %1876  ;;  %2650 = vperm.xlu0 %3713, %v3942_v13   ;;  %2645 = vperm.xlu1 %3714, %v3944_v63   ;;  %v3946_v57 = vpop.eup %3945  ;;  %v2462_v63 = vld [vmem:[#allocation5] sm:$0xff]  ;;  %v2463_v8 = vld [vmem:[#allocation5 + $0x8] sm:$0xff] }
 0x4c4   : > { %3955 = vrcp.f32 %v2517_v23  ;;  %1941 = vst.msk [vmem:[#allocation4 + $0xd8] sm:$0xff] %vm662_vm1, %v1908_v24  ;;  %v1911_v25 = vadd.f32 %v1877_v49, %v1783_v47 }
 0x4c5   : > { %2421 = vst.msk [vmem:[#allocation5 + $0xd0] sm:$0xff] %vm408_vm0, %v2389_v51  ;;  %v2390_v59 = vadd.f32 %v3498_v3, %v2165_v1  ;;  %v1874_v50 = vpop.xlane.xlu0 %1873  ;;  %3957 = vrcp.f32 %v2520_v11  ;;  %v2464_v3 = vld [vmem:[#allocation5 + $0x10] sm:$0xff]  ;;  %v2465_v11 = vld [vmem:[#allocation5 + $0x18] sm:$0xff] }
 0x4c6   : > { %v3948_v18 = vpop.eup %3947  ;;  %1944 = vst.msk [vmem:[#allocation4 + $0xf0] sm:$0xff] %vm662_vm1, %v1911_v25  ;;  %v1910_v56 = vadd.f32 %v1874_v50, %v1782_v14  ;;  %v2466_v50 = vld [vmem:[#allocation5 + $0x20] sm:$0xff] }
 0x4c7   : > { %v2519_v41 = vld [vmem:[#allocation4 + $0xc8] sm:$0xff]  ;;  %2422 = vst.msk [vmem:[#allocation5 + $0xd8] sm:$0xff] %vm408_vm0, %v2390_v59  ;;  %v3499_v10 = vpop.f32.mrb[88].mxu0  ;;  %2660 = vperm.xlu0 %3713, %v3946_v57   ;;  %2655 = vperm.xlu1 %3714, %v3948_v18   ;;  %v2522_v22 = vld [vmem:[#allocation4 + $0xe0] sm:$0xff]  ;;  %v3950_v0 = vpop.eup %3949 }
 0x4c8   : > { %3959 = vrcp.f32 %v2519_v41  ;;  %1943 = vst.msk [vmem:[#allocation4 + $0xe8] sm:$0xff] %vm662_vm1, %v1910_v56  ;;  %v3500_v48 = vpop.f32.mrb[89].mxu0  ;;  %v2136_v29 = vpop.permute.xlu1 %2135  ;;  %v2467_v18 = vld [vmem:[#allocation5 + $0x28] sm:$0xff] }
 0x4c9   : > { %v3501_v44 = vadd.f32 %v3500_v48, %v3499_v10  ;;  %v3502_v6 = vpop.f32.mrb[90].mxu0  ;;  %v1880_v27 = vpop.xlane.xlu0 %1879  ;;  %3961 = vrcp.f32 %v2522_v22  ;;  %v2169_v15 = vmul.f32 %v2136_v29, %v1977_v53  ;;  %v2469_v48 = vld [vmem:[#allocation5 + $0x38] sm:$0xff] }
 0x4ca   : > { %v3952_v35 = vpop.eup %3951  ;;  %v1912_v62 = vadd.f32 %v1880_v27, %v1784_v32  ;;  %v3503_v55 = vpop.f32.mrb[91].mxu0 }
 0x4cb   : > { %v2521_v31 = vld [vmem:[#allocation4 + $0xd8] sm:$0xff]  ;;  %v2391_v20 = vadd.f32 %v3501_v44, %v2166_v12  ;;  %v3504_v34 = vadd.f32 %v3503_v55, %v3502_v6  ;;  %2670 = vperm.xlu0 %3713, %v3950_v0   ;;  %2665 = vperm.xlu1 %3714, %v3952_v35   ;;  %v3954_v54 = vpop.eup %3953  ;;  %v2471_v6 = vld [vmem:[#allocation5 + $0x48] sm:$0xff]  ;;  %v2470_v35 = vld [vmem:[#allocation5 + $0x40] sm:$0xff] }
 0x4cc   : > { %3963 = vrcp.f32 %v2521_v31  ;;  %1945 = vst.msk [vmem:[#allocation4 + $0xf8] sm:$0xff] %vm662_vm1, %v1912_v62 }
 0x4cd   : > { %v2524_v40 = vld [vmem:[#allocation4 + $0xf0] sm:$0xff]  ;;  %2423 = vst.msk [vmem:[#allocation5 + $0xe0] sm:$0xff] %vm408_vm0, %v2391_v20  ;;  %v2392_v4 = vadd.f32 %v3504_v34, %v2167_v9 }
 0x4ce   : > { %v3956_v26 = vpop.eup %3955  ;;  %3965 = vrcp.f32 %v2524_v40  ;;  %v2472_v34 = vld [vmem:[#allocation5 + $0x50] sm:$0xff] }
 0x4cf   : > { %v2523_v7 = vld [vmem:[#allocation4 + $0xe8] sm:$0xff]  ;;  %2424 = vst.msk [vmem:[#allocation5 + $0xe8] sm:$0xff] %vm408_vm0, %v2392_v4  ;;  %2680 = vperm.xlu0 %3713, %v3954_v54   ;;  %2675 = vperm.xlu1 %3714, %v3956_v26   ;;  %v3958_v21 = vpop.eup %3957  ;;  %v2473_v54 = vld [vmem:[#allocation5 + $0x58] sm:$0xff] }
 0x4d0   : > { %3967 = vrcp.f32 %v2523_v7  ;;  %v2131_v17 = vpop.permute.xlu0 %2130 }
 0x4d1   : > { %v2168_v42 = vmul.f32 %v2131_v17, %v1976_v19  ;;  %v2476_v19 = vld [vmem:[#allocation5 + $0x70] sm:$0xff]  ;;  %v2477_v17 = vld [vmem:[#allocation5 + $0x78] sm:$0xff] }
 0x4d2   : > { %v3960_v45 = vpop.eup %3959 }
 0x4d3   : > { %v2525_v38 = vld [vmem:[#allocation4 + $0xf8] sm:$0xff]  ;;  %2690 = vperm.xlu0 %3713, %v3958_v21   ;;  %2685 = vperm.xlu1 %3714, %v3960_v45   ;;  %v3962_v37 = vpop.eup %3961  ;;  %v2474_v45 = vld [vmem:[#allocation5 + $0x60] sm:$0xff] }
 0x4d4   : > { %3969 = vrcp.f32 %v2525_v38  ;;  %v2475_v38 = vld [vmem:[#allocation5 + $0x68] sm:$0xff] }
 0x4d6   : > { %v3964_v2 = vpop.eup %3963 }
 0x4d7   : > { %2700 = vperm.xlu0 %3713, %v3962_v37   ;;  %2695 = vperm.xlu1 %3714, %v3964_v2  }
 0x4d8   : > { %v3966_v33 = vpop.eup %3965 }
 0x4da   : > { %v3968_v36 = vpop.eup %3967 }
 0x4db   : > { %2710 = vperm.xlu0 %3713, %v3966_v33   ;;  %2705 = vperm.xlu1 %3714, %v3968_v36  }
 0x4de   : > { %v3970_v46 = vpop.eup %3969 }
 0x4df   : > { %2715 = vperm.xlu1 %3714, %v3970_v46  }
 0x50a   : > { %v3505_v52 = vpop.f32.mrb[92].mxu0 }
 0x50b   : > { %v3506_v60 = vpop.f32.mrb[93].mxu0 }
 0x50c   : > { %v3507_v58 = vadd.f32 %v3506_v60, %v3505_v52  ;;  %v3508_v13 = vpop.f32.mrb[94].mxu0 }
 0x50d   : > { %v3509_v28 = vpop.f32.mrb[95].mxu0 }
 0x50e   : > { %v2393_v30 = vadd.f32 %v3507_v58, %v2168_v42  ;;  %v3510_v5 = vadd.f32 %v3509_v28, %v3508_v13  ;;  %v2478_v58 = vld [vmem:[#allocation5 + $0x80] sm:$0xff]  ;;  %v2479_v13 = vld [vmem:[#allocation5 + $0x88] sm:$0xff] }
 0x510   : > { %2425 = vst.msk [vmem:[#allocation5 + $0xf0] sm:$0xff] %vm408_vm0, %v2393_v30  ;;  %v2394_v39 = vadd.f32 %v3510_v5, %v2169_v15 }
 0x512   : > { %2426 = vst.msk [vmem:[#allocation5 + $0xf8] sm:$0xff] %vm408_vm0, %v2394_v39 }
 0x51d   : > { %v2561_v24 = vpop.permute.xlu0 %2560 }
 0x51e   : > { %v2566_v47 = vpop.permute.xlu1 %2565  ;;  %v2718_v1 = vmul.f32 %v2561_v24, %v2462_v63  ;;  %v2480_v63 = vld [vmem:[#allocation5 + $0x90] sm:$0xff]  ;;  %v2481_v24 = vld [vmem:[#allocation5 + $0x98] sm:$0xff] }
 0x51f   : > { %v2719_v23 = vmul.f32 %v2566_v47, %v2463_v8 }
 0x521   : > { %v2762_v51 = vpack.c.bf16 %v2719_v23, %v2718_v1 }
 0x522   : > { %v2571_v49 = vpop.permute.xlu0 %2570 }
 0x523   : > { %v2576_v25 = vpop.permute.xlu1 %2575  ;;  %v2720_v14 = vmul.f32 %v2571_v49, %v2464_v3  ;;  %3579 = vmatprep.mubr.msk.bf16.mxu0 %vm408_vm0, %v2762_v51  ;;  %v2482_v3 = vld [vmem:[#allocation5 + $0xa0] sm:$0xff]  ;;  %v2483_v49 = vld [vmem:[#allocation5 + $0xa8] sm:$0xff] }
 0x524   : > { %v2721_v57 = vmul.f32 %v2576_v25, %v2465_v11 }
 0x526   : > { %v2763_v59 = vpack.c.bf16 %v2721_v57, %v2720_v14  ;;  %v2581_v61 = vpop.permute.xlu0 %2580 }
 0x527   : > { %v2586_v16 = vpop.permute.xlu1 %2585  ;;  %v2722_v56 = vmul.f32 %v2581_v61, %v2466_v50  ;;  %v2484_v50 = vld [vmem:[#allocation5 + $0xb0] sm:$0xff]  ;;  %v2485_v61 = vld [vmem:[#allocation5 + $0xb8] sm:$0xff] }
 0x528   : > { %v2723_v41 = vmul.f32 %v2586_v16, %v2467_v18  ;;  %3580 = vmatmul.mubr.msk.bf16.vlgmr.msra.gmra.mrb[96].mxu0 %vm408_vm0, %v2763_v59 }
 0x52a   : > { %v2764_v10 = vpack.c.bf16 %v2723_v41, %v2722_v56  ;;  %v2591_v22 = vpop.permute.xlu0 %2590 }
 0x52b   : > { %v2596_v32 = vpop.permute.xlu1 %2595  ;;  %v2724_v0 = vmul.f32 %v2591_v22, %v2468_v43  ;;  %v2486_v43 = vld [vmem:[#allocation5 + $0xc0] sm:$0xff]  ;;  %v2487_v22 = vld [vmem:[#allocation5 + $0xc8] sm:$0xff] }
 0x52c   : > { %v2725_v12 = vmul.f32 %v2596_v32, %v2469_v48  ;;  %3583 = vmatprep.mubr.msk.bf16.mxu0 %vm408_vm0, %v2764_v10 }
 0x52e   : > { %v2765_v44 = vpack.c.bf16 %v2725_v12, %v2724_v0  ;;  %v2601_v62 = vpop.permute.xlu0 %2600 }
 0x52f   : > { %v2606_v27 = vpop.permute.xlu1 %2605  ;;  %v2726_v9 = vmul.f32 %v2601_v62, %v2470_v35 }
 0x530   : > { %v2727_v55 = vmul.f32 %v2606_v27, %v2471_v6  ;;  %3584 = vmatmul.mubr.msk.bf16.gmra.mrb[100].mxu0 %vm408_vm0, %v2765_v44  ;;  %v2488_v6 = vld [vmem:[#allocation5 + $0xd0] sm:$0xff]  ;;  %v2489_v27 = vld [vmem:[#allocation5 + $0xd8] sm:$0xff] }
 0x532   : > { %v2766_v31 = vpack.c.bf16 %v2727_v55, %v2726_v9  ;;  %v2611_v20 = vpop.permute.xlu0 %2610 }
 0x533   : > { %v2728_v26 = vmul.f32 %v2611_v20, %v2472_v34  ;;  %v2490_v20 = vld [vmem:[#allocation5 + $0xe0] sm:$0xff]  ;;  %v2491_v34 = vld [vmem:[#allocation5 + $0xe8] sm:$0xff] }
 0x534   : > { %3587 = vmatprep.mubr.msk.bf16.mxu1 %vm408_vm0, %v2766_v31 }
 0x536   : > { %v2616_v40 = vpop.permute.xlu1 %2615  ;;  %v2621_v4 = vpop.permute.xlu0 %2620 }
 0x537   : > { %v2729_v7 = vmul.f32 %v2616_v40, %v2473_v54  ;;  %v2730_v33 = vmul.f32 %v2621_v4, %v2474_v45  ;;  %v2493_v45 = vld [vmem:[#allocation5 + $0xf8] sm:$0xff] }
 0x539   : > { %v2767_v21 = vpack.c.bf16 %v2729_v7, %v2728_v26 }
 0x53a   : > { %v2626_v37 = vpop.permute.xlu1 %2625  ;;  %v2631_v2 = vpop.permute.xlu0 %2630 }
 0x53b   : > { %v2731_v36 = vmul.f32 %v2626_v37, %v2475_v38  ;;  %3588 = vmatmul.mubr.msk.bf16.vlgmr.msra.gmra.mrb[64].mxu1 %vm408_vm0, %v2767_v21  ;;  %v2732_v29 = vmul.f32 %v2631_v2, %v2476_v19  ;;  %v2492_v21 = vld [vmem:[#allocation5 + $0xf0] sm:$0xff] }
 0x53c   : > { %v3035_v19 = vld [vmem:[%s4342_s16 + $0x10] sm:$0xff] }
 0x53d   : > { %v2768_v46 = vpack.c.bf16 %v2731_v36, %v2730_v33  ;;  %v5819_v36 = vstv %s2999_s15 }
 0x53e   : > { %v2636_v52 = vpop.permute.xlu1 %2635  ;;  %v2641_v53 = vpop.permute.xlu0 %2640 }
 0x53f   : > { %v2733_v60 = vmul.f32 %v2636_v52, %v2477_v17  ;;  %3591 = vmatprep.mubr.msk.bf16.mxu1 %vm408_vm0, %v2768_v46  ;;  %v2734_v30 = vmul.f32 %v2641_v53, %v2478_v58  ;;  %v3033_v53 = vld [vmem:[%s4342_s16] sm:$0xff] }
 0x541   : > { %v2769_v42 = vpack.c.bf16 %v2733_v60, %v2732_v29 }
 0x542   : > { %v2646_v28 = vpop.permute.xlu1 %2645  ;;  %v2651_v15 = vpop.permute.xlu0 %2650 }
 0x543   : > { %v2735_v5 = vmul.f32 %v2646_v28, %v2479_v13  ;;  %3592 = vmatmul.mubr.msk.bf16.gmra.mrb[68].mxu1 %vm408_vm0, %v2769_v42  ;;  %v2736_v1 = vmul.f32 %v2651_v15, %v2480_v63  ;;  %v3036_v42 = vld [vmem:[%s4342_s16 + $0x18] sm:$0xff]  ;;  %v3034_v15 = vld [vmem:[%s4342_s16 + $0x8] sm:$0xff] }
 0x545   : > { %v2770_v39 = vpack.c.bf16 %v2735_v5, %v2734_v30 }
 0x546   : > { %v2656_v8 = vpop.permute.xlu1 %2655  ;;  %v2661_v47 = vpop.permute.xlu0 %2660 }
 0x547   : > { %v2737_v23 = vmul.f32 %v2656_v8, %v2481_v24  ;;  %3595 = vmatprep.mubr.msk.bf16.mxu1 %vm408_vm0, %v2770_v39  ;;  %v2738_v14 = vmul.f32 %v2661_v47, %v2482_v3  ;;  %v3039_v8 = vld [vmem:[%s4342_s16 + $0x30] sm:$0xff] }
 0x549   : > { %v2771_v51 = vpack.c.bf16 %v2737_v23, %v2736_v1  ;;  %v3037_v23 = vld [vmem:[%s4342_s16 + $0x20] sm:$0xff] }
 0x54a   : > { %v2666_v11 = vpop.permute.xlu1 %2665  ;;  %v2671_v25 = vpop.permute.xlu0 %2670 }
 0x54b   : > { %v2739_v57 = vmul.f32 %v2666_v11, %v2483_v49  ;;  %3596 = vmatmul.mubr.msk.bf16.gmra.mrb[72].mxu1 %vm408_vm0, %v2771_v51  ;;  %v2740_v56 = vmul.f32 %v2671_v25, %v2484_v50  ;;  %v3040_v49 = vld [vmem:[%s4342_s16 + $0x38] sm:$0xff] }
 0x54d   : > { %v2772_v59 = vpack.c.bf16 %v2739_v57, %v2738_v14  ;;  %v3038_v57 = vld [vmem:[%s4342_s16 + $0x28] sm:$0xff] }
 0x54e   : > { %v2676_v18 = vpop.permute.xlu1 %2675  ;;  %v2681_v16 = vpop.permute.xlu0 %2680 }
 0x54f   : > { %v2741_v41 = vmul.f32 %v2676_v18, %v2485_v61  ;;  %3599 = vmatprep.mubr.msk.bf16.mxu1 %vm408_vm0, %v2772_v59  ;;  %v2742_v0 = vmul.f32 %v2681_v16, %v2486_v43  ;;  %v3041_v43 = vld [vmem:[%s4342_s16 + $0x40] sm:$0xff] }
 0x551   : > { %v2773_v10 = vpack.c.bf16 %v2741_v41, %v2740_v56  ;;  %v3043_v56 = vld [vmem:[%s4342_s16 + $0x50] sm:$0xff] }
 0x552   : > { %v2686_v48 = vpop.permute.xlu1 %2685  ;;  %v2691_v32 = vpop.permute.xlu0 %2690 }
 0x553   : > { %v2743_v12 = vmul.f32 %v2686_v48, %v2487_v22  ;;  %3600 = vmatmul.mubr.msk.bf16.gmra.mrb[76].mxu1 %vm408_vm0, %v2773_v10  ;;  %v2744_v55 = vmul.f32 %v2691_v32, %v2488_v6  ;;  %v3044_v32 = vld [vmem:[%s4342_s16 + $0x58] sm:$0xff]  ;;  %v3042_v6 = vld [vmem:[%s4342_s16 + $0x48] sm:$0xff] }
 0x555   : > { %v2774_v44 = vpack.c.bf16 %v2743_v12, %v2742_v0 }
 0x556   : > { %v2696_v35 = vpop.permute.xlu1 %2695  ;;  %v2701_v62 = vpop.permute.xlu0 %2700 }
 0x557   : > { %v2745_v9 = vmul.f32 %v2696_v35, %v2489_v27  ;;  %3603 = vmatprep.mubr.msk.bf16.mxu1 %vm408_vm0, %v2774_v44  ;;  %v2746_v40 = vmul.f32 %v2701_v62, %v2490_v20 }
 0x559   : > { %v2775_v31 = vpack.c.bf16 %v2745_v9, %v2744_v55 }
 0x55a   : > { %v2706_v54 = vpop.permute.xlu1 %2705  ;;  %v2711_v26 = vpop.permute.xlu0 %2710 }
 0x55b   : > { %v2747_v4 = vmul.f32 %v2706_v54, %v2491_v34  ;;  %3604 = vmatmul.mubr.msk.bf16.gmra.mrb[80].mxu1 %vm408_vm0, %v2775_v31  ;;  %v2748_v37 = vmul.f32 %v2711_v26, %v2492_v21  ;;  %v3047_v31 = vld [vmem:[%s4342_s16 + $0x70] sm:$0xff]  ;;  %v3045_v54 = vld [vmem:[%s4342_s16 + $0x60] sm:$0xff]  ;;  %v3048_v26 = vld [vmem:[%s4342_s16 + $0x78] sm:$0xff] }
 0x55d   : > { %v2776_v7 = vpack.c.bf16 %v2747_v4, %v2746_v40 }
 0x55e   : > { %v2716_v38 = vpop.permute.xlu1 %2715 }
 0x55f   : > { %v2749_v2 = vmul.f32 %v2716_v38, %v2493_v45  ;;  %3607 = vmatprep.mubr.msk.bf16.mxu1 %vm408_vm0, %v2776_v7  ;;  %v3046_v38 = vld [vmem:[%s4342_s16 + $0x68] sm:$0xff] }
 0x561   : > { %v2777_v33 = vpack.c.bf16 %v2749_v2, %v2748_v37 }
 0x563   : > { %3608 = vmatmul.mubr.msk.bf16.gmra.mrb[84].mxu1 %vm408_vm0, %v2777_v33 }
 0x5fb   : > { %v3581_v46 = vpop.f32.mrb[96].mxu0 }
 0x5fc   : > { %v3003_v17 = vmul.f32 %v3581_v46, %v5819_v36  ;;  %v2872_v52 = vpop.f32.mrb[97].mxu0 }
 0x5fd   : > { %v3001_v29 = vmul.f32 %v5819_v36, %v2872_v52  ;;  %v3582_v60 = vpop.f32.mrb[98].mxu0 }
 0x5fe   : > { %v3067_v58 = vadd.f32 %v3035_v19, %v3003_v17  ;;  %v3004_v13 = vmul.f32 %v3582_v60, %v5819_v36  ;;  %v2875_v28 = vpop.f32.mrb[99].mxu0  ;;  %v3051_v17 = vld [vmem:[%s4342_s16 + $0x90] sm:$0xff] }
 0x5ff   : > { %v3065_v30 = vadd.f32 %v3033_v53, %v3001_v29  ;;  %v3002_v5 = vmul.f32 %v5819_v36, %v2875_v28  ;;  %v3049_v29 = vld [vmem:[%s4342_s16 + $0x80] sm:$0xff] }
 0x600   : > { %3099 = vst.msk [vmem:[%s5830_s0 + $0x10] sm:$0xff] %vm408_vm0, %v3067_v58  ;;  %v3068_v39 = vadd.f32 %v3036_v42, %v3004_v13  ;;  %v3052_v58 = vld [vmem:[%s4342_s16 + $0x98] sm:$0xff] }
 0x601   : > { %3097 = vst.msk [vmem:[%s5830_s0] sm:$0xff] %vm408_vm0, %v3065_v30  ;;  %v3066_v63 = vadd.f32 %v3034_v15, %v3002_v5  ;;  %v3050_v30 = vld [vmem:[%s4342_s16 + $0x88] sm:$0xff] }
 0x602   : > { %3100 = vst.msk [vmem:[%s5830_s0 + $0x18] sm:$0xff] %vm408_vm0, %v3068_v39 }
 0x603   : > { %3098 = vst.msk [vmem:[%s5830_s0 + $0x8] sm:$0xff] %vm408_vm0, %v3066_v63  ;;  %v3585_v24 = vpop.f32.mrb[100].mxu0 }
 0x604   : > { %v3007_v47 = vmul.f32 %v3585_v24, %v5819_v36  ;;  %v2888_v1 = vpop.f32.mrb[101].mxu0 }
 0x605   : > { %v3005_v51 = vmul.f32 %v5819_v36, %v2888_v1  ;;  %v3586_v3 = vpop.f32.mrb[102].mxu0 }
 0x606   : > { %v3071_v11 = vadd.f32 %v3039_v8, %v3007_v47  ;;  %v3008_v25 = vmul.f32 %v3586_v3, %v5819_v36  ;;  %v2891_v14 = vpop.f32.mrb[103].mxu0  ;;  %v3055_v47 = vld [vmem:[%s4342_s16 + $0xb0] sm:$0xff] }
 0x607   : > { %v3069_v59 = vadd.f32 %v3037_v23, %v3005_v51  ;;  %v3006_v50 = vmul.f32 %v5819_v36, %v2891_v14  ;;  %v3053_v51 = vld [vmem:[%s4342_s16 + $0xa0] sm:$0xff] }
 0x608   : > { %3103 = vst.msk [vmem:[%s5830_s0 + $0x30] sm:$0xff] %vm408_vm0, %v3071_v11  ;;  %v3072_v61 = vadd.f32 %v3040_v49, %v3008_v25  ;;  %v3056_v11 = vld [vmem:[%s4342_s16 + $0xb8] sm:$0xff] }
 0x609   : > { %3101 = vst.msk [vmem:[%s5830_s0 + $0x20] sm:$0xff] %vm408_vm0, %v3069_v59  ;;  %v3070_v18 = vadd.f32 %v3038_v57, %v3006_v50  ;;  %v3054_v59 = vld [vmem:[%s4342_s16 + $0xa8] sm:$0xff] }
 0x60a   : > { %3104 = vst.msk [vmem:[%s5830_s0 + $0x38] sm:$0xff] %vm408_vm0, %v3072_v61 }
 0x60b   : > { %3102 = vst.msk [vmem:[%s5830_s0 + $0x28] sm:$0xff] %vm408_vm0, %v3070_v18 }
 0x60e   : > { %v3589_v16 = vpop.f32.mrb[64].mxu1 }
 0x60f   : > { %v3011_v41 = vmul.f32 %v3589_v16, %v5819_v36  ;;  %v2904_v10 = vpop.f32.mrb[65].mxu1 }
 0x610   : > { %v3009_v22 = vmul.f32 %v5819_v36, %v2904_v10  ;;  %v3590_v48 = vpop.f32.mrb[66].mxu1 }
 0x611   : > { %v3075_v0 = vadd.f32 %v3043_v56, %v3011_v41  ;;  %v3012_v12 = vmul.f32 %v3590_v48, %v5819_v36  ;;  %v2907_v44 = vpop.f32.mrb[67].mxu1  ;;  %v3059_v41 = vld [vmem:[%s4342_s16 + $0xd0] sm:$0xff] }
 0x612   : > { %v3073_v27 = vadd.f32 %v3041_v43, %v3009_v22  ;;  %v3010_v35 = vmul.f32 %v5819_v36, %v2907_v44  ;;  %v3057_v22 = vld [vmem:[%s4342_s16 + $0xc0] sm:$0xff] }
 0x613   : > { %3107 = vst.msk [vmem:[%s5830_s0 + $0x50] sm:$0xff] %vm408_vm0, %v3075_v0  ;;  %v3076_v62 = vadd.f32 %v3044_v32, %v3012_v12  ;;  %v3060_v0 = vld [vmem:[%s4342_s16 + $0xd8] sm:$0xff] }
 0x614   : > { %3105 = vst.msk [vmem:[%s5830_s0 + $0x40] sm:$0xff] %vm408_vm0, %v3073_v27  ;;  %v3074_v55 = vadd.f32 %v3042_v6, %v3010_v35  ;;  %v3058_v27 = vld [vmem:[%s4342_s16 + $0xc8] sm:$0xff] }
 0x615   : > { %3108 = vst.msk [vmem:[%s5830_s0 + $0x58] sm:$0xff] %vm408_vm0, %v3076_v62 }
 0x616   : > { %3106 = vst.msk [vmem:[%s5830_s0 + $0x48] sm:$0xff] %vm408_vm0, %v3074_v55  ;;  %v3593_v9 = vpop.f32.mrb[68].mxu1 }
 0x617   : > { %v3015_v20 = vmul.f32 %v3593_v9, %v5819_v36  ;;  %v2920_v34 = vpop.f32.mrb[69].mxu1 }
 0x618   : > { %v3013_v40 = vmul.f32 %v5819_v36, %v2920_v34  ;;  %v3594_v4 = vpop.f32.mrb[70].mxu1 }
 0x619   : > { %v3079_v7 = vadd.f32 %v3047_v31, %v3015_v20  ;;  %v3016_v21 = vmul.f32 %v3594_v4, %v5819_v36  ;;  %v2923_v45 = vpop.f32.mrb[71].mxu1  ;;  %v3063_v20 = vld [vmem:[%s4342_s16 + $0xf0] sm:$0xff] }
 0x61a   : > { %v3077_v37 = vadd.f32 %v3045_v54, %v3013_v40  ;;  %v3014_v2 = vmul.f32 %v5819_v36, %v2923_v45  ;;  %v3061_v40 = vld [vmem:[%s4342_s16 + $0xe0] sm:$0xff] }
 0x61b   : > { %3111 = vst.msk [vmem:[%s5830_s0 + $0x70] sm:$0xff] %vm408_vm0, %v3079_v7  ;;  %v3080_v33 = vadd.f32 %v3048_v26, %v3016_v21  ;;  %v3064_v7 = vld [vmem:[%s4342_s16 + $0xf8] sm:$0xff] }
 0x61c   : > { %3109 = vst.msk [vmem:[%s5830_s0 + $0x60] sm:$0xff] %vm408_vm0, %v3077_v37  ;;  %v3078_v46 = vadd.f32 %v3046_v38, %v3014_v2  ;;  %v3062_v37 = vld [vmem:[%s4342_s16 + $0xe8] sm:$0xff]  ;;  %s4031_s16 = scalar_lea.vmem %s5953_s9, 4096 }
 0x61d   : > { %3112 = vst.msk [vmem:[%s5830_s0 + $0x78] sm:$0xff] %vm408_vm0, %v3080_v33  ;;  %p4032_p0 = scmp.ne.s32.totalorder %s5953_s9, %s4031_s16  ;;  %p4039_p10 = scmp.lt.s32.totalorder %s4037_s30, %s4031_s16 }
 0x61e   : > { %3110 = vst.msk [vmem:[%s5830_s0 + $0x68] sm:$0xff] %vm408_vm0, %v3078_v46  ;;  %v3597_v19 = vpop.f32.mrb[72].mxu1 }
 0x61f   : > { %v3019_v52 = vmul.f32 %v3597_v19, %v5819_v36  ;;  %v2936_v53 = vpop.f32.mrb[73].mxu1  ;;  %p4033_p12 = pnand %p4032_p0, %p6328_p3  ;;  %p4040_p9 = por %p4039_p10, %p4038_p7 }
 0x620   : > { %v3017_v60 = vmul.f32 %v5819_v36, %v2936_v53  ;;  %v3598_v42 = vpop.f32.mrb[74].mxu1 }
 0x621   : > { %v3083_v13 = vadd.f32 %v3051_v17, %v3019_v52  ;;  %v3020_v28 = vmul.f32 %v3598_v42, %v5819_v36  ;;  %v2939_v15 = vpop.f32.mrb[75].mxu1  ;;  %p4034_p13 = pneg %p4033_p12 }
 0x622   : > { %v3081_v5 = vadd.f32 %v3049_v29, %v3017_v60  ;;  %v3018_v39 = vmul.f32 %v5819_v36, %v2939_v15 }
 0x623   : > { %3115 = vst.msk [vmem:[%s5830_s0 + $0x90] sm:$0xff] %vm408_vm0, %v3083_v13  ;;  %v3084_v63 = vadd.f32 %v3052_v58, %v3020_v28  ;;  %p4041_p11 = pnand %p4040_p9, %p4034_p13 }
 0x624   : > { %3113 = vst.msk [vmem:[%s5830_s0 + $0x80] sm:$0xff] %vm408_vm0, %v3081_v5  ;;  %v3082_v24 = vadd.f32 %v3050_v30, %v3018_v39 }
 0x625   : > { %3116 = vst.msk [vmem:[%s5830_s0 + $0x98] sm:$0xff] %vm408_vm0, %v3084_v63 }
 0x626   : > { %3114 = vst.msk [vmem:[%s5830_s0 + $0x88] sm:$0xff] %vm408_vm0, %v3082_v24  ;;  %v3601_v8 = vpop.f32.mrb[76].mxu1 }
 0x627   : > { %v3023_v1 = vmul.f32 %v3601_v8, %v5819_v36  ;;  %v2952_v23 = vpop.f32.mrb[77].mxu1 }
 0x628   : > { %v3021_v3 = vmul.f32 %v5819_v36, %v2952_v23  ;;  %v3602_v49 = vpop.f32.mrb[78].mxu1 }
 0x629   : > { %v3087_v25 = vadd.f32 %v3055_v47, %v3023_v1  ;;  %v3024_v14 = vmul.f32 %v3602_v49, %v5819_v36  ;;  %v2955_v57 = vpop.f32.mrb[79].mxu1 }
 0x62a   : > { %v3085_v50 = vadd.f32 %v3053_v51, %v3021_v3  ;;  %v3022_v61 = vmul.f32 %v5819_v36, %v2955_v57 }
 0x62b   : > { %3119 = vst.msk [vmem:[%s5830_s0 + $0xb0] sm:$0xff] %vm408_vm0, %v3087_v25  ;;  %v3088_v18 = vadd.f32 %v3056_v11, %v3024_v14 }
 0x62c   : > { %3117 = vst.msk [vmem:[%s5830_s0 + $0xa0] sm:$0xff] %vm408_vm0, %v3085_v50  ;;  %v3086_v16 = vadd.f32 %v3054_v59, %v3022_v61 }
 0x62d   : > { %3120 = vst.msk [vmem:[%s5830_s0 + $0xb8] sm:$0xff] %vm408_vm0, %v3088_v18 }
 0x62e   : > { %3118 = vst.msk [vmem:[%s5830_s0 + $0xa8] sm:$0xff] %vm408_vm0, %v3086_v16  ;;  %v3605_v56 = vpop.f32.mrb[80].mxu1 }
 0x62f   : > { %v3027_v10 = vmul.f32 %v3605_v56, %v5819_v36  ;;  %v2968_v43 = vpop.f32.mrb[81].mxu1 }
 0x630   : > { %v3025_v48 = vmul.f32 %v5819_v36, %v2968_v43  ;;  %v3606_v32 = vpop.f32.mrb[82].mxu1 }
 0x631   : > { %v3091_v12 = vadd.f32 %v3059_v41, %v3027_v10  ;;  %v3028_v44 = vmul.f32 %v3606_v32, %v5819_v36  ;;  %v2971_v6 = vpop.f32.mrb[83].mxu1 }
 0x632   : > { %v3089_v35 = vadd.f32 %v3057_v22, %v3025_v48  ;;  %v3026_v62 = vmul.f32 %v5819_v36, %v2971_v6 }
 0x633   : > { %3123 = vst.msk [vmem:[%s5830_s0 + $0xd0] sm:$0xff] %vm408_vm0, %v3091_v12  ;;  %v3092_v55 = vadd.f32 %v3060_v0, %v3028_v44 }
 0x634   : > { %3121 = vst.msk [vmem:[%s5830_s0 + $0xc0] sm:$0xff] %vm408_vm0, %v3089_v35  ;;  %v3090_v9 = vadd.f32 %v3058_v27, %v3026_v62 }
 0x635   : > { %3124 = vst.msk [vmem:[%s5830_s0 + $0xd8] sm:$0xff] %vm408_vm0, %v3092_v55 }
 0x636   : > { %3122 = vst.msk [vmem:[%s5830_s0 + $0xc8] sm:$0xff] %vm408_vm0, %v3090_v9  ;;  %v3609_v31 = vpop.f32.mrb[84].mxu1 }
 0x637   : > { %v3031_v34 = vmul.f32 %v3609_v31, %v5819_v36  ;;  %v2984_v54 = vpop.f32.mrb[85].mxu1 }
 0x638   : > { %v3029_v4 = vmul.f32 %v5819_v36, %v2984_v54  ;;  %v3610_v26 = vpop.f32.mrb[86].mxu1 }
 0x639   : > { %v3095_v21 = vadd.f32 %v3063_v20, %v3031_v34  ;;  %v3032_v45 = vmul.f32 %v3610_v26, %v5819_v36  ;;  %v2987_v38 = vpop.f32.mrb[87].mxu1 }
 0x63a   : > { %v3093_v2 = vadd.f32 %v3061_v40, %v3029_v4  ;;  %v3030_v33 = vmul.f32 %v5819_v36, %v2987_v38 }
 0x63b   : > { %3127 = vst.msk [vmem:[%s5830_s0 + $0xf0] sm:$0xff] %vm408_vm0, %v3095_v21  ;;  %v3096_v46 = vadd.f32 %v3064_v7, %v3032_v45 }
 0x63c   : > { %3125 = vst.msk [vmem:[%s5830_s0 + $0xe0] sm:$0xff] %vm408_vm0, %v3093_v2  ;;  %v3094_v19 = vadd.f32 %v3062_v37, %v3030_v33 }
 0x63d   : > { %3128 = vst.msk [vmem:[%s5830_s0 + $0xf8] sm:$0xff] %vm408_vm0, %v3096_v46 }
 0x63e   : > { %3126 = vst.msk [vmem:[%s5830_s0 + $0xe8] sm:$0xff] %vm408_vm0, %v3094_v19 }
 0x63f   : > { %4044 = shalt.err (!%p4041_p11)
}
 0x640   : > { %s4045_s18 = scalar_lea.hbm %s5951_s13, 4096  ;;  %s4049_s28 = scalar_lea.hbm %s6014_s6, 8192 }
 0x641   : > { %p4046_p1 = scmp.ne.s32.totalorder %s5951_s13, %s4045_s18  ;;  %p4050_p5 = scmp.lt.u32.totalorder %s5951_s13, %s6014_s6 }
 0x642   : > { %p4051_p4 = scmp.lt.u32.totalorder %s4049_s28, %s4045_s18  ;;  %p4053_p0 = scmp.lt.u32.totalorder %s4045_s18, %s5951_s13 }
 0x643   : > { %p4047_p6 = pnand %p4046_p1, %p6328_p3 }
 0x644   : > { %p4052_p8 = por %p4051_p4, %p4050_p5 }
 0x645   : > { %p4048_p2 = pneg %p4047_p6 }
 0x646   : > { %p4054_p12 = por %p4053_p0, %p4052_p8 }
 0x648   : > { %p4055_p13 = pnand %p4054_p12, %p4048_p2 }
 0x64a   : > { %4058 = shalt.err (!%p4055_p13)
}
 0x64b   : > { %s4127_s8 = smov 128   ;;  %s4128_s20 = smov 8  }
 0x64c   : > { %3643 = dma.vmem_to_hbm [thread:$0]  (%p6328_p3), %s5953_s9, 4096, %s5951_s13, %s3130_s25, %s4127_s8, %s4127_s8, %s4128_s20  }
 0x64d PF: > { %s3160_s21 = sand.u32 1, %s4097_s23   ;;  %p6329_p7 = scmp.ne.s32.totalorder %s6110_s12, 0 }
 0x64e   : > { %p6330_p10 = scmp.ge.s32.totalorder %s4117_s27, 2  ;;  %s3161_s16 = scalar_lea.sflag [#allocation9], %s3160_s21 }
 0x650   : > { %p3653_p9 = pnand %p6330_p10, %p6329_p7 }
 0x652   : > { %4092 = dma.done.wait (!%p3653_p9), %s3161_s16, 4096  }
 0x653   : > { %4094 = vsyncadd (!%p3653_p9), %s3161_s16, 4294963200  ;;  %s26_s27 = sadd.s32 1, %s4117_s27   ;;  %s6331_s23 = smov %s4101_s24 }
 0x654   : > { %p23_p11 = scmp.ge.s32.totalorder %s26_s27, 4   ;;  %s6332_s24 = smov %s4105_s4 }
 0x655   : > { %s6333_s4 = smov %s4223_s11  ;;  %s6334_s25 = smov %s4113_s26 }
 0x656   : > { %s6335_s26 = smov %s6337_s29  ;;  %25 = sbr.rel (!%p23_p11) target bundleno = 10 (0xa), region = 110 }
 0x65d   :  { %3166 = vsyncpa [#allocation8], 1 }
 0x65e   :  { %3168 = vsyncpa [#allocation8 + $0x1], 1 }
 0x65f   :  { %3169 = vsyncpa [#allocation11], 1 }
 0x660   :  { %3171 = vsyncpa [#allocation11 + $0x1], 1 }
 0x661   :  { %3172 = vsyncpa [#allocation9], 1 }
 0x662   :  { %3174 = vsyncpa [#allocation9 + $0x1], 1 }

</bundles_post_ra>
